<compile_context>
chip_gen: v5e
topology: v5e:2x2
jax: 0.10.0
libtpu: 0.0.40
codegen_flags: <defaults>
</compile_context>

<pallas_src>
import math
from functools import partial

import jax
import jax.numpy as jnp
from jax import lax
from jax.experimental import pallas as pl
from jax.experimental.pallas import tpu as pltpu

# ----------------------------- model dimensions -----------------------------
D_MODEL = 32
N_LAYER = 2
D_STATE = 16                      # Mamba default
D_CONV = 4                        # Mamba default
EXPAND = 2                        # Mamba default
D_INNER = EXPAND * D_MODEL        # 64
DT_RANK = math.ceil(D_MODEL / 16) # 2
EPS = 1e-5

B = 2
L = 8


# =============================================================================
# Single fused kernel: all layers, whole batch, one invocation.
# Refs:
#   x, pos                : (B*L, D_MODEL)
#   gamma, beta           : (N_LAYER, 1, D_MODEL)
#   in_w                  : (N_LAYER, D_MODEL, 2*D_INNER)
#   conv_w                : (N_LAYER, D_CONV, D_INNER)
#   conv_b, dt_b, d_skip  : (N_LAYER, 1, D_INNER)
#   xdt_w (dt_proj folded): (N_LAYER, D_INNER, 128)   (delta | B | C | 0-pad)
#   alog_T                : (N_LAYER, D_STATE, D_INNER)
#   out_w                 : (N_LAYER, D_INNER, D_MODEL)
#   gf, bf                : (1, D_MODEL)
#   o                     : (B*L, D_MODEL)
#   dA_scr, dBu_scr       : (L, D_STATE, B*D_INNER) VMEM scratch
# =============================================================================
def mixer_kernel(x_ref, pos_ref, gamma_ref, beta_ref, inw_ref, convw_ref,
                 convb_ref, xdtw_ref, dtb_ref, alogT_ref, dskip_ref, outw_ref,
                 gf_ref, bf_ref, o_ref, dA_scr, dBu_scr, *, bsz, seq):
    n_layer = inw_ref.shape[0]
    d_inner = convw_ref.shape[-1]
    d_state = alogT_ref.shape[1]
    d_conv = convw_ref.shape[1]
    bl = bsz * seq
    lanes = bsz * d_inner        # 2 * 64 = 128: full-lane scan tiles

    # Layer-invariant, hoisted once:
    #   position-within-sequence of every row (causal conv mask; also kills
    #   cross-batch contamination of the rolled taps).
    seq_pos = lax.broadcasted_iota(jnp.int32, (bl, d_inner), 0) % seq
    conv_masks = [seq_pos >= s for s in range(1, d_conv)]   # shift 1..d_conv-1

    def layer_norm(s, g, b):
        # one-pass stats: both lane reduces issue back-to-back
        mu = jnp.mean(s, axis=-1, keepdims=True)
        ms = jnp.mean(s * s, axis=-1, keepdims=True)
        return (s - mu) * lax.rsqrt(ms - mu * mu + EPS) * g + b

    def pack_batch_to_lanes(v):
        # (bl, w) batch-major rows -> (seq, bsz*w): lanes grouped by batch
        return jnp.concatenate(
            [v[b * seq:(b + 1) * seq, :] for b in range(bsz)], axis=-1)

    hidden = x_ref[...]          # (bl, D_MODEL)
    residual = pos_ref[...]      # first add fuses the "+ pos"

    for l in range(n_layer):
        # -------- Block pre-norm: residual add + LayerNorm --------
        residual = hidden + residual
        normed = layer_norm(residual, gamma_ref[l], beta_ref[l])

        # -------- Mamba mixer --------
        # in_proj (no bias): (bl, 2*d_inner) — full 128-lane result tile.
        xz = jnp.dot(normed, inw_ref[l], preferred_element_type=jnp.float32)
        # lane-64 slices of a 128-lane tile are masked copies; accepted here
        # (one pair per layer) — do not add further sub-128 slices.
        xi = xz[:, :d_inner]
        z = xz[:, d_inner:]

        # causal depthwise conv1d (+ bias, SiLU) via XLU roll + hoisted mask.
        convw = convw_ref[l]                                   # (d_conv, d_inner)
        acc = xi * convw[d_conv - 1:d_conv, :] + convb_ref[l]  # shift == 0 tap
        for k in range(d_conv - 1):
            shift = d_conv - 1 - k                             # 3, 2, 1
            xs = jnp.where(conv_masks[shift - 1],
                           pltpu.roll(xi, shift, axis=0), 0.0)
            acc = acc + xs * convw[k:k + 1, :]
        xc = acc * jax.nn.sigmoid(acc)                         # SiLU

        # x_proj with dt_proj folded in, output padded to 128 lanes:
        # one lane-dense matmul -> delta_lin | B | C | zeros
        dbc = jnp.dot(xc, xdtw_ref[l], preferred_element_type=jnp.float32)
        delta = jax.nn.softplus(dbc[:, :d_inner] + dtb_ref[l])           # (bl, d_inner)
        Bm = dbc[:, d_inner:d_inner + d_state]                           # (bl, d_state)
        Cm = dbc[:, d_inner + d_state:d_inner + 2 * d_state]             # (bl, d_state)

        # ---- batch packed into lanes: (seq, d_state, bsz*d_inner) tiles ----
        delta_p = pack_batch_to_lanes(delta)                  # (seq, lanes)
        xc_p = pack_batch_to_lanes(xc)                        # (seq, lanes)
        A_Tp = jnp.concatenate([-jnp.exp(alogT_ref[l])] * bsz, axis=-1)  # (d_state, lanes)
        B_p = jnp.concatenate(
            [jnp.broadcast_to(Bm[b * seq:(b + 1) * seq, :, None],
                              (seq, d_state, d_inner)) for b in range(bsz)],
            axis=-1)                                          # (seq, d_state, lanes)
        C_p = jnp.concatenate(
            [jnp.broadcast_to(Cm[b * seq:(b + 1) * seq, :, None],
                              (seq, d_state, d_inner)) for b in range(bsz)],
            axis=-1)                                          # (seq, d_state, lanes)

        # Stage dA / dB*u through VMEM scratch (bounds vreg live ranges; the
        # per-step static-index reloads schedule off the serial h-chain).
        dA_scr[...] = jnp.exp(delta_p[:, None, :] * A_Tp[None, :, :])
        dBu_scr[...] = B_p * (delta_p * xc_p)[:, None, :]

        # ---- lane-packed selective scan: seq serial FMA + sublane reduces ----
        h = jnp.zeros((d_state, lanes), jnp.float32)
        y_rows = []
        for t in range(seq):
            h = dA_scr[t] * h + dBu_scr[t]
            y_rows.append(jnp.sum(C_p[t] * h, axis=0, keepdims=True))   # (1, lanes)
        y_p = jnp.concatenate(y_rows, axis=0)                           # (seq, lanes)

        # unpack lanes back to row-major (bl, d_inner)
        y = jnp.concatenate(
            [y_p[:, b * d_inner:(b + 1) * d_inner] for b in range(bsz)], axis=0)

        y = y + xc * dskip_ref[l]                                       # D skip
        y = y * (z * jax.nn.sigmoid(z))                                 # SiLU(z) gate
        hidden = jnp.dot(y, outw_ref[l], preferred_element_type=jnp.float32)

    # -------- final residual add + LayerNorm_f --------
    residual = hidden + residual
    o_ref[...] = layer_norm(residual, gf_ref[...], bf_ref[...])


# =============================================================================
# Host-side (offline) parameter prep: fold dt_proj into x_proj, pad to 128
# output lanes, stack layers.
# =============================================================================
_STACK_KEYS = ("gamma", "beta", "in_w", "conv_w", "conv_b", "dt_b",
               "alog_T", "d_skip", "out_w")


def prepare_params(layer_params):
    stacked = {k: jnp.stack([lp[k] for lp in layer_params], axis=0)
               for k in _STACK_KEYS}
    xdt_list = []
    for lp in layer_params:
        w = jnp.concatenate([lp["xproj_w"][:, :DT_RANK] @ lp["dt_w"],
                             lp["xproj_w"][:, DT_RANK:]], axis=1)   # (D_INNER, 96)
        pad = (-w.shape[1]) % 128
        xdt_list.append(jnp.pad(w, ((0, 0), (0, pad))))             # -> (D_INNER, 128)
    stacked["xdt_w"] = jnp.stack(xdt_list, axis=0)
    return stacked


def mixer_model_forward(x, pos, stacked, final_gamma, final_beta):
    bsz, seq, dm = x.shape
    bl = bsz * seq
    d_inner = stacked["conv_w"].shape[-1]
    d_state = stacked["alog_T"].shape[1]

    inputs = [x.reshape(bl, dm), pos.reshape(bl, dm),
              stacked["gamma"], stacked["beta"], stacked["in_w"],
              stacked["conv_w"], stacked["conv_b"], stacked["xdt_w"],
              stacked["dt_b"], stacked["alog_T"], stacked["d_skip"],
              stacked["out_w"], final_gamma, final_beta]

    out2d = pl.pallas_call(
        partial(mixer_kernel, bsz=bsz, seq=seq),
        out_shape=jax.ShapeDtypeStruct((bl, dm), jnp.float32),
        in_specs=[pl.BlockSpec(memory_space=pltpu.MemorySpace.VMEM)
                  for _ in inputs],
        out_specs=pl.BlockSpec(memory_space=pltpu.MemorySpace.VMEM),
        scratch_shapes=[
            pltpu.VMEM((seq, d_state, bsz * d_inner), jnp.float32),  # dA
            pltpu.VMEM((seq, d_state, bsz * d_inner), jnp.float32),  # dB*u
        ],
    )(*inputs)
    return out2d.reshape(bsz, seq, dm)


# =============================================================================
# Deterministic synthetic parameters (shapes per Mamba defaults)
# =============================================================================
def init_layer_params(key):
    ks = jax.random.split(key, 6)
    in_w = jax.random.normal(ks[0], (D_MODEL, 2 * D_INNER), jnp.float32) * 0.02
    conv_w = jax.random.normal(ks[1], (D_CONV, D_INNER), jnp.float32) * 0.1
    conv_b = jnp.zeros((1, D_INNER), jnp.float32)
    xproj_w = jax.random.normal(ks[2], (D_INNER, DT_RANK + 2 * D_STATE),
                                jnp.float32) * 0.05
    dt_w = jax.random.normal(ks[3], (DT_RANK, D_INNER), jnp.float32) * (DT_RANK ** -0.5)
    dt = jnp.exp(jax.random.uniform(ks[4], (1, D_INNER), jnp.float32)
                 * (math.log(0.1) - math.log(0.001)) + math.log(0.001))
    dt_b = dt + jnp.log(-jnp.expm1(-dt))          # inverse softplus init
    alog_T = jnp.log(jnp.broadcast_to(
        jnp.arange(1, D_STATE + 1, dtype=jnp.float32)[:, None],
        (D_STATE, D_INNER)))
    d_skip = jnp.ones((1, D_INNER), jnp.float32)
    out_w = jax.random.normal(ks[5], (D_INNER, D_MODEL), jnp.float32) * 0.02
    gamma = jnp.ones((1, D_MODEL), jnp.float32)
    beta = jnp.zeros((1, D_MODEL), jnp.float32)
    return dict(in_w=in_w, conv_w=conv_w, conv_b=conv_b, xproj_w=xproj_w,
                dt_w=dt_w, dt_b=dt_b, alog_T=alog_T, d_skip=d_skip,
                out_w=out_w, gamma=gamma, beta=beta)


# =============================================================================
# Pure-JAX reference (original, unfolded math) for a numerical sanity check
# =============================================================================
def _layernorm_ref(x, g, b):
    mu = x.mean(-1, keepdims=True)
    var = ((x - mu) ** 2).mean(-1, keepdims=True)
    return (x - mu) / jnp.sqrt(var + EPS) * g + b


def _mamba_ref(x, p):
    bsz, seq, _ = x.shape
    xz = x @ p["in_w"]
    xi, z = xz[..., :D_INNER], xz[..., D_INNER:]
    acc = jnp.zeros_like(xi) + p["conv_b"]
    for k in range(D_CONV):
        shift = D_CONV - 1 - k
        xs = xi if shift == 0 else jnp.pad(
            xi, ((0, 0), (shift, 0), (0, 0)))[:, :seq, :]
        acc = acc + xs * p["conv_w"][k]
    xc = jax.nn.silu(acc)
    x_dbl = xc @ p["xproj_w"]
    dtr = x_dbl[..., :DT_RANK]
    Bm = x_dbl[..., DT_RANK:DT_RANK + D_STATE]
    Cm = x_dbl[..., DT_RANK + D_STATE:]
    delta = jax.nn.softplus(dtr @ p["dt_w"] + p["dt_b"])
    A_T = -jnp.exp(p["alog_T"])                                # (D_STATE, D_INNER)
    h = jnp.zeros((bsz, D_STATE, D_INNER), jnp.float32)
    ys = []
    for t in range(seq):
        d_t = delta[:, t, :][:, None, :]
        u_t = xc[:, t, :][:, None, :]
        b_t = Bm[:, t, :][:, :, None]
        c_t = Cm[:, t, :][:, :, None]
        h = jnp.exp(A_T[None] * d_t) * h + b_t * (d_t * u_t)
        ys.append(jnp.sum(h * c_t, axis=1))
    y = jnp.stack(ys, axis=1)
    y = y + xc * p["d_skip"]
    y = y * jax.nn.silu(z)
    return y @ p["out_w"]


def _mixer_model_ref(x, pos, layer_params, gf, bf):
    hidden, residual = x, pos
    for lp in layer_params:
        residual = hidden + residual
        normed = _layernorm_ref(residual, lp["gamma"], lp["beta"])
        hidden = _mamba_ref(normed, lp)
    residual = hidden + residual
    return _layernorm_ref(residual, gf, bf)


# =============================================================================
if __name__ == "__main__":
    key = jax.random.PRNGKey(0)
    kx, kp, kl = jax.random.split(key, 3)
    x = jax.random.normal(kx, (B, L, D_MODEL), jnp.float32)       # input_ids (embedded)
    pos = jax.random.normal(kp, (B, L, D_MODEL), jnp.float32)     # pos embedding

    layer_keys = jax.random.split(kl, N_LAYER)
    layers = [init_layer_params(k) for k in layer_keys]
    final_gamma = jnp.ones((1, D_MODEL), jnp.float32)
    final_beta = jnp.zeros((1, D_MODEL), jnp.float32)

    stacked = prepare_params(layers)   # offline: fold dt_proj, pad, stack layers

    out = mixer_model_forward(x, pos, stacked, final_gamma, final_beta)
    out = jax.block_until_ready(out)

    ref = _mixer_model_ref(x, pos, layers, final_gamma, final_beta)
    assert out.shape == (B, L, D_MODEL), out.shape
    max_err = float(jnp.max(jnp.abs(out - ref)))
    assert max_err < 2e-3, f"pallas vs reference mismatch: {max_err}"

    print("KERNEL_OK")
</pallas_src>

<mosaic_0001>
module attributes {stable_mosaic.version = 11 : i64} {
  func.func @mixer_kernel(%arg0: memref<16x32xf32, #tpu.memory_space<vmem>>, %arg1: memref<16x32xf32, #tpu.memory_space<vmem>>, %arg2: memref<2x1x32xf32, #tpu.memory_space<vmem>>, %arg3: memref<2x1x32xf32, #tpu.memory_space<vmem>>, %arg4: memref<2x32x128xf32, #tpu.memory_space<vmem>>, %arg5: memref<2x4x64xf32, #tpu.memory_space<vmem>>, %arg6: memref<2x1x64xf32, #tpu.memory_space<vmem>>, %arg7: memref<2x64x128xf32, #tpu.memory_space<vmem>>, %arg8: memref<2x1x64xf32, #tpu.memory_space<vmem>>, %arg9: memref<2x16x64xf32, #tpu.memory_space<vmem>>, %arg10: memref<2x1x64xf32, #tpu.memory_space<vmem>>, %arg11: memref<2x64x32xf32, #tpu.memory_space<vmem>>, %arg12: memref<1x32xf32, #tpu.memory_space<vmem>>, %arg13: memref<1x32xf32, #tpu.memory_space<vmem>>, %arg14: memref<16x32xf32, #tpu.memory_space<vmem>>, %arg15: memref<8x16x128xf32, #tpu.memory_space<vmem>>, %arg16: memref<8x16x128xf32, #tpu.memory_space<vmem>>) attributes {dimension_semantics = [], scalar_prefetch = 0 : i64, scratch_operands = 2 : i64, tpu.core_type = #tpu.core_type<tc>} {
    %0 = tpu.iota {dimensions = array<i32: 0>} : vector<16x64xi32>
    %c8_i32 = arith.constant 8 : i32
    %c0_i32 = arith.constant 0 : i32
    %1 = arith.cmpi eq, %c8_i32, %c0_i32 : i32
    %c1_i32 = arith.constant 1 : i32
    %2 = arith.select %1, %c1_i32, %c8_i32 : i32
    %3 = vector.broadcast %2 : i32 to vector<16x64xi32>
    %4 = arith.remsi %0, %3 : vector<16x64xi32>
    %c0_i32_0 = arith.constant 0 : i32
    %5 = vector.broadcast %c0_i32_0 : i32 to vector<16x64xi32>
    %6 = arith.cmpi ne, %4, %5 : vector<16x64xi32>
    %c0_i32_1 = arith.constant 0 : i32
    %7 = vector.broadcast %c0_i32_1 : i32 to vector<16x64xi32>
    %8 = arith.cmpi slt, %4, %7 : vector<16x64xi32>
    %c0_i32_2 = arith.constant 0 : i32
    %9 = arith.cmpi slt, %2, %c0_i32_2 : i32
    %10 = vector.broadcast %9 : i1 to vector<16x64xi1>
    %11 = vector.broadcast %10 : vector<16x64xi1> to vector<16x64xi1>
    %12 = arith.xori %8, %11 : vector<16x64xi1>
    %13 = arith.andi %12, %6 : vector<16x64xi1>
    %14 = vector.broadcast %2 : i32 to vector<16x64xi32>
    %15 = arith.addi %4, %14 : vector<16x64xi32>
    %16 = arith.select %13, %15, %4 : vector<16x64xi1>, vector<16x64xi32>
    %c1_i32_3 = arith.constant 1 : i32
    %17 = vector.broadcast %c1_i32_3 : i32 to vector<16x64xi32>
    %18 = arith.cmpi sge, %16, %17 : vector<16x64xi32>
    %c2_i32 = arith.constant 2 : i32
    %19 = vector.broadcast %c2_i32 : i32 to vector<16x64xi32>
    %20 = arith.cmpi sge, %16, %19 : vector<16x64xi32>
    %c3_i32 = arith.constant 3 : i32
    %21 = vector.broadcast %c3_i32 : i32 to vector<16x64xi32>
    %22 = arith.cmpi sge, %16, %21 : vector<16x64xi32>
    %c0 = arith.constant 0 : index
    %c0_4 = arith.constant 0 : index
    %23 = vector.load %arg0[%c0, %c0_4] : memref<16x32xf32, #tpu.memory_space<vmem>>, vector<16x32xf32>
    %c0_5 = arith.constant 0 : index
    %c0_6 = arith.constant 0 : index
    %24 = vector.load %arg1[%c0_5, %c0_6] : memref<16x32xf32, #tpu.memory_space<vmem>>, vector<16x32xf32>
    %25 = arith.addf %23, %24 : vector<16x32xf32>
    %c0_7 = arith.constant 0 : index
    %c0_8 = arith.constant 0 : index
    %c0_9 = arith.constant 0 : index
    %26 = vector.load %arg2[%c0_7, %c0_8, %c0_9] : memref<2x1x32xf32, #tpu.memory_space<vmem>>, vector<1x1x32xf32>
    %27 = vector.shape_cast %26 : vector<1x1x32xf32> to vector<1x32xf32>
    %c0_10 = arith.constant 0 : index
    %c0_11 = arith.constant 0 : index
    %c0_12 = arith.constant 0 : index
    %28 = vector.load %arg3[%c0_10, %c0_11, %c0_12] : memref<2x1x32xf32, #tpu.memory_space<vmem>>, vector<1x1x32xf32>
    %29 = vector.shape_cast %28 : vector<1x1x32xf32> to vector<1x32xf32>
    %cst = arith.constant dense<0.000000e+00> : vector<16xf32>
    %30 = vector.multi_reduction <add>, %25, %cst [1] : vector<16x32xf32> to vector<16xf32>
    %31 = vector.shape_cast %30 : vector<16xf32> to vector<16x1xf32>
    %cst_13 = arith.constant 3.200000e+01 : f32
    %32 = vector.broadcast %cst_13 : f32 to vector<16x1xf32>
    %33 = arith.divf %31, %32 : vector<16x1xf32>
    %34 = arith.mulf %25, %25 : vector<16x32xf32>
    %cst_14 = arith.constant dense<0.000000e+00> : vector<16xf32>
    %35 = vector.multi_reduction <add>, %34, %cst_14 [1] : vector<16x32xf32> to vector<16xf32>
    %36 = vector.shape_cast %35 : vector<16xf32> to vector<16x1xf32>
    %cst_15 = arith.constant 3.200000e+01 : f32
    %37 = vector.broadcast %cst_15 : f32 to vector<16x1xf32>
    %38 = arith.divf %36, %37 : vector<16x1xf32>
    %39 = vector.broadcast %33 : vector<16x1xf32> to vector<16x32xf32>
    %40 = arith.subf %25, %39 : vector<16x32xf32>
    %41 = arith.mulf %33, %33 : vector<16x1xf32>
    %42 = arith.subf %38, %41 : vector<16x1xf32>
    %cst_16 = arith.constant 9.99999974E-6 : f32
    %43 = vector.broadcast %cst_16 : f32 to vector<16x1xf32>
    %44 = arith.addf %42, %43 : vector<16x1xf32>
    %45 = math.rsqrt %44 : vector<16x1xf32>
    %46 = vector.broadcast %45 : vector<16x1xf32> to vector<16x32xf32>
    %47 = arith.mulf %40, %46 : vector<16x32xf32>
    %48 = vector.broadcast %27 : vector<1x32xf32> to vector<16x32xf32>
    %49 = arith.mulf %47, %48 : vector<16x32xf32>
    %50 = vector.broadcast %29 : vector<1x32xf32> to vector<16x32xf32>
    %51 = arith.addf %49, %50 : vector<16x32xf32>
    %c0_17 = arith.constant 0 : index
    %c0_18 = arith.constant 0 : index
    %c0_19 = arith.constant 0 : index
    %52 = vector.load %arg4[%c0_17, %c0_18, %c0_19] : memref<2x32x128xf32, #tpu.memory_space<vmem>>, vector<1x32x128xf32>
    %53 = vector.shape_cast %52 : vector<1x32x128xf32> to vector<32x128xf32>
    %cst_20 = arith.constant dense<0.000000e+00> : vector<16x128xf32>
    %54 = tpu.matmul %51, %53, %cst_20 {dimension_numbers = #tpu.dot_dimension_numbers<[1], [0], [0], [1], [0, 0, 1, 1], [], []>} : vector<16x32xf32>, vector<32x128xf32>, vector<16x128xf32> -> vector<16x128xf32>
    %55 = vector.extract_strided_slice %54 {offsets = [0, 0], sizes = [16, 64], strides = [1, 1]} : vector<16x128xf32> to vector<16x64xf32>
    %56 = vector.extract_strided_slice %54 {offsets = [0, 64], sizes = [16, 64], strides = [1, 1]} : vector<16x128xf32> to vector<16x64xf32>
    %c0_21 = arith.constant 0 : index
    %c0_22 = arith.constant 0 : index
    %c0_23 = arith.constant 0 : index
    %57 = vector.load %arg5[%c0_21, %c0_22, %c0_23] : memref<2x4x64xf32, #tpu.memory_space<vmem>>, vector<1x4x64xf32>
    %58 = vector.shape_cast %57 : vector<1x4x64xf32> to vector<4x64xf32>
    %59 = vector.extract_strided_slice %58 {offsets = [3, 0], sizes = [1, 64], strides = [1, 1]} : vector<4x64xf32> to vector<1x64xf32>
    %60 = vector.broadcast %59 : vector<1x64xf32> to vector<16x64xf32>
    %61 = arith.mulf %55, %60 : vector<16x64xf32>
    %c0_24 = arith.constant 0 : index
    %c0_25 = arith.constant 0 : index
    %c0_26 = arith.constant 0 : index
    %62 = vector.load %arg6[%c0_24, %c0_25, %c0_26] : memref<2x1x64xf32, #tpu.memory_space<vmem>>, vector<1x1x64xf32>
    %63 = vector.shape_cast %62 : vector<1x1x64xf32> to vector<1x64xf32>
    %64 = vector.broadcast %63 : vector<1x64xf32> to vector<16x64xf32>
    %65 = arith.addf %61, %64 : vector<16x64xf32>
    %c3_i32_27 = arith.constant 3 : i32
    %66 = tpu.dynamic_rotate %55 by %c3_i32_27 dim 0 : vector<16x64xf32>, i32 -> vector<16x64xf32>
    %cst_28 = arith.constant 0.000000e+00 : f32
    %67 = vector.broadcast %cst_28 : f32 to vector<16x64xf32>
    %68 = arith.select %22, %66, %67 : vector<16x64xi1>, vector<16x64xf32>
    %69 = vector.extract_strided_slice %58 {offsets = [0, 0], sizes = [1, 64], strides = [1, 1]} : vector<4x64xf32> to vector<1x64xf32>
    %70 = vector.broadcast %69 : vector<1x64xf32> to vector<16x64xf32>
    %71 = arith.mulf %68, %70 : vector<16x64xf32>
    %72 = arith.addf %65, %71 : vector<16x64xf32>
    %c2_i32_29 = arith.constant 2 : i32
    %73 = tpu.dynamic_rotate %55 by %c2_i32_29 dim 0 : vector<16x64xf32>, i32 -> vector<16x64xf32>
    %cst_30 = arith.constant 0.000000e+00 : f32
    %74 = vector.broadcast %cst_30 : f32 to vector<16x64xf32>
    %75 = arith.select %20, %73, %74 : vector<16x64xi1>, vector<16x64xf32>
    %76 = vector.extract_strided_slice %58 {offsets = [1, 0], sizes = [1, 64], strides = [1, 1]} : vector<4x64xf32> to vector<1x64xf32>
    %77 = vector.broadcast %76 : vector<1x64xf32> to vector<16x64xf32>
    %78 = arith.mulf %75, %77 : vector<16x64xf32>
    %79 = arith.addf %72, %78 : vector<16x64xf32>
    %c1_i32_31 = arith.constant 1 : i32
    %80 = tpu.dynamic_rotate %55 by %c1_i32_31 dim 0 : vector<16x64xf32>, i32 -> vector<16x64xf32>
    %cst_32 = arith.constant 0.000000e+00 : f32
    %81 = vector.broadcast %cst_32 : f32 to vector<16x64xf32>
    %82 = arith.select %18, %80, %81 : vector<16x64xi1>, vector<16x64xf32>
    %83 = vector.extract_strided_slice %58 {offsets = [2, 0], sizes = [1, 64], strides = [1, 1]} : vector<4x64xf32> to vector<1x64xf32>
    %84 = vector.broadcast %83 : vector<1x64xf32> to vector<16x64xf32>
    %85 = arith.mulf %82, %84 : vector<16x64xf32>
    %86 = arith.addf %79, %85 : vector<16x64xf32>
    %87 = arith.negf %86 : vector<16x64xf32>
    %88 = math.exp %87 : vector<16x64xf32>
    %cst_33 = arith.constant 1.000000e+00 : f32
    %89 = vector.broadcast %cst_33 : f32 to vector<16x64xf32>
    %90 = arith.addf %89, %88 : vector<16x64xf32>
    %91 = arith.divf %89, %90 : vector<16x64xf32>
    %92 = arith.mulf %86, %91 : vector<16x64xf32>
    %c0_34 = arith.constant 0 : index
    %c0_35 = arith.constant 0 : index
    %c0_36 = arith.constant 0 : index
    %93 = vector.load %arg7[%c0_34, %c0_35, %c0_36] : memref<2x64x128xf32, #tpu.memory_space<vmem>>, vector<1x64x128xf32>
    %94 = vector.shape_cast %93 : vector<1x64x128xf32> to vector<64x128xf32>
    %cst_37 = arith.constant dense<0.000000e+00> : vector<16x128xf32>
    %95 = tpu.matmul %92, %94, %cst_37 {dimension_numbers = #tpu.dot_dimension_numbers<[1], [0], [0], [1], [0, 0, 1, 1], [], []>} : vector<16x64xf32>, vector<64x128xf32>, vector<16x128xf32> -> vector<16x128xf32>
    %96 = vector.extract_strided_slice %95 {offsets = [0, 0], sizes = [16, 64], strides = [1, 1]} : vector<16x128xf32> to vector<16x64xf32>
    %c0_38 = arith.constant 0 : index
    %c0_39 = arith.constant 0 : index
    %c0_40 = arith.constant 0 : index
    %97 = vector.load %arg8[%c0_38, %c0_39, %c0_40] : memref<2x1x64xf32, #tpu.memory_space<vmem>>, vector<1x1x64xf32>
    %98 = vector.shape_cast %97 : vector<1x1x64xf32> to vector<1x64xf32>
    %99 = vector.broadcast %98 : vector<1x64xf32> to vector<16x64xf32>
    %100 = arith.addf %96, %99 : vector<16x64xf32>
    %cst_41 = arith.constant 0.000000e+00 : f32
    %101 = vector.broadcast %cst_41 : f32 to vector<16x64xf32>
    %102 = arith.maximumf %100, %101 : vector<16x64xf32>
    %103 = vector.broadcast %cst_41 : f32 to vector<16x64xf32>
    %104 = arith.subf %100, %103 : vector<16x64xf32>
    %105 = arith.cmpf one, %104, %104 : vector<16x64xf32>
    %106 = vector.broadcast %cst_41 : f32 to vector<16x64xf32>
    %107 = arith.addf %100, %106 : vector<16x64xf32>
    %108 = math.absf %104 : vector<16x64xf32>
    %cst_42 = arith.constant 0.000000e+00 : f32
    %109 = vector.broadcast %cst_42 : f32 to vector<16x64xf32>
    %110 = arith.subf %109, %108 : vector<16x64xf32>
    %111 = math.exp %110 : vector<16x64xf32>
    %112 = math.log1p %111 : vector<16x64xf32>
    %113 = arith.addf %102, %112 : vector<16x64xf32>
    %114 = arith.select %105, %107, %113 : vector<16x64xi1>, vector<16x64xf32>
    %115 = vector.extract_strided_slice %95 {offsets = [0, 64], sizes = [16, 16], strides = [1, 1]} : vector<16x128xf32> to vector<16x16xf32>
    %116 = vector.extract_strided_slice %95 {offsets = [0, 80], sizes = [16, 16], strides = [1, 1]} : vector<16x128xf32> to vector<16x16xf32>
    %117 = vector.extract_strided_slice %114 {offsets = [0, 0], sizes = [8, 64], strides = [1, 1]} : vector<16x64xf32> to vector<8x64xf32>
    %118 = vector.extract_strided_slice %114 {offsets = [8, 0], sizes = [8, 64], strides = [1, 1]} : vector<16x64xf32> to vector<8x64xf32>
    %119 = tpu.concatenate %117, %118 in 1 : vector<8x64xf32>, vector<8x64xf32> -> vector<8x128xf32>
    %120 = vector.extract_strided_slice %92 {offsets = [0, 0], sizes = [8, 64], strides = [1, 1]} : vector<16x64xf32> to vector<8x64xf32>
    %121 = vector.extract_strided_slice %92 {offsets = [8, 0], sizes = [8, 64], strides = [1, 1]} : vector<16x64xf32> to vector<8x64xf32>
    %122 = tpu.concatenate %120, %121 in 1 : vector<8x64xf32>, vector<8x64xf32> -> vector<8x128xf32>
    %c0_43 = arith.constant 0 : index
    %c0_44 = arith.constant 0 : index
    %c0_45 = arith.constant 0 : index
    %123 = vector.load %arg9[%c0_43, %c0_44, %c0_45] : memref<2x16x64xf32, #tpu.memory_space<vmem>>, vector<1x16x64xf32>
    %124 = vector.shape_cast %123 : vector<1x16x64xf32> to vector<16x64xf32>
    %125 = math.exp %124 : vector<16x64xf32>
    %cst_46 = arith.constant 0.000000e+00 : f32
    %126 = vector.broadcast %cst_46 : f32 to vector<16x64xf32>
    %127 = arith.subf %126, %125 : vector<16x64xf32>
    %128 = tpu.concatenate %127, %127 in 1 : vector<16x64xf32>, vector<16x64xf32> -> vector<16x128xf32>
    %129 = vector.extract_strided_slice %115 {offsets = [0, 0], sizes = [8, 16], strides = [1, 1]} : vector<16x16xf32> to vector<8x16xf32>
    %130 = vector.shape_cast %129 : vector<8x16xf32> to vector<8x16x1xf32>
    %131 = vector.shape_cast %130 : vector<8x16x1xf32> to vector<8x16x1xf32>
    %132 = vector.broadcast %131 : vector<8x16x1xf32> to vector<8x16x64xf32>
    %133 = vector.extract_strided_slice %115 {offsets = [8, 0], sizes = [8, 16], strides = [1, 1]} : vector<16x16xf32> to vector<8x16xf32>
    %134 = vector.shape_cast %133 : vector<8x16xf32> to vector<8x16x1xf32>
    %135 = vector.shape_cast %134 : vector<8x16x1xf32> to vector<8x16x1xf32>
    %136 = vector.broadcast %135 : vector<8x16x1xf32> to vector<8x16x64xf32>
    %137 = tpu.concatenate %132, %136 in 2 : vector<8x16x64xf32>, vector<8x16x64xf32> -> vector<8x16x128xf32>
    %138 = vector.extract_strided_slice %116 {offsets = [0, 0], sizes = [8, 16], strides = [1, 1]} : vector<16x16xf32> to vector<8x16xf32>
    %139 = vector.shape_cast %138 : vector<8x16xf32> to vector<8x16x1xf32>
    %140 = vector.shape_cast %139 : vector<8x16x1xf32> to vector<8x16x1xf32>
    %141 = vector.broadcast %140 : vector<8x16x1xf32> to vector<8x16x64xf32>
    %142 = vector.extract_strided_slice %116 {offsets = [8, 0], sizes = [8, 16], strides = [1, 1]} : vector<16x16xf32> to vector<8x16xf32>
    %143 = vector.shape_cast %142 : vector<8x16xf32> to vector<8x16x1xf32>
    %144 = vector.shape_cast %143 : vector<8x16x1xf32> to vector<8x16x1xf32>
    %145 = vector.broadcast %144 : vector<8x16x1xf32> to vector<8x16x64xf32>
    %146 = tpu.concatenate %141, %145 in 2 : vector<8x16x64xf32>, vector<8x16x64xf32> -> vector<8x16x128xf32>
    %147 = vector.shape_cast %119 : vector<8x128xf32> to vector<8x1x128xf32>
    %148 = vector.shape_cast %128 : vector<16x128xf32> to vector<1x16x128xf32>
    %149 = vector.broadcast %147 : vector<8x1x128xf32> to vector<8x16x128xf32>
    %150 = vector.broadcast %148 : vector<1x16x128xf32> to vector<8x16x128xf32>
    %151 = arith.mulf %149, %150 : vector<8x16x128xf32>
    %152 = math.exp %151 : vector<8x16x128xf32>
    %c0_47 = arith.constant 0 : index
    %c0_48 = arith.constant 0 : index
    %c0_49 = arith.constant 0 : index
    %153 = vector.load %arg15[%c0_47, %c0_48, %c0_49] : memref<8x16x128xf32, #tpu.memory_space<vmem>>, vector<8x16x128xf32>
    tpu.vector_store %arg15[%c0_47, %c0_48, %c0_49], %152 {strides = array<i32>} : memref<8x16x128xf32, #tpu.memory_space<vmem>>, vector<8x16x128xf32>,
    %154 = arith.mulf %119, %122 : vector<8x128xf32>
    %155 = vector.shape_cast %154 : vector<8x128xf32> to vector<8x1x128xf32>
    %156 = vector.broadcast %155 : vector<8x1x128xf32> to vector<8x16x128xf32>
    %157 = arith.mulf %137, %156 : vector<8x16x128xf32>
    %c0_50 = arith.constant 0 : index
    %c0_51 = arith.constant 0 : index
    %c0_52 = arith.constant 0 : index
    %158 = vector.load %arg16[%c0_50, %c0_51, %c0_52] : memref<8x16x128xf32, #tpu.memory_space<vmem>>, vector<8x16x128xf32>
    tpu.vector_store %arg16[%c0_50, %c0_51, %c0_52], %157 {strides = array<i32>} : memref<8x16x128xf32, #tpu.memory_space<vmem>>, vector<8x16x128xf32>,
    %cst_53 = arith.constant 0.000000e+00 : f32
    %159 = vector.broadcast %cst_53 : f32 to vector<16x128xf32>
    %c0_54 = arith.constant 0 : index
    %c0_55 = arith.constant 0 : index
    %c0_56 = arith.constant 0 : index
    %160 = vector.load %arg15[%c0_54, %c0_55, %c0_56] : memref<8x16x128xf32, #tpu.memory_space<vmem>>, vector<1x16x128xf32>
    %161 = vector.shape_cast %160 : vector<1x16x128xf32> to vector<16x128xf32>
    %162 = arith.mulf %161, %159 : vector<16x128xf32>
    %c0_57 = arith.constant 0 : index
    %c0_58 = arith.constant 0 : index
    %c0_59 = arith.constant 0 : index
    %163 = vector.load %arg16[%c0_57, %c0_58, %c0_59] : memref<8x16x128xf32, #tpu.memory_space<vmem>>, vector<1x16x128xf32>
    %164 = vector.shape_cast %163 : vector<1x16x128xf32> to vector<16x128xf32>
    %165 = arith.addf %162, %164 : vector<16x128xf32>
    %166 = vector.extract_strided_slice %146 {offsets = [0, 0, 0], sizes = [1, 16, 128], strides = [1, 1, 1]} : vector<8x16x128xf32> to vector<1x16x128xf32>
    %167 = vector.shape_cast %166 : vector<1x16x128xf32> to vector<16x128xf32>
    %168 = arith.mulf %167, %165 : vector<16x128xf32>
    %cst_60 = arith.constant dense<0.000000e+00> : vector<128xf32>
    %169 = vector.multi_reduction <add>, %168, %cst_60 [0] : vector<16x128xf32> to vector<128xf32>
    %170 = vector.shape_cast %169 : vector<128xf32> to vector<1x128xf32>
    %c1 = arith.constant 1 : index
    %c0_61 = arith.constant 0 : index
    %c0_62 = arith.constant 0 : index
    %171 = vector.load %arg15[%c1, %c0_61, %c0_62] : memref<8x16x128xf32, #tpu.memory_space<vmem>>, vector<1x16x128xf32>
    %172 = vector.shape_cast %171 : vector<1x16x128xf32> to vector<16x128xf32>
    %173 = arith.mulf %172, %165 : vector<16x128xf32>
    %c1_63 = arith.constant 1 : index
    %c0_64 = arith.constant 0 : index
    %c0_65 = arith.constant 0 : index
    %174 = vector.load %arg16[%c1_63, %c0_64, %c0_65] : memref<8x16x128xf32, #tpu.memory_space<vmem>>, vector<1x16x128xf32>
    %175 = vector.shape_cast %174 : vector<1x16x128xf32> to vector<16x128xf32>
    %176 = arith.addf %173, %175 : vector<16x128xf32>
    %177 = vector.extract_strided_slice %146 {offsets = [1, 0, 0], sizes = [1, 16, 128], strides = [1, 1, 1]} : vector<8x16x128xf32> to vector<1x16x128xf32>
    %178 = vector.shape_cast %177 : vector<1x16x128xf32> to vector<16x128xf32>
    %179 = arith.mulf %178, %176 : vector<16x128xf32>
    %cst_66 = arith.constant dense<0.000000e+00> : vector<128xf32>
    %180 = vector.multi_reduction <add>, %179, %cst_66 [0] : vector<16x128xf32> to vector<128xf32>
    %181 = vector.shape_cast %180 : vector<128xf32> to vector<1x128xf32>
    %c2 = arith.constant 2 : index
    %c0_67 = arith.constant 0 : index
    %c0_68 = arith.constant 0 : index
    %182 = vector.load %arg15[%c2, %c0_67, %c0_68] : memref<8x16x128xf32, #tpu.memory_space<vmem>>, vector<1x16x128xf32>
    %183 = vector.shape_cast %182 : vector<1x16x128xf32> to vector<16x128xf32>
    %184 = arith.mulf %183, %176 : vector<16x128xf32>
    %c2_69 = arith.constant 2 : index
    %c0_70 = arith.constant 0 : index
    %c0_71 = arith.constant 0 : index
    %185 = vector.load %arg16[%c2_69, %c0_70, %c0_71] : memref<8x16x128xf32, #tpu.memory_space<vmem>>, vector<1x16x128xf32>
    %186 = vector.shape_cast %185 : vector<1x16x128xf32> to vector<16x128xf32>
    %187 = arith.addf %184, %186 : vector<16x128xf32>
    %188 = vector.extract_strided_slice %146 {offsets = [2, 0, 0], sizes = [1, 16, 128], strides = [1, 1, 1]} : vector<8x16x128xf32> to vector<1x16x128xf32>
    %189 = vector.shape_cast %188 : vector<1x16x128xf32> to vector<16x128xf32>
    %190 = arith.mulf %189, %187 : vector<16x128xf32>
    %cst_72 = arith.constant dense<0.000000e+00> : vector<128xf32>
    %191 = vector.multi_reduction <add>, %190, %cst_72 [0] : vector<16x128xf32> to vector<128xf32>
    %192 = vector.shape_cast %191 : vector<128xf32> to vector<1x128xf32>
    %c3 = arith.constant 3 : index
    %c0_73 = arith.constant 0 : index
    %c0_74 = arith.constant 0 : index
    %193 = vector.load %arg15[%c3, %c0_73, %c0_74] : memref<8x16x128xf32, #tpu.memory_space<vmem>>, vector<1x16x128xf32>
    %194 = vector.shape_cast %193 : vector<1x16x128xf32> to vector<16x128xf32>
    %195 = arith.mulf %194, %187 : vector<16x128xf32>
    %c3_75 = arith.constant 3 : index
    %c0_76 = arith.constant 0 : index
    %c0_77 = arith.constant 0 : index
    %196 = vector.load %arg16[%c3_75, %c0_76, %c0_77] : memref<8x16x128xf32, #tpu.memory_space<vmem>>, vector<1x16x128xf32>
    %197 = vector.shape_cast %196 : vector<1x16x128xf32> to vector<16x128xf32>
    %198 = arith.addf %195, %197 : vector<16x128xf32>
    %199 = vector.extract_strided_slice %146 {offsets = [3, 0, 0], sizes = [1, 16, 128], strides = [1, 1, 1]} : vector<8x16x128xf32> to vector<1x16x128xf32>
    %200 = vector.shape_cast %199 : vector<1x16x128xf32> to vector<16x128xf32>
    %201 = arith.mulf %200, %198 : vector<16x128xf32>
    %cst_78 = arith.constant dense<0.000000e+00> : vector<128xf32>
    %202 = vector.multi_reduction <add>, %201, %cst_78 [0] : vector<16x128xf32> to vector<128xf32>
    %203 = vector.shape_cast %202 : vector<128xf32> to vector<1x128xf32>
    %c4 = arith.constant 4 : index
    %c0_79 = arith.constant 0 : index
    %c0_80 = arith.constant 0 : index
    %204 = vector.load %arg15[%c4, %c0_79, %c0_80] : memref<8x16x128xf32, #tpu.memory_space<vmem>>, vector<1x16x128xf32>
    %205 = vector.shape_cast %204 : vector<1x16x128xf32> to vector<16x128xf32>
    %206 = arith.mulf %205, %198 : vector<16x128xf32>
    %c4_81 = arith.constant 4 : index
    %c0_82 = arith.constant 0 : index
    %c0_83 = arith.constant 0 : index
    %207 = vector.load %arg16[%c4_81, %c0_82, %c0_83] : memref<8x16x128xf32, #tpu.memory_space<vmem>>, vector<1x16x128xf32>
    %208 = vector.shape_cast %207 : vector<1x16x128xf32> to vector<16x128xf32>
    %209 = arith.addf %206, %208 : vector<16x128xf32>
    %210 = vector.extract_strided_slice %146 {offsets = [4, 0, 0], sizes = [1, 16, 128], strides = [1, 1, 1]} : vector<8x16x128xf32> to vector<1x16x128xf32>
    %211 = vector.shape_cast %210 : vector<1x16x128xf32> to vector<16x128xf32>
    %212 = arith.mulf %211, %209 : vector<16x128xf32>
    %cst_84 = arith.constant dense<0.000000e+00> : vector<128xf32>
    %213 = vector.multi_reduction <add>, %212, %cst_84 [0] : vector<16x128xf32> to vector<128xf32>
    %214 = vector.shape_cast %213 : vector<128xf32> to vector<1x128xf32>
    %c5 = arith.constant 5 : index
    %c0_85 = arith.constant 0 : index
    %c0_86 = arith.constant 0 : index
    %215 = vector.load %arg15[%c5, %c0_85, %c0_86] : memref<8x16x128xf32, #tpu.memory_space<vmem>>, vector<1x16x128xf32>
    %216 = vector.shape_cast %215 : vector<1x16x128xf32> to vector<16x128xf32>
    %217 = arith.mulf %216, %209 : vector<16x128xf32>
    %c5_87 = arith.constant 5 : index
    %c0_88 = arith.constant 0 : index
    %c0_89 = arith.constant 0 : index
    %218 = vector.load %arg16[%c5_87, %c0_88, %c0_89] : memref<8x16x128xf32, #tpu.memory_space<vmem>>, vector<1x16x128xf32>
    %219 = vector.shape_cast %218 : vector<1x16x128xf32> to vector<16x128xf32>
    %220 = arith.addf %217, %219 : vector<16x128xf32>
    %221 = vector.extract_strided_slice %146 {offsets = [5, 0, 0], sizes = [1, 16, 128], strides = [1, 1, 1]} : vector<8x16x128xf32> to vector<1x16x128xf32>
    %222 = vector.shape_cast %221 : vector<1x16x128xf32> to vector<16x128xf32>
    %223 = arith.mulf %222, %220 : vector<16x128xf32>
    %cst_90 = arith.constant dense<0.000000e+00> : vector<128xf32>
    %224 = vector.multi_reduction <add>, %223, %cst_90 [0] : vector<16x128xf32> to vector<128xf32>
    %225 = vector.shape_cast %224 : vector<128xf32> to vector<1x128xf32>
    %c6 = arith.constant 6 : index
    %c0_91 = arith.constant 0 : index
    %c0_92 = arith.constant 0 : index
    %226 = vector.load %arg15[%c6, %c0_91, %c0_92] : memref<8x16x128xf32, #tpu.memory_space<vmem>>, vector<1x16x128xf32>
    %227 = vector.shape_cast %226 : vector<1x16x128xf32> to vector<16x128xf32>
    %228 = arith.mulf %227, %220 : vector<16x128xf32>
    %c6_93 = arith.constant 6 : index
    %c0_94 = arith.constant 0 : index
    %c0_95 = arith.constant 0 : index
    %229 = vector.load %arg16[%c6_93, %c0_94, %c0_95] : memref<8x16x128xf32, #tpu.memory_space<vmem>>, vector<1x16x128xf32>
    %230 = vector.shape_cast %229 : vector<1x16x128xf32> to vector<16x128xf32>
    %231 = arith.addf %228, %230 : vector<16x128xf32>
    %232 = vector.extract_strided_slice %146 {offsets = [6, 0, 0], sizes = [1, 16, 128], strides = [1, 1, 1]} : vector<8x16x128xf32> to vector<1x16x128xf32>
    %233 = vector.shape_cast %232 : vector<1x16x128xf32> to vector<16x128xf32>
    %234 = arith.mulf %233, %231 : vector<16x128xf32>
    %cst_96 = arith.constant dense<0.000000e+00> : vector<128xf32>
    %235 = vector.multi_reduction <add>, %234, %cst_96 [0] : vector<16x128xf32> to vector<128xf32>
    %236 = vector.shape_cast %235 : vector<128xf32> to vector<1x128xf32>
    %c7 = arith.constant 7 : index
    %c0_97 = arith.constant 0 : index
    %c0_98 = arith.constant 0 : index
    %237 = vector.load %arg15[%c7, %c0_97, %c0_98] : memref<8x16x128xf32, #tpu.memory_space<vmem>>, vector<1x16x128xf32>
    %238 = vector.shape_cast %237 : vector<1x16x128xf32> to vector<16x128xf32>
    %239 = arith.mulf %238, %231 : vector<16x128xf32>
    %c7_99 = arith.constant 7 : index
    %c0_100 = arith.constant 0 : index
    %c0_101 = arith.constant 0 : index
    %240 = vector.load %arg16[%c7_99, %c0_100, %c0_101] : memref<8x16x128xf32, #tpu.memory_space<vmem>>, vector<1x16x128xf32>
    %241 = vector.shape_cast %240 : vector<1x16x128xf32> to vector<16x128xf32>
    %242 = arith.addf %239, %241 : vector<16x128xf32>
    %243 = vector.extract_strided_slice %146 {offsets = [7, 0, 0], sizes = [1, 16, 128], strides = [1, 1, 1]} : vector<8x16x128xf32> to vector<1x16x128xf32>
    %244 = vector.shape_cast %243 : vector<1x16x128xf32> to vector<16x128xf32>
    %245 = arith.mulf %244, %242 : vector<16x128xf32>
    %cst_102 = arith.constant dense<0.000000e+00> : vector<128xf32>
    %246 = vector.multi_reduction <add>, %245, %cst_102 [0] : vector<16x128xf32> to vector<128xf32>
    %247 = vector.shape_cast %246 : vector<128xf32> to vector<1x128xf32>
    %248 = tpu.concatenate %170, %181, %192, %203, %214, %225, %236, %247 in 0 : vector<1x128xf32>, vector<1x128xf32>, vector<1x128xf32>, vector<1x128xf32>, vector<1x128xf32>, vector<1x128xf32>, vector<1x128xf32>, vector<1x128xf32> -> vector<8x128xf32>
    %249 = vector.extract_strided_slice %248 {offsets = [0, 0], sizes = [8, 64], strides = [1, 1]} : vector<8x128xf32> to vector<8x64xf32>
    %250 = vector.extract_strided_slice %248 {offsets = [0, 64], sizes = [8, 64], strides = [1, 1]} : vector<8x128xf32> to vector<8x64xf32>
    %251 = tpu.concatenate %249, %250 in 0 : vector<8x64xf32>, vector<8x64xf32> -> vector<16x64xf32>
    %c0_103 = arith.constant 0 : index
    %c0_104 = arith.constant 0 : index
    %c0_105 = arith.constant 0 : index
    %252 = vector.load %arg10[%c0_103, %c0_104, %c0_105] : memref<2x1x64xf32, #tpu.memory_space<vmem>>, vector<1x1x64xf32>
    %253 = vector.shape_cast %252 : vector<1x1x64xf32> to vector<1x64xf32>
    %254 = vector.broadcast %253 : vector<1x64xf32> to vector<16x64xf32>
    %255 = arith.mulf %92, %254 : vector<16x64xf32>
    %256 = arith.addf %251, %255 : vector<16x64xf32>
    %257 = arith.negf %56 : vector<16x64xf32>
    %258 = math.exp %257 : vector<16x64xf32>
    %cst_106 = arith.constant 1.000000e+00 : f32
    %259 = vector.broadcast %cst_106 : f32 to vector<16x64xf32>
    %260 = arith.addf %259, %258 : vector<16x64xf32>
    %261 = arith.divf %259, %260 : vector<16x64xf32>
    %262 = arith.mulf %56, %261 : vector<16x64xf32>
    %263 = arith.mulf %256, %262 : vector<16x64xf32>
    %c0_107 = arith.constant 0 : index
    %c0_108 = arith.constant 0 : index
    %c0_109 = arith.constant 0 : index
    %264 = vector.load %arg11[%c0_107, %c0_108, %c0_109] : memref<2x64x32xf32, #tpu.memory_space<vmem>>, vector<1x64x32xf32>
    %265 = vector.shape_cast %264 : vector<1x64x32xf32> to vector<64x32xf32>
    %cst_110 = arith.constant dense<0.000000e+00> : vector<16x32xf32>
    %266 = tpu.matmul %263, %265, %cst_110 {dimension_numbers = #tpu.dot_dimension_numbers<[1], [0], [0], [1], [0, 0, 1, 1], [], []>} : vector<16x64xf32>, vector<64x32xf32>, vector<16x32xf32> -> vector<16x32xf32>
    %267 = arith.addf %266, %25 : vector<16x32xf32>
    %c1_111 = arith.constant 1 : index
    %c0_112 = arith.constant 0 : index
    %c0_113 = arith.constant 0 : index
    %268 = vector.load %arg2[%c1_111, %c0_112, %c0_113] : memref<2x1x32xf32, #tpu.memory_space<vmem>>, vector<1x1x32xf32>
    %269 = vector.shape_cast %268 : vector<1x1x32xf32> to vector<1x32xf32>
    %c1_114 = arith.constant 1 : index
    %c0_115 = arith.constant 0 : index
    %c0_116 = arith.constant 0 : index
    %270 = vector.load %arg3[%c1_114, %c0_115, %c0_116] : memref<2x1x32xf32, #tpu.memory_space<vmem>>, vector<1x1x32xf32>
    %271 = vector.shape_cast %270 : vector<1x1x32xf32> to vector<1x32xf32>
    %cst_117 = arith.constant dense<0.000000e+00> : vector<16xf32>
    %272 = vector.multi_reduction <add>, %267, %cst_117 [1] : vector<16x32xf32> to vector<16xf32>
    %273 = vector.shape_cast %272 : vector<16xf32> to vector<16x1xf32>
    %cst_118 = arith.constant 3.200000e+01 : f32
    %274 = vector.broadcast %cst_118 : f32 to vector<16x1xf32>
    %275 = arith.divf %273, %274 : vector<16x1xf32>
    %276 = arith.mulf %267, %267 : vector<16x32xf32>
    %cst_119 = arith.constant dense<0.000000e+00> : vector<16xf32>
    %277 = vector.multi_reduction <add>, %276, %cst_119 [1] : vector<16x32xf32> to vector<16xf32>
    %278 = vector.shape_cast %277 : vector<16xf32> to vector<16x1xf32>
    %cst_120 = arith.constant 3.200000e+01 : f32
    %279 = vector.broadcast %cst_120 : f32 to vector<16x1xf32>
    %280 = arith.divf %278, %279 : vector<16x1xf32>
    %281 = vector.broadcast %275 : vector<16x1xf32> to vector<16x32xf32>
    %282 = arith.subf %267, %281 : vector<16x32xf32>
    %283 = arith.mulf %275, %275 : vector<16x1xf32>
    %284 = arith.subf %280, %283 : vector<16x1xf32>
    %cst_121 = arith.constant 9.99999974E-6 : f32
    %285 = vector.broadcast %cst_121 : f32 to vector<16x1xf32>
    %286 = arith.addf %284, %285 : vector<16x1xf32>
    %287 = math.rsqrt %286 : vector<16x1xf32>
    %288 = vector.broadcast %287 : vector<16x1xf32> to vector<16x32xf32>
    %289 = arith.mulf %282, %288 : vector<16x32xf32>
    %290 = vector.broadcast %269 : vector<1x32xf32> to vector<16x32xf32>
    %291 = arith.mulf %289, %290 : vector<16x32xf32>
    %292 = vector.broadcast %271 : vector<1x32xf32> to vector<16x32xf32>
    %293 = arith.addf %291, %292 : vector<16x32xf32>
    %c1_122 = arith.constant 1 : index
    %c0_123 = arith.constant 0 : index
    %c0_124 = arith.constant 0 : index
    %294 = vector.load %arg4[%c1_122, %c0_123, %c0_124] : memref<2x32x128xf32, #tpu.memory_space<vmem>>, vector<1x32x128xf32>
    %295 = vector.shape_cast %294 : vector<1x32x128xf32> to vector<32x128xf32>
    %cst_125 = arith.constant dense<0.000000e+00> : vector<16x128xf32>
    %296 = tpu.matmul %293, %295, %cst_125 {dimension_numbers = #tpu.dot_dimension_numbers<[1], [0], [0], [1], [0, 0, 1, 1], [], []>} : vector<16x32xf32>, vector<32x128xf32>, vector<16x128xf32> -> vector<16x128xf32>
    %297 = vector.extract_strided_slice %296 {offsets = [0, 0], sizes = [16, 64], strides = [1, 1]} : vector<16x128xf32> to vector<16x64xf32>
    %298 = vector.extract_strided_slice %296 {offsets = [0, 64], sizes = [16, 64], strides = [1, 1]} : vector<16x128xf32> to vector<16x64xf32>
    %c1_126 = arith.constant 1 : index
    %c0_127 = arith.constant 0 : index
    %c0_128 = arith.constant 0 : index
    %299 = vector.load %arg5[%c1_126, %c0_127, %c0_128] : memref<2x4x64xf32, #tpu.memory_space<vmem>>, vector<1x4x64xf32>
    %300 = vector.shape_cast %299 : vector<1x4x64xf32> to vector<4x64xf32>
    %301 = vector.extract_strided_slice %300 {offsets = [3, 0], sizes = [1, 64], strides = [1, 1]} : vector<4x64xf32> to vector<1x64xf32>
    %302 = vector.broadcast %301 : vector<1x64xf32> to vector<16x64xf32>
    %303 = arith.mulf %297, %302 : vector<16x64xf32>
    %c1_129 = arith.constant 1 : index
    %c0_130 = arith.constant 0 : index
    %c0_131 = arith.constant 0 : index
    %304 = vector.load %arg6[%c1_129, %c0_130, %c0_131] : memref<2x1x64xf32, #tpu.memory_space<vmem>>, vector<1x1x64xf32>
    %305 = vector.shape_cast %304 : vector<1x1x64xf32> to vector<1x64xf32>
    %306 = vector.broadcast %305 : vector<1x64xf32> to vector<16x64xf32>
    %307 = arith.addf %303, %306 : vector<16x64xf32>
    %c3_i32_132 = arith.constant 3 : i32
    %308 = tpu.dynamic_rotate %297 by %c3_i32_132 dim 0 : vector<16x64xf32>, i32 -> vector<16x64xf32>
    %cst_133 = arith.constant 0.000000e+00 : f32
    %309 = vector.broadcast %cst_133 : f32 to vector<16x64xf32>
    %310 = arith.select %22, %308, %309 : vector<16x64xi1>, vector<16x64xf32>
    %311 = vector.extract_strided_slice %300 {offsets = [0, 0], sizes = [1, 64], strides = [1, 1]} : vector<4x64xf32> to vector<1x64xf32>
    %312 = vector.broadcast %311 : vector<1x64xf32> to vector<16x64xf32>
    %313 = arith.mulf %310, %312 : vector<16x64xf32>
    %314 = arith.addf %307, %313 : vector<16x64xf32>
    %c2_i32_134 = arith.constant 2 : i32
    %315 = tpu.dynamic_rotate %297 by %c2_i32_134 dim 0 : vector<16x64xf32>, i32 -> vector<16x64xf32>
    %cst_135 = arith.constant 0.000000e+00 : f32
    %316 = vector.broadcast %cst_135 : f32 to vector<16x64xf32>
    %317 = arith.select %20, %315, %316 : vector<16x64xi1>, vector<16x64xf32>
    %318 = vector.extract_strided_slice %300 {offsets = [1, 0], sizes = [1, 64], strides = [1, 1]} : vector<4x64xf32> to vector<1x64xf32>
    %319 = vector.broadcast %318 : vector<1x64xf32> to vector<16x64xf32>
    %320 = arith.mulf %317, %319 : vector<16x64xf32>
    %321 = arith.addf %314, %320 : vector<16x64xf32>
    %c1_i32_136 = arith.constant 1 : i32
    %322 = tpu.dynamic_rotate %297 by %c1_i32_136 dim 0 : vector<16x64xf32>, i32 -> vector<16x64xf32>
    %cst_137 = arith.constant 0.000000e+00 : f32
    %323 = vector.broadcast %cst_137 : f32 to vector<16x64xf32>
    %324 = arith.select %18, %322, %323 : vector<16x64xi1>, vector<16x64xf32>
    %325 = vector.extract_strided_slice %300 {offsets = [2, 0], sizes = [1, 64], strides = [1, 1]} : vector<4x64xf32> to vector<1x64xf32>
    %326 = vector.broadcast %325 : vector<1x64xf32> to vector<16x64xf32>
    %327 = arith.mulf %324, %326 : vector<16x64xf32>
    %328 = arith.addf %321, %327 : vector<16x64xf32>
    %329 = arith.negf %328 : vector<16x64xf32>
    %330 = math.exp %329 : vector<16x64xf32>
    %cst_138 = arith.constant 1.000000e+00 : f32
    %331 = vector.broadcast %cst_138 : f32 to vector<16x64xf32>
    %332 = arith.addf %331, %330 : vector<16x64xf32>
    %333 = arith.divf %331, %332 : vector<16x64xf32>
    %334 = arith.mulf %328, %333 : vector<16x64xf32>
    %c1_139 = arith.constant 1 : index
    %c0_140 = arith.constant 0 : index
    %c0_141 = arith.constant 0 : index
    %335 = vector.load %arg7[%c1_139, %c0_140, %c0_141] : memref<2x64x128xf32, #tpu.memory_space<vmem>>, vector<1x64x128xf32>
    %336 = vector.shape_cast %335 : vector<1x64x128xf32> to vector<64x128xf32>
    %cst_142 = arith.constant dense<0.000000e+00> : vector<16x128xf32>
    %337 = tpu.matmul %334, %336, %cst_142 {dimension_numbers = #tpu.dot_dimension_numbers<[1], [0], [0], [1], [0, 0, 1, 1], [], []>} : vector<16x64xf32>, vector<64x128xf32>, vector<16x128xf32> -> vector<16x128xf32>
    %338 = vector.extract_strided_slice %337 {offsets = [0, 0], sizes = [16, 64], strides = [1, 1]} : vector<16x128xf32> to vector<16x64xf32>
    %c1_143 = arith.constant 1 : index
    %c0_144 = arith.constant 0 : index
    %c0_145 = arith.constant 0 : index
    %339 = vector.load %arg8[%c1_143, %c0_144, %c0_145] : memref<2x1x64xf32, #tpu.memory_space<vmem>>, vector<1x1x64xf32>
    %340 = vector.shape_cast %339 : vector<1x1x64xf32> to vector<1x64xf32>
    %341 = vector.broadcast %340 : vector<1x64xf32> to vector<16x64xf32>
    %342 = arith.addf %338, %341 : vector<16x64xf32>
    %cst_146 = arith.constant 0.000000e+00 : f32
    %343 = vector.broadcast %cst_146 : f32 to vector<16x64xf32>
    %344 = arith.maximumf %342, %343 : vector<16x64xf32>
    %345 = vector.broadcast %cst_146 : f32 to vector<16x64xf32>
    %346 = arith.subf %342, %345 : vector<16x64xf32>
    %347 = arith.cmpf one, %346, %346 : vector<16x64xf32>
    %348 = vector.broadcast %cst_146 : f32 to vector<16x64xf32>
    %349 = arith.addf %342, %348 : vector<16x64xf32>
    %350 = math.absf %346 : vector<16x64xf32>
    %cst_147 = arith.constant 0.000000e+00 : f32
    %351 = vector.broadcast %cst_147 : f32 to vector<16x64xf32>
    %352 = arith.subf %351, %350 : vector<16x64xf32>
    %353 = math.exp %352 : vector<16x64xf32>
    %354 = math.log1p %353 : vector<16x64xf32>
    %355 = arith.addf %344, %354 : vector<16x64xf32>
    %356 = arith.select %347, %349, %355 : vector<16x64xi1>, vector<16x64xf32>
    %357 = vector.extract_strided_slice %337 {offsets = [0, 64], sizes = [16, 16], strides = [1, 1]} : vector<16x128xf32> to vector<16x16xf32>
    %358 = vector.extract_strided_slice %337 {offsets = [0, 80], sizes = [16, 16], strides = [1, 1]} : vector<16x128xf32> to vector<16x16xf32>
    %359 = vector.extract_strided_slice %356 {offsets = [0, 0], sizes = [8, 64], strides = [1, 1]} : vector<16x64xf32> to vector<8x64xf32>
    %360 = vector.extract_strided_slice %356 {offsets = [8, 0], sizes = [8, 64], strides = [1, 1]} : vector<16x64xf32> to vector<8x64xf32>
    %361 = tpu.concatenate %359, %360 in 1 : vector<8x64xf32>, vector<8x64xf32> -> vector<8x128xf32>
    %362 = vector.extract_strided_slice %334 {offsets = [0, 0], sizes = [8, 64], strides = [1, 1]} : vector<16x64xf32> to vector<8x64xf32>
    %363 = vector.extract_strided_slice %334 {offsets = [8, 0], sizes = [8, 64], strides = [1, 1]} : vector<16x64xf32> to vector<8x64xf32>
    %364 = tpu.concatenate %362, %363 in 1 : vector<8x64xf32>, vector<8x64xf32> -> vector<8x128xf32>
    %c1_148 = arith.constant 1 : index
    %c0_149 = arith.constant 0 : index
    %c0_150 = arith.constant 0 : index
    %365 = vector.load %arg9[%c1_148, %c0_149, %c0_150] : memref<2x16x64xf32, #tpu.memory_space<vmem>>, vector<1x16x64xf32>
    %366 = vector.shape_cast %365 : vector<1x16x64xf32> to vector<16x64xf32>
    %367 = math.exp %366 : vector<16x64xf32>
    %cst_151 = arith.constant 0.000000e+00 : f32
    %368 = vector.broadcast %cst_151 : f32 to vector<16x64xf32>
    %369 = arith.subf %368, %367 : vector<16x64xf32>
    %370 = tpu.concatenate %369, %369 in 1 : vector<16x64xf32>, vector<16x64xf32> -> vector<16x128xf32>
    %371 = vector.extract_strided_slice %357 {offsets = [0, 0], sizes = [8, 16], strides = [1, 1]} : vector<16x16xf32> to vector<8x16xf32>
    %372 = vector.shape_cast %371 : vector<8x16xf32> to vector<8x16x1xf32>
    %373 = vector.shape_cast %372 : vector<8x16x1xf32> to vector<8x16x1xf32>
    %374 = vector.broadcast %373 : vector<8x16x1xf32> to vector<8x16x64xf32>
    %375 = vector.extract_strided_slice %357 {offsets = [8, 0], sizes = [8, 16], strides = [1, 1]} : vector<16x16xf32> to vector<8x16xf32>
    %376 = vector.shape_cast %375 : vector<8x16xf32> to vector<8x16x1xf32>
    %377 = vector.shape_cast %376 : vector<8x16x1xf32> to vector<8x16x1xf32>
    %378 = vector.broadcast %377 : vector<8x16x1xf32> to vector<8x16x64xf32>
    %379 = tpu.concatenate %374, %378 in 2 : vector<8x16x64xf32>, vector<8x16x64xf32> -> vector<8x16x128xf32>
    %380 = vector.extract_strided_slice %358 {offsets = [0, 0], sizes = [8, 16], strides = [1, 1]} : vector<16x16xf32> to vector<8x16xf32>
    %381 = vector.shape_cast %380 : vector<8x16xf32> to vector<8x16x1xf32>
    %382 = vector.shape_cast %381 : vector<8x16x1xf32> to vector<8x16x1xf32>
    %383 = vector.broadcast %382 : vector<8x16x1xf32> to vector<8x16x64xf32>
    %384 = vector.extract_strided_slice %358 {offsets = [8, 0], sizes = [8, 16], strides = [1, 1]} : vector<16x16xf32> to vector<8x16xf32>
    %385 = vector.shape_cast %384 : vector<8x16xf32> to vector<8x16x1xf32>
    %386 = vector.shape_cast %385 : vector<8x16x1xf32> to vector<8x16x1xf32>
    %387 = vector.broadcast %386 : vector<8x16x1xf32> to vector<8x16x64xf32>
    %388 = tpu.concatenate %383, %387 in 2 : vector<8x16x64xf32>, vector<8x16x64xf32> -> vector<8x16x128xf32>
    %389 = vector.shape_cast %361 : vector<8x128xf32> to vector<8x1x128xf32>
    %390 = vector.shape_cast %370 : vector<16x128xf32> to vector<1x16x128xf32>
    %391 = vector.broadcast %389 : vector<8x1x128xf32> to vector<8x16x128xf32>
    %392 = vector.broadcast %390 : vector<1x16x128xf32> to vector<8x16x128xf32>
    %393 = arith.mulf %391, %392 : vector<8x16x128xf32>
    %394 = math.exp %393 : vector<8x16x128xf32>
    %c0_152 = arith.constant 0 : index
    %c0_153 = arith.constant 0 : index
    %c0_154 = arith.constant 0 : index
    %395 = vector.load %arg15[%c0_152, %c0_153, %c0_154] : memref<8x16x128xf32, #tpu.memory_space<vmem>>, vector<8x16x128xf32>
    tpu.vector_store %arg15[%c0_152, %c0_153, %c0_154], %394 {strides = array<i32>} : memref<8x16x128xf32, #tpu.memory_space<vmem>>, vector<8x16x128xf32>,
    %396 = arith.mulf %361, %364 : vector<8x128xf32>
    %397 = vector.shape_cast %396 : vector<8x128xf32> to vector<8x1x128xf32>
    %398 = vector.broadcast %397 : vector<8x1x128xf32> to vector<8x16x128xf32>
    %399 = arith.mulf %379, %398 : vector<8x16x128xf32>
    %c0_155 = arith.constant 0 : index
    %c0_156 = arith.constant 0 : index
    %c0_157 = arith.constant 0 : index
    %400 = vector.load %arg16[%c0_155, %c0_156, %c0_157] : memref<8x16x128xf32, #tpu.memory_space<vmem>>, vector<8x16x128xf32>
    tpu.vector_store %arg16[%c0_155, %c0_156, %c0_157], %399 {strides = array<i32>} : memref<8x16x128xf32, #tpu.memory_space<vmem>>, vector<8x16x128xf32>,
    %cst_158 = arith.constant 0.000000e+00 : f32
    %401 = vector.broadcast %cst_158 : f32 to vector<16x128xf32>
    %c0_159 = arith.constant 0 : index
    %c0_160 = arith.constant 0 : index
    %c0_161 = arith.constant 0 : index
    %402 = vector.load %arg15[%c0_159, %c0_160, %c0_161] : memref<8x16x128xf32, #tpu.memory_space<vmem>>, vector<1x16x128xf32>
    %403 = vector.shape_cast %402 : vector<1x16x128xf32> to vector<16x128xf32>
    %404 = arith.mulf %403, %401 : vector<16x128xf32>
    %c0_162 = arith.constant 0 : index
    %c0_163 = arith.constant 0 : index
    %c0_164 = arith.constant 0 : index
    %405 = vector.load %arg16[%c0_162, %c0_163, %c0_164] : memref<8x16x128xf32, #tpu.memory_space<vmem>>, vector<1x16x128xf32>
    %406 = vector.shape_cast %405 : vector<1x16x128xf32> to vector<16x128xf32>
    %407 = arith.addf %404, %406 : vector<16x128xf32>
    %408 = vector.extract_strided_slice %388 {offsets = [0, 0, 0], sizes = [1, 16, 128], strides = [1, 1, 1]} : vector<8x16x128xf32> to vector<1x16x128xf32>
    %409 = vector.shape_cast %408 : vector<1x16x128xf32> to vector<16x128xf32>
    %410 = arith.mulf %409, %407 : vector<16x128xf32>
    %cst_165 = arith.constant dense<0.000000e+00> : vector<128xf32>
    %411 = vector.multi_reduction <add>, %410, %cst_165 [0] : vector<16x128xf32> to vector<128xf32>
    %412 = vector.shape_cast %411 : vector<128xf32> to vector<1x128xf32>
    %c1_166 = arith.constant 1 : index
    %c0_167 = arith.constant 0 : index
    %c0_168 = arith.constant 0 : index
    %413 = vector.load %arg15[%c1_166, %c0_167, %c0_168] : memref<8x16x128xf32, #tpu.memory_space<vmem>>, vector<1x16x128xf32>
    %414 = vector.shape_cast %413 : vector<1x16x128xf32> to vector<16x128xf32>
    %415 = arith.mulf %414, %407 : vector<16x128xf32>
    %c1_169 = arith.constant 1 : index
    %c0_170 = arith.constant 0 : index
    %c0_171 = arith.constant 0 : index
    %416 = vector.load %arg16[%c1_169, %c0_170, %c0_171] : memref<8x16x128xf32, #tpu.memory_space<vmem>>, vector<1x16x128xf32>
    %417 = vector.shape_cast %416 : vector<1x16x128xf32> to vector<16x128xf32>
    %418 = arith.addf %415, %417 : vector<16x128xf32>
    %419 = vector.extract_strided_slice %388 {offsets = [1, 0, 0], sizes = [1, 16, 128], strides = [1, 1, 1]} : vector<8x16x128xf32> to vector<1x16x128xf32>
    %420 = vector.shape_cast %419 : vector<1x16x128xf32> to vector<16x128xf32>
    %421 = arith.mulf %420, %418 : vector<16x128xf32>
    %cst_172 = arith.constant dense<0.000000e+00> : vector<128xf32>
    %422 = vector.multi_reduction <add>, %421, %cst_172 [0] : vector<16x128xf32> to vector<128xf32>
    %423 = vector.shape_cast %422 : vector<128xf32> to vector<1x128xf32>
    %c2_173 = arith.constant 2 : index
    %c0_174 = arith.constant 0 : index
    %c0_175 = arith.constant 0 : index
    %424 = vector.load %arg15[%c2_173, %c0_174, %c0_175] : memref<8x16x128xf32, #tpu.memory_space<vmem>>, vector<1x16x128xf32>
    %425 = vector.shape_cast %424 : vector<1x16x128xf32> to vector<16x128xf32>
    %426 = arith.mulf %425, %418 : vector<16x128xf32>
    %c2_176 = arith.constant 2 : index
    %c0_177 = arith.constant 0 : index
    %c0_178 = arith.constant 0 : index
    %427 = vector.load %arg16[%c2_176, %c0_177, %c0_178] : memref<8x16x128xf32, #tpu.memory_space<vmem>>, vector<1x16x128xf32>
    %428 = vector.shape_cast %427 : vector<1x16x128xf32> to vector<16x128xf32>
    %429 = arith.addf %426, %428 : vector<16x128xf32>
    %430 = vector.extract_strided_slice %388 {offsets = [2, 0, 0], sizes = [1, 16, 128], strides = [1, 1, 1]} : vector<8x16x128xf32> to vector<1x16x128xf32>
    %431 = vector.shape_cast %430 : vector<1x16x128xf32> to vector<16x128xf32>
    %432 = arith.mulf %431, %429 : vector<16x128xf32>
    %cst_179 = arith.constant dense<0.000000e+00> : vector<128xf32>
    %433 = vector.multi_reduction <add>, %432, %cst_179 [0] : vector<16x128xf32> to vector<128xf32>
    %434 = vector.shape_cast %433 : vector<128xf32> to vector<1x128xf32>
    %c3_180 = arith.constant 3 : index
    %c0_181 = arith.constant 0 : index
    %c0_182 = arith.constant 0 : index
    %435 = vector.load %arg15[%c3_180, %c0_181, %c0_182] : memref<8x16x128xf32, #tpu.memory_space<vmem>>, vector<1x16x128xf32>
    %436 = vector.shape_cast %435 : vector<1x16x128xf32> to vector<16x128xf32>
    %437 = arith.mulf %436, %429 : vector<16x128xf32>
    %c3_183 = arith.constant 3 : index
    %c0_184 = arith.constant 0 : index
    %c0_185 = arith.constant 0 : index
    %438 = vector.load %arg16[%c3_183, %c0_184, %c0_185] : memref<8x16x128xf32, #tpu.memory_space<vmem>>, vector<1x16x128xf32>
    %439 = vector.shape_cast %438 : vector<1x16x128xf32> to vector<16x128xf32>
    %440 = arith.addf %437, %439 : vector<16x128xf32>
    %441 = vector.extract_strided_slice %388 {offsets = [3, 0, 0], sizes = [1, 16, 128], strides = [1, 1, 1]} : vector<8x16x128xf32> to vector<1x16x128xf32>
    %442 = vector.shape_cast %441 : vector<1x16x128xf32> to vector<16x128xf32>
    %443 = arith.mulf %442, %440 : vector<16x128xf32>
    %cst_186 = arith.constant dense<0.000000e+00> : vector<128xf32>
    %444 = vector.multi_reduction <add>, %443, %cst_186 [0] : vector<16x128xf32> to vector<128xf32>
    %445 = vector.shape_cast %444 : vector<128xf32> to vector<1x128xf32>
    %c4_187 = arith.constant 4 : index
    %c0_188 = arith.constant 0 : index
    %c0_189 = arith.constant 0 : index
    %446 = vector.load %arg15[%c4_187, %c0_188, %c0_189] : memref<8x16x128xf32, #tpu.memory_space<vmem>>, vector<1x16x128xf32>
    %447 = vector.shape_cast %446 : vector<1x16x128xf32> to vector<16x128xf32>
    %448 = arith.mulf %447, %440 : vector<16x128xf32>
    %c4_190 = arith.constant 4 : index
    %c0_191 = arith.constant 0 : index
    %c0_192 = arith.constant 0 : index
    %449 = vector.load %arg16[%c4_190, %c0_191, %c0_192] : memref<8x16x128xf32, #tpu.memory_space<vmem>>, vector<1x16x128xf32>
    %450 = vector.shape_cast %449 : vector<1x16x128xf32> to vector<16x128xf32>
    %451 = arith.addf %448, %450 : vector<16x128xf32>
    %452 = vector.extract_strided_slice %388 {offsets = [4, 0, 0], sizes = [1, 16, 128], strides = [1, 1, 1]} : vector<8x16x128xf32> to vector<1x16x128xf32>
    %453 = vector.shape_cast %452 : vector<1x16x128xf32> to vector<16x128xf32>
    %454 = arith.mulf %453, %451 : vector<16x128xf32>
    %cst_193 = arith.constant dense<0.000000e+00> : vector<128xf32>
    %455 = vector.multi_reduction <add>, %454, %cst_193 [0] : vector<16x128xf32> to vector<128xf32>
    %456 = vector.shape_cast %455 : vector<128xf32> to vector<1x128xf32>
    %c5_194 = arith.constant 5 : index
    %c0_195 = arith.constant 0 : index
    %c0_196 = arith.constant 0 : index
    %457 = vector.load %arg15[%c5_194, %c0_195, %c0_196] : memref<8x16x128xf32, #tpu.memory_space<vmem>>, vector<1x16x128xf32>
    %458 = vector.shape_cast %457 : vector<1x16x128xf32> to vector<16x128xf32>
    %459 = arith.mulf %458, %451 : vector<16x128xf32>
    %c5_197 = arith.constant 5 : index
    %c0_198 = arith.constant 0 : index
    %c0_199 = arith.constant 0 : index
    %460 = vector.load %arg16[%c5_197, %c0_198, %c0_199] : memref<8x16x128xf32, #tpu.memory_space<vmem>>, vector<1x16x128xf32>
    %461 = vector.shape_cast %460 : vector<1x16x128xf32> to vector<16x128xf32>
    %462 = arith.addf %459, %461 : vector<16x128xf32>
    %463 = vector.extract_strided_slice %388 {offsets = [5, 0, 0], sizes = [1, 16, 128], strides = [1, 1, 1]} : vector<8x16x128xf32> to vector<1x16x128xf32>
    %464 = vector.shape_cast %463 : vector<1x16x128xf32> to vector<16x128xf32>
    %465 = arith.mulf %464, %462 : vector<16x128xf32>
    %cst_200 = arith.constant dense<0.000000e+00> : vector<128xf32>
    %466 = vector.multi_reduction <add>, %465, %cst_200 [0] : vector<16x128xf32> to vector<128xf32>
    %467 = vector.shape_cast %466 : vector<128xf32> to vector<1x128xf32>
    %c6_201 = arith.constant 6 : index
    %c0_202 = arith.constant 0 : index
    %c0_203 = arith.constant 0 : index
    %468 = vector.load %arg15[%c6_201, %c0_202, %c0_203] : memref<8x16x128xf32, #tpu.memory_space<vmem>>, vector<1x16x128xf32>
    %469 = vector.shape_cast %468 : vector<1x16x128xf32> to vector<16x128xf32>
    %470 = arith.mulf %469, %462 : vector<16x128xf32>
    %c6_204 = arith.constant 6 : index
    %c0_205 = arith.constant 0 : index
    %c0_206 = arith.constant 0 : index
    %471 = vector.load %arg16[%c6_204, %c0_205, %c0_206] : memref<8x16x128xf32, #tpu.memory_space<vmem>>, vector<1x16x128xf32>
    %472 = vector.shape_cast %471 : vector<1x16x128xf32> to vector<16x128xf32>
    %473 = arith.addf %470, %472 : vector<16x128xf32>
    %474 = vector.extract_strided_slice %388 {offsets = [6, 0, 0], sizes = [1, 16, 128], strides = [1, 1, 1]} : vector<8x16x128xf32> to vector<1x16x128xf32>
    %475 = vector.shape_cast %474 : vector<1x16x128xf32> to vector<16x128xf32>
    %476 = arith.mulf %475, %473 : vector<16x128xf32>
    %cst_207 = arith.constant dense<0.000000e+00> : vector<128xf32>
    %477 = vector.multi_reduction <add>, %476, %cst_207 [0] : vector<16x128xf32> to vector<128xf32>
    %478 = vector.shape_cast %477 : vector<128xf32> to vector<1x128xf32>
    %c7_208 = arith.constant 7 : index
    %c0_209 = arith.constant 0 : index
    %c0_210 = arith.constant 0 : index
    %479 = vector.load %arg15[%c7_208, %c0_209, %c0_210] : memref<8x16x128xf32, #tpu.memory_space<vmem>>, vector<1x16x128xf32>
    %480 = vector.shape_cast %479 : vector<1x16x128xf32> to vector<16x128xf32>
    %481 = arith.mulf %480, %473 : vector<16x128xf32>
    %c7_211 = arith.constant 7 : index
    %c0_212 = arith.constant 0 : index
    %c0_213 = arith.constant 0 : index
    %482 = vector.load %arg16[%c7_211, %c0_212, %c0_213] : memref<8x16x128xf32, #tpu.memory_space<vmem>>, vector<1x16x128xf32>
    %483 = vector.shape_cast %482 : vector<1x16x128xf32> to vector<16x128xf32>
    %484 = arith.addf %481, %483 : vector<16x128xf32>
    %485 = vector.extract_strided_slice %388 {offsets = [7, 0, 0], sizes = [1, 16, 128], strides = [1, 1, 1]} : vector<8x16x128xf32> to vector<1x16x128xf32>
    %486 = vector.shape_cast %485 : vector<1x16x128xf32> to vector<16x128xf32>
    %487 = arith.mulf %486, %484 : vector<16x128xf32>
    %cst_214 = arith.constant dense<0.000000e+00> : vector<128xf32>
    %488 = vector.multi_reduction <add>, %487, %cst_214 [0] : vector<16x128xf32> to vector<128xf32>
    %489 = vector.shape_cast %488 : vector<128xf32> to vector<1x128xf32>
    %490 = tpu.concatenate %412, %423, %434, %445, %456, %467, %478, %489 in 0 : vector<1x128xf32>, vector<1x128xf32>, vector<1x128xf32>, vector<1x128xf32>, vector<1x128xf32>, vector<1x128xf32>, vector<1x128xf32>, vector<1x128xf32> -> vector<8x128xf32>
    %491 = vector.extract_strided_slice %490 {offsets = [0, 0], sizes = [8, 64], strides = [1, 1]} : vector<8x128xf32> to vector<8x64xf32>
    %492 = vector.extract_strided_slice %490 {offsets = [0, 64], sizes = [8, 64], strides = [1, 1]} : vector<8x128xf32> to vector<8x64xf32>
    %493 = tpu.concatenate %491, %492 in 0 : vector<8x64xf32>, vector<8x64xf32> -> vector<16x64xf32>
    %c1_215 = arith.constant 1 : index
    %c0_216 = arith.constant 0 : index
    %c0_217 = arith.constant 0 : index
    %494 = vector.load %arg10[%c1_215, %c0_216, %c0_217] : memref<2x1x64xf32, #tpu.memory_space<vmem>>, vector<1x1x64xf32>
    %495 = vector.shape_cast %494 : vector<1x1x64xf32> to vector<1x64xf32>
    %496 = vector.broadcast %495 : vector<1x64xf32> to vector<16x64xf32>
    %497 = arith.mulf %334, %496 : vector<16x64xf32>
    %498 = arith.addf %493, %497 : vector<16x64xf32>
    %499 = arith.negf %298 : vector<16x64xf32>
    %500 = math.exp %499 : vector<16x64xf32>
    %cst_218 = arith.constant 1.000000e+00 : f32
    %501 = vector.broadcast %cst_218 : f32 to vector<16x64xf32>
    %502 = arith.addf %501, %500 : vector<16x64xf32>
    %503 = arith.divf %501, %502 : vector<16x64xf32>
    %504 = arith.mulf %298, %503 : vector<16x64xf32>
    %505 = arith.mulf %498, %504 : vector<16x64xf32>
    %c1_219 = arith.constant 1 : index
    %c0_220 = arith.constant 0 : index
    %c0_221 = arith.constant 0 : index
    %506 = vector.load %arg11[%c1_219, %c0_220, %c0_221] : memref<2x64x32xf32, #tpu.memory_space<vmem>>, vector<1x64x32xf32>
    %507 = vector.shape_cast %506 : vector<1x64x32xf32> to vector<64x32xf32>
    %cst_222 = arith.constant dense<0.000000e+00> : vector<16x32xf32>
    %508 = tpu.matmul %505, %507, %cst_222 {dimension_numbers = #tpu.dot_dimension_numbers<[1], [0], [0], [1], [0, 0, 1, 1], [], []>} : vector<16x64xf32>, vector<64x32xf32>, vector<16x32xf32> -> vector<16x32xf32>
    %509 = arith.addf %508, %267 : vector<16x32xf32>
    %c0_223 = arith.constant 0 : index
    %c0_224 = arith.constant 0 : index
    %510 = vector.load %arg12[%c0_223, %c0_224] : memref<1x32xf32, #tpu.memory_space<vmem>>, vector<1x32xf32>
    %c0_225 = arith.constant 0 : index
    %c0_226 = arith.constant 0 : index
    %511 = vector.load %arg13[%c0_225, %c0_226] : memref<1x32xf32, #tpu.memory_space<vmem>>, vector<1x32xf32>
    %cst_227 = arith.constant dense<0.000000e+00> : vector<16xf32>
    %512 = vector.multi_reduction <add>, %509, %cst_227 [1] : vector<16x32xf32> to vector<16xf32>
    %513 = vector.shape_cast %512 : vector<16xf32> to vector<16x1xf32>
    %cst_228 = arith.constant 3.200000e+01 : f32
    %514 = vector.broadcast %cst_228 : f32 to vector<16x1xf32>
    %515 = arith.divf %513, %514 : vector<16x1xf32>
    %516 = arith.mulf %509, %509 : vector<16x32xf32>
    %cst_229 = arith.constant dense<0.000000e+00> : vector<16xf32>
    %517 = vector.multi_reduction <add>, %516, %cst_229 [1] : vector<16x32xf32> to vector<16xf32>
    %518 = vector.shape_cast %517 : vector<16xf32> to vector<16x1xf32>
    %cst_230 = arith.constant 3.200000e+01 : f32
    %519 = vector.broadcast %cst_230 : f32 to vector<16x1xf32>
    %520 = arith.divf %518, %519 : vector<16x1xf32>
    %521 = vector.broadcast %515 : vector<16x1xf32> to vector<16x32xf32>
    %522 = arith.subf %509, %521 : vector<16x32xf32>
    %523 = arith.mulf %515, %515 : vector<16x1xf32>
    %524 = arith.subf %520, %523 : vector<16x1xf32>
    %cst_231 = arith.constant 9.99999974E-6 : f32
    %525 = vector.broadcast %cst_231 : f32 to vector<16x1xf32>
    %526 = arith.addf %524, %525 : vector<16x1xf32>
    %527 = math.rsqrt %526 : vector<16x1xf32>
    %528 = vector.broadcast %527 : vector<16x1xf32> to vector<16x32xf32>
    %529 = arith.mulf %522, %528 : vector<16x32xf32>
    %530 = vector.broadcast %510 : vector<1x32xf32> to vector<16x32xf32>
    %531 = arith.mulf %529, %530 : vector<16x32xf32>
    %532 = vector.broadcast %511 : vector<1x32xf32> to vector<16x32xf32>
    %533 = arith.addf %531, %532 : vector<16x32xf32>
    %c0_232 = arith.constant 0 : index
    %c0_233 = arith.constant 0 : index
    %534 = vector.load %arg14[%c0_232, %c0_233] : memref<16x32xf32, #tpu.memory_space<vmem>>, vector<16x32xf32>
    tpu.vector_store %arg14[%c0_232, %c0_233], %533 {strides = array<i32>} : memref<16x32xf32, #tpu.memory_space<vmem>>, vector<16x32xf32>,
    return
  }
}

</mosaic_0001>

<bundles_post_ra>
// kernel: tpu_custom_call.1
= control target key start
LH: loop header
LB: loop body
LE: loop exit
PB: predicated region body
PF: predicated region fallthrough
CT: control target
= control target key end

     0   :  { %19 = vsyncpa [#allocation5], 0  ;;  %s4388_s0 = inlined_call_operand.hbm [shape: f32[16,32], index: 0, kind: input, shape index: {}]   ;;  %s4389_s1 = inlined_call_operand.hbm [shape: f32[16,32], index: 1, kind: input, shape index: {}]   ;;  %s4390_s2 = inlined_call_operand.vmem [shape: f32[2,1,32], index: 2, kind: input, shape index: {}]   ;;  %s4391_s3 = inlined_call_operand.vmem [shape: f32[2,1,32], index: 3, kind: input, shape index: {}]   ;;  %s4392_s4 = inlined_call_operand.vmem [shape: f32[2,32,128], index: 4, kind: input, shape index: {}]   ;;  %s4393_s5 = inlined_call_operand.hbm [shape: f32[2,4,64], index: 5, kind: input, shape index: {}]   ;;  %s4394_s6 = inlined_call_operand.vmem [shape: f32[2,1,64], index: 6, kind: input, shape index: {}]   ;;  %s4395_s7 = inlined_call_operand.vmem [shape: f32[2,64,128], index: 7, kind: input, shape index: {}]   ;;  %s4396_s8 = inlined_call_operand.hbm [shape: f32[2,1,64], index: 8, kind: input, shape index: {}]   ;;  %s4397_s9 = inlined_call_operand.hbm [shape: f32[2,16,64], index: 9, kind: input, shape index: {}]   ;;  %s4398_s10 = inlined_call_operand.vmem [shape: f32[2,1,64], index: 10, kind: input, shape index: {}]   ;;  %s4399_s11 = inlined_call_operand.vmem [shape: f32[2,64,32], index: 11, kind: input, shape index: {}]   ;;  %s4400_s12 = inlined_call_operand.vmem [shape: f32[1,32], index: 12, kind: input, shape index: {}]   ;;  %s4401_s13 = inlined_call_operand.vmem [shape: f32[1,32], index: 13, kind: input, shape index: {}]   ;;  %s4402_s14 = inlined_call_operand.hbm [shape: f32[16,32], index: 14, kind: output, shape index: {}]  }
   0x1   :  { %20 = vsyncpa [#allocation8], 0 }
   0x2   :  { %21 = vsyncpa [#allocation11], 0 }
   0x3   :  { %22 = vsyncpa [#allocation6], 0  ;;  %s40_s15 = sshll.u32 %s4389_s1, 4  ;;  %s2950_s16 = smov [#allocation7]   ;;  %s41_s15 = int_to_ptr.hbm [resolvable:$true] %s40_s15 }
   0x4   :  { %s42_s17 = sshll.u32 %s2950_s16, 4  ;;  %s76_s20 = sshll.u32 %s4396_s8, 4  ;;  %s43_s17 = int_to_ptr.vmem [resolvable:$true] %s42_s17  ;;  %s77_s20 = int_to_ptr.hbm [resolvable:$true] %s76_s20 }
   0x5   :  { %s2951_s21 = smov 128   ;;  %s2952_s22 = smov 8  }
   0x6   :  { %48 = dma.hbm_to_vmem [thread:$0]  %s41_s15, 256, %s43_s17, [#allocation8], %s2951_s21, %s2951_s21, %s2952_s22  }
   0x7   :  { %s2953_s23 = smov [#allocation10]   ;;  %s2954_s25 = smov 16  }
   0x8   :  { %s78_s24 = sshll.u32 %s2953_s23, 4  ;;  %s2955_s1 = smov 1   ;;  %s79_s24 = int_to_ptr.vmem [resolvable:$true] %s78_s24 }
   0x9   :  { %84 = dma.hbm_to_vmem [thread:$0]  %s77_s20, 32, %s79_s24, [#allocation11], %s2954_s25, %s2954_s25, %s2955_s1  }
   0xa   :  { %s27_s28 = sshll.u32 %s4388_s0, 4  ;;  %s2956_s29 = smov [#allocation4]   ;;  %s28_s28 = int_to_ptr.hbm [resolvable:$true] %s27_s28 }
   0xb   :  { %s29_s8 = sshll.u32 %s2956_s29, 4  ;;  %s59_s18 = sshll.u32 %s4393_s5, 4  ;;  %s30_s8 = int_to_ptr.vmem [resolvable:$true] %s29_s8  ;;  %s60_s18 = int_to_ptr.hbm [resolvable:$true] %s59_s18 }
   0xc   :  { %35 = dma.hbm_to_vmem [thread:$0]  %s28_s28, 256, %s30_s8, [#allocation5], %s2951_s21, %s2951_s21, %s2952_s22  }
   0xd   :  { %s2957_s15 = smov [#allocation9]   ;;  %s2958_s19 = smov 64  }
   0xe   :  { %s61_s17 = sshll.u32 %s2957_s15, 4  ;;  %s2959_s20 = smov 4   ;;  %s62_s17 = int_to_ptr.vmem [resolvable:$true] %s61_s17 }
   0xf   :  { %67 = dma.hbm_to_vmem [thread:$0]  %s60_s18, 128, %s62_s17, [#allocation8], %s2958_s19, %s2958_s19, %s2959_s20  }
  0x10   :  { %s89_s24 = sshll.u32 %s4397_s9, 4  ;;  %s2960_s25 = smov [#allocation12]   ;;  %s90_s24 = int_to_ptr.hbm [resolvable:$true] %s89_s24 }
  0x11   :  { %s91_s5 = sshll.u32 %s2960_s25, 4  ;;  %s92_s5 = int_to_ptr.vmem [resolvable:$true] %s91_s5 }
  0x12   :  { %97 = dma.hbm_to_vmem [thread:$0]  %s90_s24, 512, %s92_s5, [#allocation11], %s2951_s21, %s2951_s21, %s2952_s22  }
  0x13   :  { %2942 = dma.done.wait [#allocation5], 256  }
  0x14   :  { %2943 = vsyncadd [#allocation5], 4294967040 }
  0x15   :  { %2944 = dma.done.wait [#allocation8], 384  }
  0x16   :  { %2945 = vsyncadd [#allocation8], 4294966912 }
  0x17   :  { %2946 = dma.done.wait [#allocation11], 544  }
  0x18   :  { %2947 = vsyncadd [#allocation11], 4294966752  ;;  %v160_v0 = vld [vmem:[#allocation4 + $0x8] sm:$0xff]  ;;  %v162_v1 = vld [vmem:[#allocation7 + $0x8] sm:$0xff]  ;;  %vm167_vm0 = vcmask 261120   ;;  %v2961_v12 = vmov 32.0  }
  0x19   :  { %v159_v2 = vld [vmem:[#allocation4] sm:$0xff]  ;;  %v3064_v3 = vadd.f32 %v162_v1, %v160_v0  ;;  %v161_v4 = vld [vmem:[#allocation7] sm:$0xff]  ;;  %2662 = vrcp.f32 %v2961_v12  ;;  %v236_v18 = vld [vmem:[%s4392_s4 + $0x18] sm:$0xff]  ;;  %v126_v1 = vlaneseq }
  0x1a   :  { %v3066_v5 = vadd.f32 %v161_v4, %v159_v2  ;;  %v235_v19 = vld [vmem:[%s4392_s4 + $0x10] sm:$0xff]  ;;  %255 = vmatpush.msra.mxu0 %v236_v18  ;;  %v234_v22 = vld [vmem:[%s4392_s4 + $0x8] sm:$0xff]  ;;  %v233_v25 = vld [vmem:[%s4392_s4] sm:$0xff] }
  0x1b   :  { %4430 = vst [vmem:[#allocation18_spill] sm:$0xff] %v3064_v3  ;;  %v171_v6 = vsel %vm167_vm0, %v3064_v3, 0.0  ;;  %v184_v8 = vmul.f32 %v3064_v3, %v3064_v3  ;;  %v2650_v50 = vld [vmem:[%s4390_s2] ss:$0 sm:$0xff]  ;;  %v359_v61 = vld [vmem:[%s4395_s7 + $0x38] sm:$0xff]  ;;  %v358_v62 = vld [vmem:[%s4395_s7 + $0x30] sm:$0xff] }
  0x1c   :  { %4431 = vst [vmem:[#allocation19_spill] sm:$0xff] %v3066_v5  ;;  %172 = vadd.xlane.f32.xlu1 %v171_v6  ;;  %v168_v7 = vsel %vm167_vm0, %v3066_v5, 0.0  ;;  %v183_v9 = vmul.f32 %v3066_v5, %v3066_v5  ;;  %256 = vmatpush.msra.mxu0 %v235_v19  ;;  %v2651_v53 = vld [vmem:[%s4391_s3] ss:$0 sm:$0xff]  ;;  %v357_v63 = vld [vmem:[%s4395_s7 + $0x28] sm:$0xff]  ;;  %v355_v2 = vld [vmem:[%s4395_s7 + $0x18] sm:$0xff] }
  0x1d   :  { %169 = vadd.xlane.f32.xlu0 %v168_v7  ;;  %v188_v10 = vsel %vm167_vm0, %v184_v8, 0.0  ;;  %375 = vmatpush.msra.mxu1 %v359_v61  ;;  %v356_v0 = vld [vmem:[%s4395_s7 + $0x20] sm:$0xff]  ;;  %v354_v4 = vld [vmem:[%s4395_s7 + $0x10] sm:$0xff]  ;;  %v3124_v6 = vshrl.u32 %v126_v1, 7  ;;  %v353_v7 = vld [vmem:[%s4395_s7 + $0x8] sm:$0xff] }
  0x1e   :  { %v185_v11 = vsel %vm167_vm0, %v183_v9, 0.0  ;;  %257 = vmatpush.msra.mxu0 %v234_v22  ;;  %v266_v9 = vld [vmem:[#allocation9] sm:$0xf] }
  0x1f   :  { %v2663_v13 = vpop.eup %2662  ;;  %376 = vmatpush.msra.mxu1 %v358_v62  ;;  %4433 = vst [vmem:[#allocation21_spill] sm:$0xff] %v3124_v6  ;;  %v3136_v12 = vand.u32 7, %v3124_v6  ;;  %vm278_vm8 = vcmp.lt.s32.totalorder %v3124_v6, 3  ;;  %vm290_vm11 = vcmp.lt.s32.totalorder %v3124_v6, 2  ;;  %vm302_vm12 = vcmp.lt.s32.totalorder %v3124_v6, 1 }
  0x20   :  { %v175_v14 = vmul.f32 32.0, %v2663_v13  ;;  %vm179_vm1 = vweird.f32 %v2663_v13  ;;  %258 = vmatpush.msra.mxu0 %v233_v25  ;;  %v283_v19 = vperm.slane %v266_v9, 0  ;;  %v2652_v25 = vld [vmem:[%s4394_s6] ss:$0 sm:$0xff] }
  0x21   :  { %377 = vmatpush.msra.mxu1 %v357_v63  ;;  %4434 = vst [vmem:[#allocation22_spill] sm:$0xff] %v3136_v12  ;;  %vm155_vm9 = vcmp.ge.s32.totalorder %v3136_v12, 2  ;;  %vm157_vm10 = vcmp.ge.s32.totalorder %v3136_v12, 3  ;;  %vm153_vm13 = vcmp.ge.s32.totalorder %v3136_v12, 1 }
  0x22   :  { %v176_v15 = vsub.f32 1.0, %v175_v14 }
  0x23   :  { %378 = vmatpush.msra.mxu1 %v356_v0 }
  0x24   :  { %189 = vadd.xlane.f32.xlu1 %v188_v10  ;;  %v177_v16 = vmul.f32 %v2663_v13, %v176_v15  ;;  %v352_v10 = vld [vmem:[%s4395_s7] sm:$0xff] }
  0x25   :  { %186 = vadd.xlane.f32.xlu0 %v185_v11  ;;  %379 = vmatpush.msra.mxu1 %v355_v2  ;;  %v128_v11 = vadd.s32 8, %v3124_v6 }
  0x26   :  { %v178_v17 = vadd.f32 %v2663_v13, %v177_v16 }
  0x27   :  { %380 = vmatpush.msra.mxu1 %v354_v4  ;;  %v3139_v14 = vand.u32 7, %v128_v11 }
  0x28   :  { %v3087_v23 = vsel %vm179_vm1, %v2663_v13, %v178_v17  ;;  %v267_v13 = vperm.slane %v266_v9, 3 }
  0x29   :  { %4432 = vst [vmem:[#allocation20_spill] sm:$0xff] %v3087_v23  ;;  %381 = vmatpush.msra.mxu1 %v353_v7  ;;  %vm4404_vm14 = vcmp.ge.s32.totalorder %v3139_v14, 2  ;;  %vm4405_vm15 = vcmp.ge.s32.totalorder %v3139_v14, 3  ;;  %vm4403_vm1 = vcmp.ge.s32.totalorder %v3139_v14, 1 }
  0x2a   :  { %4435 = vst [vmem:[#allocation23_spill] sm:$0xff] %v3139_v14 }
  0x2b   :  { %382 = vmatpush.msra.mxu1 %v352_v10 }
  0x8f   :  { %v173_v20 = vpop.xlane.xlu1 %172 }
  0x90   :  { %v170_v21 = vpop.xlane.xlu0 %169  ;;  %v182_v24 = vmul.f32 %v3087_v23, %v173_v20 }
  0x91   :  { %v181_v26 = vmul.f32 %v3087_v23, %v170_v21 }
  0x92   :  { %v196_v27 = vmul.f32 %v182_v24, %v182_v24  ;;  %v194_v55 = vsub.f32 %v3064_v3, %v182_v24 }
  0x93   :  { %v195_v31 = vmul.f32 %v181_v26, %v181_v26  ;;  %v193_v49 = vsub.f32 %v3066_v5, %v181_v26  ;;  %v295_v26 = vperm.slane %v266_v9, 1 }
  0x97   :  { %v190_v28 = vpop.xlane.xlu1 %189 }
  0x98   :  { %v192_v29 = vmul.f32 %v190_v28, %v3087_v23  ;;  %v187_v30 = vpop.xlane.xlu0 %186 }
  0x99   :  { %v191_v32 = vmul.f32 %v187_v30, %v3087_v23 }
  0x9a   :  { %v198_v33 = vsub.f32 %v192_v29, %v196_v27 }
  0x9b   :  { %v197_v34 = vsub.f32 %v191_v32, %v195_v31 }
  0x9c   :  { %v200_v35 = vadd.f32 1e-05, %v198_v33 }
  0x9d   :  { %v199_v36 = vadd.f32 1e-05, %v197_v34 }
  0x9e   :  { %2664 = vrsqrt.f32 %v200_v35  ;;  %vm217_vm6 = vweird.f32 %v200_v35 }
  0x9f   :  { %2666 = vrsqrt.f32 %v199_v36  ;;  %vm207_vm4 = vweird.f32 %v199_v36 }
  0xa4   :  { %v2665_v37 = vpop.eup %2664 }
  0xa5   :  { %v2667_v38 = vpop.eup %2666  ;;  %v212_v39 = vmul.f32 %v2665_v37, %v200_v35  ;;  %vm218_vm3 = vweird.f32 %v2665_v37  ;;  %v307_v35 = vperm.slane %v266_v9, 2 }
  0xa6   :  { %v202_v40 = vmul.f32 %v2667_v38, %v199_v36  ;;  %vm208_vm2 = vweird.f32 %v2667_v38  ;;  %vm219_vm7 = vmor %vm217_vm6, %vm218_vm3 }
  0xa7   :  { %v213_v41 = vmul.f32 %v2665_v37, %v212_v39  ;;  %vm209_vm5 = vmor %vm207_vm4, %vm208_vm2 }
  0xa8   :  { %v203_v42 = vmul.f32 %v2667_v38, %v202_v40 }
  0xa9   :  { %v214_v43 = vmul.f32 0.5, %v213_v41 }
  0xaa   :  { %v204_v44 = vmul.f32 0.5, %v203_v42 }
  0xab   :  { %v215_v45 = vsub.f32 1.5, %v214_v43 }
  0xac   :  { %v205_v46 = vsub.f32 1.5, %v204_v44 }
  0xad   :  { %v216_v48 = vmul.f32 %v2665_v37, %v215_v45 }
  0xae   :  { %v206_v47 = vmul.f32 %v2667_v38, %v205_v46 }
  0xaf   :  { %v220_v54 = vsel %vm219_vm7, %v2665_v37, %v216_v48  ;;  %vm360_vm7 = vcmask 523264  }
  0xb0   :  { %v210_v51 = vsel %vm209_vm5, %v2667_v38, %v206_v47  ;;  %v222_v58 = vmul.f32 %v220_v54, %v194_v55 }
  0xb1   :  { %v221_v52 = vmul.f32 %v210_v51, %v193_v49 }
  0xb2   :  { %v227_v59 = vmul.f32 %v2650_v50, %v222_v58 }
  0xb3   :  { %v226_v56 = vmul.f32 %v2650_v50, %v221_v52  ;;  %v3187_v52 = vadd.s32 64, %v3124_v6 }
  0xb4   :  { %v232_v60 = vadd.f32 %v2651_v53, %v227_v59 }
  0xb5   :  { %v231_v57 = vadd.f32 %v2651_v53, %v226_v56  ;;  %v3190_v53 = vadd.s32 72, %v3124_v6  ;;  %2554 = vset.pattern.permute.xlu0 %v3187_v52  ;;  %2550 = vset.pattern.permute.xlu2 %v3187_v52 }
  0xb7   :  { %2493 = vmatmul.msk.f32.vlgmr.msra.gmra.mxu0 %vm167_vm0, %v231_v57  ;;  %4436 = vst [vmem:[#allocation24_spill] sm:$0xff] %v3190_v53  ;;  %2553 = vset.pattern.permute.xlu1 %v3190_v53 }
  0xbf   :  { %2494 = vmatmul.msk.f32.gmra.mxu0 %vm167_vm0, %v232_v60 }
 0x134   :  { %v3129_v8 = vpop.f32.mrf.mxu0 }
 0x135   :  { %v268_v15 = vmul.f32 %v267_v13, %v3129_v8  ;;  %v276_v16 = vrot.slane %v3129_v8, 5  ;;  %v288_v17 = vrot.slane %v3129_v8, 6  ;;  %v300_v20 = vrot.slane %v3129_v8, 7 }
 0x137   :  { %v274_v33 = vadd.f32 %v2652_v25, %v268_v15 }
 0x13c   :  { %v3148_v18 = vpop.f32.mrf.mxu0 }
 0x13d   :  { %v277_v21 = vrot.slane %v3148_v18, 5  ;;  %v289_v22 = vrot.slane %v3148_v18, 6  ;;  %v301_v24 = vrot.slane %v3148_v18, 7  ;;  %v269_v30 = vmul.f32 %v267_v13, %v3148_v18 }
 0x13f   :  { %v280_v27 = vsel %vm278_vm8, %v277_v21, %v276_v16  ;;  %v292_v28 = vsel %vm290_vm11, %v289_v22, %v288_v17  ;;  %v304_v29 = vsel %vm302_vm12, %v301_v24, %v300_v20  ;;  %v279_v37 = vsel %vm278_vm8, %v276_v16, %v277_v21 }
 0x140   :  { %v281_v31 = vsel %vm157_vm10, %v280_v27, 0.0  ;;  %v293_v32 = vsel %vm155_vm9, %v292_v28, 0.0  ;;  %v305_v36 = vsel %vm153_vm13, %v304_v29, 0.0  ;;  %v291_v38 = vsel %vm290_vm11, %v288_v17, %v289_v22  ;;  %v2654_v27 = vld [vmem:[%s4398_s10] ss:$0 sm:$0xff] }
 0x141   :  { %v284_v34 = vmul.f32 %v283_v19, %v281_v31  ;;  %v303_v39 = vsel %vm302_vm12, %v300_v20, %v301_v24  ;;  %v296_v41 = vmul.f32 %v295_v26, %v293_v32  ;;  %v282_v42 = vsel %vm4405_vm15, %v279_v37, 0.0  ;;  %v441_v31 = vld [vmem:[#allocation12] sm:$0xff]  ;;  %v442_v32 = vld [vmem:[#allocation12 + $0x8] sm:$0xff] }
 0x142   :  { %v294_v43 = vsel %vm4404_vm14, %v291_v38, 0.0  ;;  %v275_v44 = vadd.f32 %v2652_v25, %v269_v30  ;;  %v285_v45 = vmul.f32 %v283_v19, %v282_v42  ;;  %v308_v47 = vmul.f32 %v307_v35, %v305_v36 }
 0x143   :  { %v286_v40 = vadd.f32 %v284_v34, %v274_v33  ;;  %v306_v48 = vsel %vm4403_vm1, %v303_v39, 0.0  ;;  %v297_v50 = vmul.f32 %v295_v26, %v294_v43  ;;  %v443_v33 = vmul.f32 1.442695, %v441_v31  ;;  %v3218_v39 = vld [vmem:[#allocation10] ss:$0 sm:$0xff] }
 0x144   :  { %v287_v49 = vadd.f32 %v285_v45, %v275_v44  ;;  %v309_v55 = vmul.f32 %v307_v35, %v306_v48  ;;  %v445_v34 = vmul.f32 1.442695, %v442_v32 }
 0x145   :  { %v298_v46 = vadd.f32 %v296_v41, %v286_v40 }
 0x146   :  { %v299_v54 = vadd.f32 %v297_v50, %v287_v49 }
 0x147   :  { %v310_v51 = vadd.f32 %v308_v47, %v298_v46  ;;  %v3234_v46 = vadd.s32 80, %v3124_v6 }
 0x148   :  { %v311_v57 = vadd.f32 %v309_v55, %v299_v54  ;;  %v3272_v55 = vadd.s32 88, %v3124_v6 }
 0x149   :  { %v2495_v56 = vmul.f32 -1.442695, %v310_v51  ;;  %4438 = vst [vmem:[#allocation26_spill] sm:$0xff] %v3234_v46 }
 0x14a   :  { %v2496_v58 = vmul.f32 -1.442695, %v311_v57  ;;  %4439 = vst [vmem:[#allocation27_spill] sm:$0xff] %v3272_v55 }
 0x14b   :  { %2668 = vpow2.f32 %v2495_v56 }
 0x14c   :  { %2670 = vpow2.f32 %v2496_v58 }
 0x151   :  { %v2669_v59 = vpop.eup %2668 }
 0x152   :  { %v318_v60 = vadd.f32 1.0, %v2669_v59  ;;  %v2671_v61 = vpop.eup %2670 }
 0x153   :  { %v319_v62 = vadd.f32 1.0, %v2671_v61 }
 0x154   :  { %2672 = vrcp.f32 %v318_v60  ;;  %v331_v4 = vand.u32 2147483648, %v318_v60  ;;  %v329_v10 = vand.u32 2147483647, %v318_v60  ;;  %vm325_vm3 = vweird.f32 %v318_v60 }
 0x155   :  { %2674 = vrcp.f32 %v319_v62  ;;  %v346_v15 = vand.u32 2147483648, %v319_v62  ;;  %v344_v19 = vand.u32 2147483647, %v319_v62  ;;  %vm340_vm1 = vweird.f32 %v319_v62 }
 0x156   :  { %v332_v16 = vor.u32 1.1754944e-38, %v331_v4  ;;  %vm330_vm6 = vcmp.eq.f32.partialorder %v329_v10, 8.507059e+37  ;;  %2676 = vpow2.f32 %v443_v33 }
 0x157   :  { %v347_v25 = vor.u32 1.1754944e-38, %v346_v15  ;;  %vm345_vm15 = vcmp.eq.f32.partialorder %v344_v19, 8.507059e+37  ;;  %2678 = vpow2.f32 %v445_v34 }
 0x15a   :  { %v2673_v63 = vpop.eup %2672 }
 0x15b   :  { %v321_v0 = vmul.f32 %v2673_v63, %v318_v60  ;;  %v2675_v1 = vpop.eup %2674  ;;  %vm326_vm2 = vweird.f32 %v2673_v63 }
 0x15c   :  { %v336_v7 = vmul.f32 %v2675_v1, %v319_v62  ;;  %vm327_vm4 = vmor %vm325_vm3, %vm326_vm2  ;;  %vm341_vm5 = vweird.f32 %v2675_v1  ;;  %v3206_v35 = vpop.eup %2676 }
 0x15d   :  { %v322_v2 = vsub.f32 1.0, %v321_v0  ;;  %vm342_vm14 = vmor %vm340_vm1, %vm341_vm5  ;;  %v3208_v36 = vpop.eup %2678  ;;  %v4407_v37 = vsub.f32 0.0, %v3206_v35 }
 0x15e   :  { %v337_v11 = vsub.f32 1.0, %v336_v7  ;;  %v4406_v38 = vsub.f32 0.0, %v3208_v36 }
 0x15f   :  { %v323_v9 = vmul.f32 %v2673_v63, %v322_v2  ;;  %451 = vrot.lane.b32.xlu2 %v4407_v37, %s2958_s19 }
 0x160   :  { %v338_v17 = vmul.f32 %v2675_v1, %v337_v11  ;;  %453 = vrot.lane.b32.xlu0 %v4406_v38, %s2958_s19 }
 0x161   :  { %v324_v13 = vadd.f32 %v2673_v63, %v323_v9 }
 0x162   :  { %v339_v22 = vadd.f32 %v2675_v1, %v338_v17 }
 0x163   :  { %v328_v20 = vsel %vm327_vm4, %v2673_v63, %v324_v13 }
 0x164   :  { %v333_v21 = vsel %vm330_vm6, %v332_v16, %v328_v20  ;;  %v343_v26 = vsel %vm342_vm14, %v2675_v1, %v339_v22 }
 0x165   :  { %v3195_v24 = vmul.f32 %v333_v21, %v310_v51  ;;  %v348_v28 = vsel %vm345_vm15, %v347_v25, %v343_v26 }
 0x166   :  { %v351_v29 = vmul.f32 %v348_v28, %v311_v57 }
 0x167   :  { %2497 = vmatmul.msk.f32.vlgmr.msra.gmra.mxu1 %vm360_vm7, %v3195_v24 }
 0x168   :  { %437 = vrot.lane.b32.xlu1 %v351_v29, %s2958_s19  ;;  %v3203_v30 = vmul.f32 %v2654_v27, %v351_v29 }
 0x16a   :  { %4437 = vst [vmem:[#allocation25_spill] sm:$0xff] %v3203_v30 }
 0x16f   :  { %2498 = vmatmul.msk.f32.gmra.mxu1 %vm360_vm7, %v351_v29 }
 0x1b9   :  { %v3342_v4 = vpop.permute.xlu2 %451 }
 0x1d2   :  { %v3381_v28 = vpop.permute.xlu0 %453 }
 0x1da   :  { %v3328_v63 = vpop.permute.xlu1 %437 }
 0x1e4   :  { %v384_v40 = vpop.f32.mrf.mxu1 }
 0x1e5   :  { %v3220_v41 = vperm.slane %v384_v40, 2  ;;  %v459_v42 = vperm.slane %v384_v40, 0  ;;  %v472_v43 = vperm.slane %v384_v40, 1  ;;  %v3224_v44 = vadd.f32 %v3218_v39, %v384_v40 }
 0x1e6   :  { %v3229_v45 = vperm.slane %v384_v40, 3  ;;  %v3239_v47 = vperm.slane %v384_v40, 4  ;;  %v3245_v48 = vperm.slane %v384_v40, 5  ;;  %v3258_v51 = vperm.slane %v384_v40, 6 }
 0x1e7   :  { %490 = vperm.xlu0 %2554, %v3220_v41   ;;  %464 = vperm.xlu2 %2550, %v459_v42   ;;  %v3289_v58 = vperm.slane %v384_v40, 7 }
 0x1e8   :  { %483 = vperm.xlu1 %2553, %v472_v43  }
 0x1ec   :  { %v3250_v49 = vpop.f32.mrf.mxu1 }
 0x1ed   :  { %v3253_v50 = vperm.slane %v3250_v49, 0  ;;  %v3264_v54 = vperm.slane %v3250_v49, 4  ;;  %v3275_v56 = vperm.slane %v3250_v49, 5  ;;  %v3284_v57 = vperm.slane %v3250_v49, 2 }
 0x1ee   :  { %v3294_v59 = vperm.slane %v3250_v49, 7  ;;  %v3302_v60 = vperm.slane %v3250_v49, 6  ;;  %v576_v61 = vperm.slane %v3250_v49, 1  ;;  %v3320_v62 = vperm.slane %v3250_v49, 3 }
 0x1ef   :  { %2557 = vset.pattern.permute.xlu0 %v3190_v53  ;;  %2551 = vset.pattern.permute.xlu2 %v3190_v53  ;;  %v395_v21 = vadd.f32 %v3218_v39, %v3250_v49 }
 0x1f0   :  { %2556 = vset.pattern.permute.xlu1 %v3187_v52 }
 0x1f1   :  { %v403_v25 = vand.u32 2147483647, %v395_v21  ;;  %vm399_vm15 = vcmp.ne.f32.partialorder %v395_v21, %v395_v21 }
 0x1f3   :  { %v405_v27 = vsub.f32 0.0, %v403_v25 }
 0x1f5   :  { %v408_v31 = vmul.f32 1.442695, %v405_v27 }
 0x1f7   :  { %509 = vperm.xlu0 %2557, %v3229_v45   ;;  %470 = vperm.xlu2 %2551, %v459_v42   ;;  %2680 = vpow2.f32 %v408_v31 }
 0x1f8   :  { %503 = vperm.xlu1 %2556, %v3229_v45  }
 0x1fd   :  { %v2681_v39 = vpop.eup %2680 }
 0x1fe   :  { %v422_v49 = vmul.f32 -0.5, %v2681_v39  ;;  %v425_v27 = vand.u32 2147483647, %v2681_v39 }
 0x1ff   :  { %2564 = vset.pattern.permute.xlu0 %v3234_v46  ;;  %2552 = vset.pattern.permute.xlu2 %v3187_v52 }
 0x200   :  { %2559 = vset.pattern.permute.xlu1 %v3190_v53  ;;  %v423_v25 = vadd.f32 1.0, %v422_v49  ;;  %vm426_vm14 = vcmp.lt.f32.partialorder %v425_v27, 0.0004427343  ;;  %v2499_v49 = vmul.f32 -1.442695, %v3129_v8 }
 0x202   :  { %v424_v31 = vmul.f32 %v2681_v39, %v423_v25  ;;  %v2500_v25 = vmul.f32 -1.442695, %v3148_v18 }
 0x207   :  { %687 = vperm.xlu0 %2564, %v459_v42   ;;  %477 = vperm.xlu2 %2552, %v472_v43  }
 0x208   :  { %522 = vperm.xlu1 %2559, %v3239_v47  }
 0x20f   :  { %735 = vperm.xlu0 %2564, %v3239_v47   ;;  %2555 = vset.pattern.permute.xlu2 %v3190_v53 }
 0x210   :  { %2560 = vset.pattern.permute.xlu1 %v3187_v52 }
 0x217   :  { %2574 = vset.pattern.permute.xlu0 %v3190_v53  ;;  %496 = vperm.xlu2 %2555, %v3220_v41  }
 0x218   :  { %529 = vperm.xlu1 %2560, %v3245_v48  }
 0x21f   :  { %2558 = vset.pattern.permute.xlu2 %v3187_v52  ;;  %574 = vperm.xlu0 %2574, %v3253_v50  }
 0x220   :  { %2563 = vset.pattern.permute.xlu1 %v3190_v53 }
 0x227   :  { %516 = vperm.xlu2 %2558, %v3239_v47   ;;  %2580 = vset.pattern.permute.xlu0 %v3187_v52 }
 0x228   :  { %548 = vperm.xlu1 %2563, %v3258_v51  }
 0x22f   :  { %2561 = vset.pattern.permute.xlu2 %v3190_v53  ;;  %620 = vperm.xlu0 %2580, %v3264_v54  }
 0x230   :  { %2566 = vset.pattern.permute.xlu1 %v3234_v46 }
 0x237   :  { %535 = vperm.xlu2 %2561, %v3245_v48   ;;  %2583 = vset.pattern.permute.xlu0 %v3190_v53 }
 0x238   :  { %699 = vperm.xlu1 %2566, %v472_v43  }
 0x23f   :  { %2562 = vset.pattern.permute.xlu2 %v3187_v52  ;;  %639 = vperm.xlu0 %2583, %v3275_v56  }
 0x240   :  { %2568 = vset.pattern.permute.xlu1 %v3272_v55 }
 0x241   :  { %v3348_v9 = vpop.permute.xlu2 %464 }
 0x247   :  { %542 = vperm.xlu2 %2562, %v3258_v51   ;;  %2589 = vset.pattern.permute.xlu0 %v3234_v46 }
 0x248   :  { %717 = vperm.xlu1 %2568, %v3220_v41  }
 0x24f   :  { %2565 = vset.pattern.permute.xlu2 %v3272_v55  ;;  %807 = vperm.xlu0 %2589, %v3284_v57  }
 0x250   :  { %2569 = vset.pattern.permute.xlu1 %v3187_v52 }
 0x251   :  { %v3354_v11 = vpop.permute.xlu2 %470 }
 0x257   :  { %693 = vperm.xlu2 %2565, %v459_v42   ;;  %2592 = vset.pattern.permute.xlu0 %v3190_v53 }
 0x258   :  { %555 = vperm.xlu1 %2569, %v3289_v58  }
 0x259   :  { %v3390_v33 = vpop.permute.xlu0 %490 }
 0x25a   :  { %v3332_v0 = vpop.permute.xlu1 %483 }
 0x25f   :  { %705 = vperm.xlu2 %2565, %v472_v43   ;;  %665 = vperm.xlu0 %2592, %v3294_v59  }
 0x260   :  { %2572 = vset.pattern.permute.xlu1 %v3272_v55 }
 0x261   :  { %v3359_v15 = vpop.permute.xlu2 %477 }
 0x267   :  { %2567 = vset.pattern.permute.xlu2 %v3234_v46  ;;  %2599 = vset.pattern.permute.xlu0 %v3234_v46 }
 0x268   :  { %729 = vperm.xlu1 %2572, %v3229_v45  }
 0x269   :  { %v510_v42 = vpop.permute.xlu0 %509 }
 0x26a   :  { %v3336_v1 = vpop.permute.xlu1 %503 }
 0x26f   :  { %711 = vperm.xlu2 %2567, %v3220_v41   ;;  %855 = vperm.xlu0 %2599, %v3302_v60   ;;  %v419_v41 = vadd.f32 1.0, %v2681_v39 }
 0x270   :  { %2575 = vset.pattern.permute.xlu1 %v3190_v53 }
 0x271   :  { %v3365_v17 = vpop.permute.xlu2 %496  ;;  %2682 = vlog2.f32 %v419_v41 }
 0x272   :  { %2684 = vpow2.f32 %v2499_v49 }
 0x273   :  { %2686 = vpow2.f32 %v2500_v25 }
 0x277   :  { %2570 = vset.pattern.permute.xlu2 %v3190_v53  ;;  %2600 = vset.pattern.permute.xlu0 %v3272_v55 }
 0x278   :  { %587 = vperm.xlu1 %2575, %v576_v61  }
 0x27a   :  { %v3340_v2 = vpop.permute.xlu1 %522 }
 0x27f   :  { %561 = vperm.xlu2 %2570, %v3289_v58   ;;  %789 = vperm.xlu0 %2600, %v3253_v50  }
 0x280   :  { %2576 = vset.pattern.permute.xlu1 %v3187_v52 }
 0x281   :  { %v3371_v20 = vpop.permute.xlu2 %516 }
 0x287   :  { %2571 = vset.pattern.permute.xlu2 %v3234_v46  ;;  %753 = vperm.xlu0 %2600, %v3245_v48  }
 0x288   :  { %594 = vperm.xlu1 %2576, %v3284_v57  }
 0x28a   :  { %v3346_v7 = vpop.permute.xlu1 %529 }
 0x28f   :  { %723 = vperm.xlu2 %2571, %v3229_v45   ;;  %873 = vperm.xlu0 %2600, %v3294_v59  }
 0x290   :  { %2579 = vset.pattern.permute.xlu1 %v3190_v53 }
 0x291   :  { %v3379_v26 = vpop.permute.xlu2 %535 }
 0x297   :  { %2573 = vset.pattern.permute.xlu2 %v3187_v52  ;;  %2604 = vset.pattern.permute.xlu0 %v3190_v53 }
 0x298   :  { %613 = vperm.xlu1 %2579, %v3320_v62  }
 0x29a   :  { %v3352_v10 = vpop.permute.xlu1 %548 }
 0x29f   :  { %568 = vperm.xlu2 %2573, %v3253_v50  }
 0x2a0   :  { %2582 = vset.pattern.permute.xlu1 %v3187_v52 }
 0x2a1   :  { %v3386_v32 = vpop.permute.xlu2 %542 }
 0x2a7   :  { %581 = vperm.xlu2 %2573, %v576_v61  }
 0x2a8   :  { %633 = vperm.xlu1 %2582, %v3275_v56  }
 0x2aa   :  { %v3357_v13 = vpop.permute.xlu1 %699 }
 0x2af   :  { %2577 = vset.pattern.permute.xlu2 %v3190_v53 }
 0x2b0   :  { %2585 = vset.pattern.permute.xlu1 %v3190_v53 }
 0x2b1   :  { %v3394_v40 = vpop.permute.xlu2 %693 }
 0x2b7   :  { %600 = vperm.xlu2 %2577, %v3284_v57  }
 0x2b8   :  { %652 = vperm.xlu1 %2585, %v3302_v60  }
 0x2ba   :  { %v3363_v16 = vpop.permute.xlu1 %717 }
 0x2bb   :  { %4440 = vst [vmem:[#allocation28_spill] sm:$0xff] %v3363_v16 }
 0x2bf   :  { %2578 = vset.pattern.permute.xlu2 %v3187_v52 }
 0x2c0   :  { %2586 = vset.pattern.permute.xlu1 %v3234_v46 }
 0x2c7   :  { %607 = vperm.xlu2 %2578, %v3320_v62  }
 0x2c8   :  { %783 = vperm.xlu1 %2586, %v3253_v50   ;;  %v3401_v50 = vpop.permute.xlu2 %705 }
 0x2ca   :  { %v3369_v19 = vpop.permute.xlu1 %555 }
 0x2cf   :  { %2581 = vset.pattern.permute.xlu2 %v3190_v53 }
 0x2d0   :  { %2588 = vset.pattern.permute.xlu1 %v3272_v55  ;;  %v3405_v38 = vpop.permute.xlu2 %711 }
 0x2d7   :  { %626 = vperm.xlu2 %2581, %v3264_v54  }
 0x2d8   :  { %801 = vperm.xlu1 %2588, %v576_v61  }
 0x2d9   :  { %v3409_v37 = vpop.permute.xlu2 %561 }
 0x2da   :  { %v3377_v22 = vpop.permute.xlu1 %729  ;;  %4442 = vst [vmem:[#allocation30_spill] sm:$0xff] %v3409_v37 }
 0x2db   :  { %4441 = vst [vmem:[#allocation29_spill] sm:$0xff] %v3377_v22 }
 0x2df   :  { %2584 = vset.pattern.permute.xlu2 %v3187_v52 }
 0x2e0   :  { %2591 = vset.pattern.permute.xlu1 %v3187_v52 }
 0x2e7   :  { %646 = vperm.xlu2 %2584, %v3302_v60  }
 0x2e8   :  { %659 = vperm.xlu1 %2591, %v3294_v59  }
 0x2e9   :  { %v3414_v39 = vpop.permute.xlu2 %723 }
 0x2ea   :  { %v3384_v29 = vpop.permute.xlu1 %587  ;;  %4443 = vst [vmem:[#allocation31_spill] sm:$0xff] %v3414_v39 }
 0x2ef   :  { %2587 = vset.pattern.permute.xlu2 %v3234_v46 }
 0x2f0   :  { %2594 = vset.pattern.permute.xlu1 %v3272_v55 }
 0x2f7   :  { %795 = vperm.xlu2 %2587, %v576_v61   ;;  %v2683_v61 = vpop.eup %2682 }
 0x2f8   :  { %825 = vperm.xlu1 %2594, %v3320_v62  }
 0x2fa   :  { %v3392_v34 = vpop.permute.xlu1 %594 }
 0x2ff   :  { %2590 = vset.pattern.permute.xlu2 %v3272_v55 }
 0x300   :  { %2596 = vset.pattern.permute.xlu1 %v3234_v46 }
 0x307   :  { %813 = vperm.xlu2 %2590, %v3284_v57   ;;  %v421_v57 = vmul.f32 0.6931472, %v2683_v61  ;;  %v3423_v61 = vpop.permute.xlu0 %687 }
 0x308   :  { %831 = vperm.xlu1 %2596, %v3264_v54  }
 0x309   :  { %v427_v41 = vsel %vm426_vm14, %v424_v31, %v421_v57 }
 0x30a   :  { %v614_v43 = vpop.permute.xlu1 %613 }
 0x30b   :  { %v3399_v45 = vsel %vm360_vm7, %v510_v42, %v614_v43  ;;  %v397_v42 = vmax.f32 %v395_v21, 0.0 }
 0x30d   :  { %v429_v43 = vadd.f32 %v427_v41, %v397_v42 }
 0x30f   :  { %2593 = vset.pattern.permute.xlu2 %v3234_v46  ;;  %v3430_v27 = vpop.permute.xlu0 %735 }
 0x310   :  { %747 = vperm.xlu1 %2596, %v3245_v48   ;;  %v431_v48 = vsel %vm399_vm15, %v395_v21, %v429_v43  ;;  %4444 = vst [vmem:[#allocation32_spill] sm:$0xff] %v3430_v27 }
 0x317   :  { %819 = vperm.xlu2 %2593, %v3320_v62   ;;  %v3418_v62 = vpop.permute.xlu2 %568  ;;  %v3436_v41 = vpop.permute.xlu0 %574 }
 0x318   :  { %2598 = vset.pattern.permute.xlu1 %v3272_v55 }
 0x31a   :  { %v3450_v12 = vpop.permute.xlu1 %633 }
 0x31f   :  { %2595 = vset.pattern.permute.xlu2 %v3272_v55  ;;  %v3427_v21 = vpop.permute.xlu2 %581 }
 0x320   :  { %849 = vperm.xlu1 %2598, %v3275_v56   ;;  %433 = vrot.lane.b32.xlu2 %v431_v48, %s2958_s19  ;;  %v402_v48 = vand.u32 2147483647, %v3224_v44 }
 0x322   :  { %v404_v25 = vsub.f32 0.0, %v402_v48 }
 0x324   :  { %v406_v53 = vmul.f32 1.442695, %v404_v25 }
 0x328   :  { %765 = vperm.xlu1 %2598, %v3258_v51   ;;  %741 = vperm.xlu2 %2595, %v3239_v47   ;;  %v2685_v47 = vpop.eup %2684 }
 0x329   :  { %v1218_v57 = vadd.f32 1.0, %v2685_v47  ;;  %v2687_v31 = vpop.eup %2686 }
 0x32a   :  { %v1219_v43 = vadd.f32 1.0, %v2687_v31  ;;  %v3455_v30 = vpop.permute.xlu1 %652 }
 0x32b   :  { %2688 = vrcp.f32 %v1218_v57  ;;  %v1231_v48 = vand.u32 2147483648, %v1218_v57  ;;  %vm1225_vm2 = vweird.f32 %v1218_v57 }
 0x32c   :  { %2690 = vrcp.f32 %v1219_v43  ;;  %vm1240_vm6 = vweird.f32 %v1219_v43  ;;  %v1244_v39 = vand.u32 2147483647, %v1219_v43 }
 0x32d   :  { %2692 = vpow2.f32 %v406_v53  ;;  %v1232_v53 = vor.u32 1.1754944e-38, %v1231_v48 }
 0x32e   :  { %vm1245_vm15 = vcmp.eq.f32.partialorder %v1244_v39, 8.507059e+37  ;;  %v396_v39 = vmax.f32 %v3224_v44, 0.0 }
 0x330   :  { %2602 = vset.pattern.permute.xlu1 %v3234_v46  ;;  %837 = vperm.xlu2 %2595, %v3264_v54   ;;  %v3434_v54 = vpop.permute.xlu2 %600 }
 0x338   :  { %771 = vperm.xlu1 %2602, %v3289_v58   ;;  %2597 = vset.pattern.permute.xlu2 %v3234_v46  ;;  %v3440_v42 = vpop.permute.xlu2 %607 }
 0x340   :  { %867 = vperm.xlu1 %2602, %v3294_v59   ;;  %843 = vperm.xlu2 %2597, %v3275_v56   ;;  %v2689_v59 = vpop.eup %2688  ;;  %v3443_v56 = vpop.permute.xlu0 %620 }
 0x341   :  { %v1221_v49 = vmul.f32 %v2689_v59, %v1218_v57  ;;  %v3446_v47 = vpop.permute.xlu2 %626  ;;  %vm1226_vm1 = vweird.f32 %v2689_v59 }
 0x342   :  { %vm1227_vm3 = vmor %vm1225_vm2, %vm1226_vm1  ;;  %vm398_vm2 = vcmp.ne.f32.partialorder %v3224_v44, %v3224_v44 }
 0x343   :  { %v1222_v46 = vsub.f32 1.0, %v1221_v49  ;;  %v1229_v49 = vand.u32 2147483647, %v1218_v57 }
 0x345   :  { %v1223_v31 = vmul.f32 %v2689_v59, %v1222_v46  ;;  %vm1230_vm4 = vcmp.eq.f32.partialorder %v1229_v49, 8.507059e+37 }
 0x347   :  { %v1224_v3 = vadd.f32 %v2689_v59, %v1223_v31 }
 0x348   :  { %759 = vperm.xlu2 %2597, %v3258_v51   ;;  %2605 = vset.pattern.permute.xlu1 %v3187_v52  ;;  %v2691_v51 = vpop.eup %2690  ;;  %v3448_v14 = vpop.permute.xlu0 %639 }
 0x349   :  { %v1236_v6 = vmul.f32 %v2691_v51, %v1219_v43  ;;  %v3453_v23 = vpop.permute.xlu2 %646  ;;  %v2693_v5 = vpop.eup %2692  ;;  %v1228_v37 = vsel %vm1227_vm3, %v2689_v59, %v1224_v3  ;;  %vm1241_vm5 = vweird.f32 %v2691_v51  ;;  %vm1186_vm3 = vcmask 1040384  }
 0x34a   :  { %v410_v22 = vadd.f32 1.0, %v2693_v5  ;;  %v1233_v31 = vsel %vm1230_vm4, %v1232_v53, %v1228_v37  ;;  %vm1242_vm14 = vmor %vm1240_vm6, %vm1241_vm5  ;;  %v416_v49 = vand.u32 2147483647, %v2693_v5  ;;  %vm1188_vm4 = vcmask 1041408  }
 0x34b   :  { %v1250_v57 = vmul.f32 %v1233_v31, %v3129_v8  ;;  %vm1190_vm5 = vcmask 1042432   ;;  %vm1192_vm6 = vcmask 1043456  }
 0x34c   :  { %2694 = vlog2.f32 %v410_v22  ;;  %vm417_vm1 = vcmp.lt.f32.partialorder %v416_v49, 0.0004427343  ;;  %v3501_v49 = vsel %vm360_vm7, %v3354_v11, %v3436_v41 }
 0x350   :  { %2601 = vset.pattern.permute.xlu2 %v3272_v55  ;;  %v1237_v55 = vsub.f32 1.0, %v1236_v6  ;;  %v808_v25 = vpop.permute.xlu0 %807  ;;  %v1246_v6 = vand.u32 2147483648, %v1219_v43 }
 0x351   :  { %v3458_v46 = vpop.permute.xlu2 %795 }
 0x352   :  { %v1247_v37 = vor.u32 1.1754944e-38, %v1246_v6  ;;  %v2695_v22 = vpop.eup %2694 }
 0x358   :  { %861 = vperm.xlu2 %2601, %v3302_v60   ;;  %v1238_v60 = vmul.f32 %v2691_v51, %v1237_v55  ;;  %v3461_v16 = vpop.permute.xlu0 %665  ;;  %v413_v55 = vmul.f32 -0.5, %v2693_v5 }
 0x35a   :  { %v1239_v27 = vadd.f32 %v2691_v51, %v1238_v60  ;;  %v414_v8 = vadd.f32 1.0, %v413_v55  ;;  %v412_v60 = vmul.f32 0.6931472, %v2695_v22 }
 0x35c   :  { %v1243_v3 = vsel %vm1242_vm14, %v2691_v51, %v1239_v27  ;;  %v415_v27 = vmul.f32 %v2693_v5, %v414_v8  ;;  %v4445_v5 = vsub.f32 0.0, %v3206_v35  ;;  %v3506_v35 = vsel %vm360_vm7, %v3371_v20, %v3443_v56 }
 0x35d   :  { %v1248_v48 = vsel %vm1245_vm15, %v1247_v37, %v1243_v3  ;;  %v672_v56 = vsel %vm360_vm7, %v3365_v17, %v3434_v54  ;;  %vm1194_vm14 = vcmask 1044480   ;;  %vm4425_vm15 = vcmask 1045504  }
 0x35e   :  { %v1251_v43 = vmul.f32 %v1248_v48, %v3148_v18  ;;  %v418_v6 = vsel %vm417_vm1, %v415_v27, %v412_v60  ;;  %v440_v18 = vsel %vm360_vm7, %v3195_v24, %v3328_v63  ;;  %v3489_v37 = vsel %vm360_vm7, %v4445_v5, %v3342_v4 }
 0x35f   :  { %v4446_v48 = vsub.f32 0.0, %v3208_v36  ;;  %v3515_v36 = vsel %vm360_vm7, %v3405_v38, %v808_v25  ;;  %v670_v4 = vsel %vm360_vm7, %v3332_v0, %v3384_v29  ;;  %v671_v0 = vsel %vm360_vm7, %v3390_v33, %v3392_v34 }
 0x360   :  { %777 = vperm.xlu2 %2601, %v3289_v58   ;;  %v3463_v58 = vpop.permute.xlu1 %783  ;;  %v3470_v53 = vpop.permute.xlu0 %855  ;;  %v667_v29 = vsel %vm360_vm7, %v3348_v9, %v3418_v62  ;;  %v3550_v33 = vsel %vm360_vm7, %v3346_v7, %v3450_v12  ;;  %v673_v9 = vsel %vm360_vm7, %v3336_v1, %v3440_v42  ;;  %v3565_v12 = vsel %vm360_vm7, %v3352_v10, %v3455_v30 }
 0x361   :  { %v3466_v59 = vpop.permute.xlu2 %813  ;;  %v3496_v8 = vsel %vm360_vm7, %v4446_v48, %v3381_v28  ;;  %vm4424_vm1 = vcmask 1046528  }
 0x368   :  { %1254 = vrot.lane.b32.xlu2 %v1250_v57, %s2958_s19  ;;  %v3472_v31 = vpop.permute.xlu1 %801  ;;  %v428_v57 = vadd.f32 %v418_v6, %v396_v39  ;;  %v790_v3 = vpop.permute.xlu0 %789  ;;  %v676_v6 = vsel %vm360_vm7, %v3340_v2, %v3446_v47 }
 0x369   :  { %2603 = vset.pattern.permute.xlu2 %v3187_v52  ;;  %v3522_v11 = vsel %vm360_vm7, %v3394_v40, %v790_v3  ;;  %v669_v40 = vsel %vm360_vm7, %v3359_v15, %v3427_v21 }
 0x36a   :  { %v430_v22 = vsel %vm398_vm2, %v3224_v44, %v428_v57  ;;  %v3511_v44 = vsel %vm360_vm7, %v3379_v26, %v3448_v14 }
 0x370   :  { %1256 = vrot.lane.b32.xlu2 %v1251_v43, %s2958_s19  ;;  %v3478_v55 = vpop.permute.xlu1 %659 }
 0x371   :  { %v3475_v51 = vpop.permute.xlu2 %819 }
 0x378   :  { %v3557_v62 = vpop.permute.xlu1 %825 }
 0x37a   :  { %v434_v63 = vpop.permute.xlu2 %433 }
 0x37b   :  { %v3525_v20 = vsel %vm360_vm7, %v430_v22, %v434_v63 }
 0x37c   :  { %v892_v28 = vrot.slane %v3525_v20, 1  ;;  %v893_v14 = vrot.slane %v3525_v20, 2  ;;  %v899_v26 = vperm.slane %v3525_v20, 0  ;;  %v3531_v38 = vmul.f32 %v440_v18, %v3525_v20 }
 0x37d   :  { %v894_v41 = vrot.slane %v3525_v20, 3  ;;  %v895_v34 = vrot.slane %v3525_v20, 4  ;;  %v896_v57 = vrot.slane %v3525_v20, 5 }
 0x37e   :  { %v900_v25 = vperm.slane %v892_v28, 0  ;;  %v901_v43 = vperm.slane %v893_v14, 0  ;;  %v915_v60 = vmul.f32 %v899_v26, %v3489_v37  ;;  %v916_v15 = vmul.f32 %v899_v26, %v3496_v8 }
 0x37f   :  { %v981_v54 = vrot.slane %v3531_v38, 1  ;;  %v982_v27 = vrot.slane %v3531_v38, 2  ;;  %v902_v7 = vperm.slane %v894_v41, 0  ;;  %v983_v42 = vrot.slane %v3531_v38, 3 }
 0x380   :  { %v917_v17 = vmul.f32 %v900_v25, %v3489_v37  ;;  %v931_v21 = vmul.f32 1.442695, %v915_v60  ;;  %v919_v1 = vmul.f32 %v901_v43, %v3489_v37  ;;  %v918_v3 = vmul.f32 %v900_v25, %v3496_v8 }
 0x381   :  { %v903_v18 = vperm.slane %v895_v34, 0  ;;  %v984_v5 = vrot.slane %v3531_v38, 4  ;;  %v988_v30 = vperm.slane %v3531_v38, 0  ;;  %v933_v10 = vmul.f32 1.442695, %v916_v15 }
 0x382   :  { %2696 = vpow2.f32 %v931_v21  ;;  %v935_v39 = vmul.f32 1.442695, %v917_v17  ;;  %v989_v22 = vperm.slane %v981_v54, 0  ;;  %v990_v48 = vperm.slane %v982_v27, 0 }
 0x383   :  { %v991_v63 = vperm.slane %v983_v42, 0  ;;  %v939_v28 = vmul.f32 1.442695, %v919_v1  ;;  %v921_v14 = vmul.f32 %v902_v7, %v3489_v37  ;;  %v3577_v26 = vperm.slane %v984_v5, 0 }
 0x384   :  { %v1004_v2 = vmul.f32 %v988_v30, %v667_v29  ;;  %2698 = vpow2.f32 %v935_v39  ;;  %v1006_v47 = vmul.f32 %v989_v22, %v669_v40  ;;  %v3579_v41 = vmul.f32 %v989_v22, %v670_v4  ;;  %v3595_v29 = vpop.permute.xlu1 %831 }
 0x385   :  { %v3581_v25 = vmul.f32 %v990_v48, %v672_v56  ;;  %v937_v60 = vmul.f32 1.442695, %v918_v3  ;;  %v923_v34 = vmul.f32 %v903_v18, %v3489_v37  ;;  %v3584_v17 = vmul.f32 %v991_v63, %v673_v9 }
 0x386   :  { %v3587_v15 = vmul.f32 %v3577_v26, %v676_v6  ;;  %v875_v54 = vsel %vm360_vm7, %v3423_v61, %v3463_v58  ;;  %v679_v4 = vsel %vm360_vm7, %v3386_v32, %v3453_v23  ;;  %v920_v40 = vmul.f32 %v901_v43, %v3496_v8 }
 0x387   :  { %v897_v56 = vrot.slane %v3525_v20, 6  ;;  %v943_v9 = vmul.f32 1.442695, %v921_v14  ;;  %2700 = vpow2.f32 %v933_v10  ;;  %v1008_v1 = vmul.f32 %v990_v48, %v671_v0 }
 0x388   :  { %v2697_v21 = vpop.eup %2696  ;;  %v3602_v42 = vsel %vm360_vm7, %v3401_v50, %v3472_v31  ;;  %v877_v61 = vsel %vm360_vm7, %v3357_v13, %v3458_v46  ;;  %2702 = vpow2.f32 %v939_v28  ;;  %v3608_v23 = vmul.f32 %v991_v63, %v3399_v45  ;;  %v3613_v46 = vpop.permute.xlu2 %741 }
 0x389   :  { %v1038_v27 = vmul.f32 0.0, %v2697_v21  ;;  %2704 = vpow2.f32 %v937_v60  ;;  %v947_v32 = vmul.f32 1.442695, %v923_v34  ;;  %v904_v43 = vperm.slane %v896_v57, 0 }
 0x38a   :  { %v2699_v6 = vpop.eup %2698  ;;  %v922_v0 = vmul.f32 %v902_v7, %v3496_v8  ;;  %v941_v39 = vmul.f32 1.442695, %v920_v40  ;;  %v985_v3 = vrot.slane %v3531_v38, 5  ;;  %v986_v50 = vrot.slane %v3531_v38, 6 }
 0x38b   :  { %v1042_v58 = vadd.f32 %v1038_v27, %v1004_v2  ;;  %2706 = vpow2.f32 %v943_v9  ;;  %v905_v13 = vperm.slane %v897_v56, 0  ;;  %v925_v10 = vmul.f32 %v904_v43, %v3489_v37 }
 0x38c   :  { %v3615_v45 = vperm.slane %v985_v3, 0  ;;  %v994_v22 = vperm.slane %v986_v50, 0  ;;  %v898_v57 = vrot.slane %v3525_v20, 7  ;;  %2708 = vpow2.f32 %v947_v32 }
 0x38d   :  { %v1056_v31 = vmul.f32 %v2699_v6, %v1042_v58  ;;  %v1044_v5 = vmul.f32 %v1042_v58, %v875_v54  ;;  %v2701_v48 = vpop.eup %2700  ;;  %v924_v63 = vmul.f32 %v903_v18, %v3496_v8  ;;  %v1005_v28 = vmul.f32 %v988_v30, %v3501_v49  ;;  %v4448_v6 = vld [vmem:[#allocation31_spill] sm:$0xff] }
 0x38e   :  { %v2703_v14 = vpop.eup %2702  ;;  %2710 = vpow2.f32 %v941_v39  ;;  %v945_v2 = vmul.f32 1.442695, %v922_v0  ;;  %v1039_v60 = vmul.f32 0.0, %v2701_v48  ;;  %v3623_v34 = vmul.f32 %v3615_v45, %v3550_v33 }
 0x38f   :  { %v1061_v7 = vadd.f32 %v1056_v31, %v1006_v47  ;;  %v2705_v21 = vpop.eup %2704  ;;  %v926_v20 = vmul.f32 %v904_v43, %v3496_v8  ;;  %v3626_v56 = vmul.f32 %v994_v22, %v679_v4  ;;  %v3628_v47 = vpop.permute.xlu1 %747  ;;  %v951_v9 = vmul.f32 1.442695, %v925_v10  ;;  %v4447_v4 = vld [vmem:[#allocation28_spill] sm:$0xff] }
 0x390   :  { %v1043_v18 = vadd.f32 %v1039_v60, %v1005_v28  ;;  %v927_v49 = vmul.f32 %v905_v13, %v3489_v37  ;;  %v906_v30 = vperm.slane %v898_v57, 0  ;;  %v3634_v33 = vsel %vm360_vm7, %v3369_v19, %v3478_v55  ;;  %v838_v48 = vpop.permute.xlu2 %837 }
 0x391   :  { %v1063_v54 = vmul.f32 %v1061_v7, %v877_v61  ;;  %v1075_v40 = vmul.f32 %v2703_v14, %v1061_v7  ;;  %v2707_v27 = vpop.eup %2706  ;;  %v949_v32 = vmul.f32 1.442695, %v924_v63  ;;  %v3637_v58 = vmul.f32 %v994_v22, %v3565_v12 }
 0x392   :  { %v880_v43 = vsel %vm360_vm7, %v4447_v4, %v3466_v59  ;;  %v881_v0 = vsel %vm360_vm7, %v4448_v6, %v3475_v51  ;;  %v1045_v39 = vmul.f32 %v1043_v18, %v3522_v11  ;;  %v1057_v3 = vmul.f32 %v2705_v21, %v1043_v18  ;;  %v2709_v50 = vpop.eup %2708  ;;  %v4449_v59 = vld [vmem:[#allocation32_spill] sm:$0xff] }
 0x393   :  { %v1080_v61 = vadd.f32 %v1075_v40, %v1008_v1  ;;  %2712 = vpow2.f32 %v945_v2  ;;  %v953_v55 = vmul.f32 1.442695, %v926_v20  ;;  %v929_v1 = vmul.f32 %v906_v30, %v3489_v37 }
 0x394   :  { %v2711_v31 = vpop.eup %2710  ;;  %v1046_v12 = vadd.f32 %v1045_v39, %v1044_v5  ;;  %v1062_v10 = vadd.f32 %v1057_v3, %v3579_v41  ;;  %2714 = vpow2.f32 %v951_v9  ;;  %v955_v22 = vmul.f32 1.442695, %v927_v49  ;;  %v4450_v39 = vld [vmem:[#allocation29_spill] sm:$0xff] }
 0x395   :  { %v1094_v19 = vmul.f32 %v2707_v27, %v1080_v61  ;;  %v883_v57 = vsel %vm360_vm7, %v4449_v59, %v3595_v29  ;;  %2716 = vpow2.f32 %v949_v32  ;;  %v987_v11 = vrot.slane %v3531_v38, 7 }
 0x396   :  { %v1047_v7 = vrot.slane %v1046_v12, 4  ;;  %v1064_v63 = vmul.f32 %v1062_v10, %v3602_v42  ;;  %v1076_v37 = vmul.f32 %v2711_v31, %v1062_v10  ;;  %v928_v5 = vmul.f32 %v905_v13, %v3496_v8 }
 0x397   :  { %v1099_v51 = vadd.f32 %v1094_v19, %v3584_v17  ;;  %v1012_v41 = vmul.f32 %v3577_v26, %v3506_v35  ;;  %2718 = vpow2.f32 %v953_v55  ;;  %v959_v14 = vmul.f32 1.442695, %v929_v1  ;;  %v3659_v60 = vpop.permute.xlu1 %849 }
 0x398   :  { %v1065_v2 = vadd.f32 %v1064_v63, %v1063_v54  ;;  %v1081_v29 = vadd.f32 %v1076_v37, %v3581_v25  ;;  %v1082_v17 = vmul.f32 %v1080_v61, %v3515_v36  ;;  %2720 = vpow2.f32 %v955_v22 }
 0x399   :  { %v1113_v28 = vmul.f32 %v2709_v50, %v1099_v51  ;;  %v2713_v38 = vpop.eup %2712  ;;  %v3661_v42 = vperm.slane %v987_v11, 0  ;;  %v930_v13 = vmul.f32 %v906_v30, %v3496_v8  ;;  %v1048_v40 = vadd.f32 %v1047_v7, %v1046_v12 }
 0x39a   :  { %v2715_v20 = vpop.eup %2714  ;;  %v1066_v35 = vrot.slane %v1065_v2, 4  ;;  %v1083_v26 = vmul.f32 %v1081_v29, %v880_v43  ;;  %v1095_v18 = vmul.f32 %v2713_v38, %v1081_v29  ;;  %v957_v9 = vmul.f32 1.442695, %v928_v5  ;;  %v844_v12 = vpop.permute.xlu2 %843 }
 0x39b   :  { %v1118_v21 = vadd.f32 %v1113_v28, %v1012_v41  ;;  %v2717_v54 = vpop.eup %2716  ;;  %2722 = vpow2.f32 %v959_v14  ;;  %v1049_v36 = vrot.slane %v1048_v40, 2  ;;  %v1101_v4 = vmul.f32 %v1099_v51, %v881_v0 }
 0x39c   :  { %v1067_v27 = vadd.f32 %v1066_v35, %v1065_v2  ;;  %v1084_v32 = vadd.f32 %v1083_v26, %v1082_v17  ;;  %v1100_v61 = vadd.f32 %v1095_v18, %v3608_v23  ;;  %v882_v8 = vsel %vm360_vm7, %v4450_v39, %v3557_v62  ;;  %v4451_v17 = vld [vmem:[#allocation30_spill] sm:$0xff] }
 0x39d   :  { %v1120_v49 = vmul.f32 %v1118_v21, %v883_v57  ;;  %v1132_v25 = vmul.f32 %v2715_v20, %v1118_v21  ;;  %v2719_v6 = vpop.eup %2718  ;;  %v884_v30 = vsel %vm360_vm7, %v3613_v46, %v838_v48  ;;  %v961_v3 = vmul.f32 1.442695, %v930_v13 }
 0x39e   :  { %v2721_v50 = vpop.eup %2720  ;;  %v1068_v19 = vrot.slane %v1067_v27, 2  ;;  %v1085_v55 = vrot.slane %v1084_v32, 4  ;;  %v1102_v1 = vmul.f32 %v1100_v61, %v882_v8  ;;  %v1114_v31 = vmul.f32 %v2717_v54, %v1100_v61 }
 0x39f   :  { %v1137_v43 = vadd.f32 %v1132_v25, %v3623_v34  ;;  %v1015_v23 = vmul.f32 %v3615_v45, %v3511_v44  ;;  %2724 = vpow2.f32 %v957_v9  ;;  %v1050_v10 = vadd.f32 %v1049_v36, %v1048_v40  ;;  %v766_v63 = vpop.permute.xlu1 %765 }
 0x3a0   :  { %v1086_v22 = vadd.f32 %v1085_v55, %v1084_v32  ;;  %v1103_v62 = vadd.f32 %v1102_v1, %v1101_v4  ;;  %v1119_v59 = vadd.f32 %v1114_v31, %v3587_v15  ;;  %v1018_v46 = vmul.f32 %v3661_v42, %v3634_v33  ;;  %v754_v33 = vpop.permute.xlu0 %753 }
 0x3a1   :  { %v1151_v0 = vmul.f32 %v2721_v50, %v1137_v43  ;;  %v2723_v34 = vpop.eup %2722  ;;  %v885_v57 = vsel %vm360_vm7, %v3628_v47, %v844_v12  ;;  %2726 = vpow2.f32 %v961_v3  ;;  %v1069_v11 = vadd.f32 %v1068_v19, %v1067_v27 }
 0x3a2   :  { %v1087_v44 = vrot.slane %v1086_v22, 2  ;;  %v1104_v45 = vrot.slane %v1103_v62, 4  ;;  %v1121_v48 = vmul.f32 %v1119_v59, %v884_v30  ;;  %v1133_v7 = vmul.f32 %v2719_v6, %v1119_v59 }
 0x3a3   :  { %v3679_v51 = vadd.f32 %v1151_v0, %v3626_v56  ;;  %v1139_v37 = vmul.f32 %v1137_v43, %v885_v57  ;;  %v1051_v5 = vrot.slane %v1050_v10, 1  ;;  %v1070_v41 = vrot.slane %v1069_v11, 1  ;;  %v1269_v56 = vld [vmem:[%s4399_s11 + $0x38] sm:$0xff] }
 0x3a4   :  { %v1088_v28 = vadd.f32 %v1087_v44, %v1086_v22  ;;  %v1105_v14 = vadd.f32 %v1104_v45, %v1103_v62  ;;  %v1122_v2 = vadd.f32 %v1121_v48, %v1120_v49  ;;  %v1138_v47 = vadd.f32 %v1133_v7, %v1015_v23  ;;  %1284 = vmatpush.msra.mxu2 %v1269_v56  ;;  %v1264_v45 = vld [vmem:[%s4399_s11 + $0x10] sm:$0xff] }
 0x3a5   :  { %v1170_v15 = vmul.f32 %v2723_v34, %v3679_v51  ;;  %v2725_v29 = vpop.eup %2724  ;;  %v682_v38 = vsel %vm360_vm7, %v4451_v17, %v3461_v16  ;;  %v886_v21 = vsel %vm360_vm7, %v754_v33, %v3659_v60  ;;  %v1052_v9 = vadd.f32 %v1051_v5, %v1050_v10  ;;  %v760_v16 = vpop.permute.xlu2 %759  ;;  %v1266_v10 = vld [vmem:[%s4399_s11 + $0x20] sm:$0xff]  ;;  %v1265_v34 = vld [vmem:[%s4399_s11 + $0x18] sm:$0xff] }
 0x3a6   :  { %v1106_v40 = vrot.slane %v1105_v14, 2  ;;  %v1123_v20 = vrot.slane %v1122_v2, 4  ;;  %v1140_v35 = vmul.f32 %v1138_v47, %v886_v21  ;;  %v1152_v26 = vmul.f32 %v2725_v29, %v1138_v47 }
 0x3a7   :  { %v3690_v13 = vadd.f32 %v1170_v15, %v1018_v46  ;;  %v2727_v18 = vpop.eup %2726  ;;  %v1071_v54 = vadd.f32 %v1070_v41, %v1069_v11  ;;  %v1089_v49 = vrot.slane %v1088_v28, 1  ;;  %v1019_v60 = vmul.f32 %v3661_v42, %v682_v38  ;;  %v1267_v42 = vld [vmem:[%s4399_s11 + $0x28] sm:$0xff]  ;;  %v1262_v41 = vld [vmem:[%s4399_s11] sm:$0xff] }
 0x3a8   :  { %v1107_v25 = vadd.f32 %v1106_v40, %v1105_v14  ;;  %v1124_v36 = vadd.f32 %v1123_v20, %v1122_v2  ;;  %v1141_v27 = vadd.f32 %v1140_v35, %v1139_v37  ;;  %v1157_v32 = vadd.f32 %v1152_v26, %v3637_v58  ;;  %v1268_v58 = vld [vmem:[%s4399_s11 + $0x30] sm:$0xff]  ;;  %v874_v33 = vpop.permute.xlu0 %873 }
 0x3a9   :  { %v1090_v61 = vadd.f32 %v1089_v49, %v1088_v28  ;;  %v1187_v4 = vsel %vm1186_vm3, %v1052_v9, %v1071_v54  ;;  %1285 = vmatpush.msra.mxu2 %v1268_v58  ;;  %v887_v0 = vsel %vm360_vm7, %v760_v16, %v3470_v53 }
 0x3aa   :  { %v1108_v6 = vrot.slane %v1107_v25, 1  ;;  %v1125_v39 = vrot.slane %v1124_v36, 2  ;;  %v1142_v8 = vrot.slane %v1141_v27, 4  ;;  %v772_v30 = vpop.permute.xlu1 %771  ;;  %v1171_v43 = vmul.f32 %v2727_v18, %v1157_v32 }
 0x3ab   :  { %v1189_v3 = vsel %vm1188_vm4, %v1187_v4, %v1090_v61  ;;  %1286 = vmatpush.msra.mxu2 %v1267_v42  ;;  %v1158_v11 = vmul.f32 %v3679_v51, %v887_v0  ;;  %v4452_v61 = vld [vmem:[#allocation25_spill] sm:$0xff]  ;;  %v2505_v42 = vld [vmem:[%s4392_s4 + $0x20] sm:$0xff] }
 0x3ac   :  { %v1126_v50 = vadd.f32 %v1125_v39, %v1124_v36  ;;  %v1143_v19 = vadd.f32 %v1142_v8, %v1141_v27  ;;  %v1176_v55 = vadd.f32 %v1171_v43, %v1019_v60  ;;  %v1109_v1 = vadd.f32 %v1108_v6, %v1107_v25 }
 0x3ad   :  { %1287 = vmatpush.msra.mxu2 %v1266_v10 }
 0x3ae   :  { %v1127_v31 = vrot.slane %v1126_v50, 1  ;;  %v1144_v12 = vrot.slane %v1143_v19, 2  ;;  %v1191_v23 = vsel %vm1190_vm5, %v1189_v3, %v1109_v1  ;;  %v2506_v1 = vld [vmem:[%s4392_s4 + $0x28] sm:$0xff] }
 0x3af   :  { %1288 = vmatpush.msra.mxu2 %v1265_v34 }
 0x3b0   :  { %v1128_v22 = vadd.f32 %v1127_v31, %v1126_v50  ;;  %v1145_v62 = vadd.f32 %v1144_v12, %v1143_v19  ;;  %v2508_v19 = vld [vmem:[%s4392_s4 + $0x38] sm:$0xff] }
 0x3b1   :  { %1289 = vmatpush.msra.mxu2 %v1264_v45  ;;  %1384 = vmatpush.msra.mxu3 %v2508_v19  ;;  %v4455_v31 = vld [vmem:[#allocation18_spill] sm:$0xff] }
 0x3b2   :  { %v862_v59 = vpop.permute.xlu2 %861  ;;  %v1146_v57 = vrot.slane %v1145_v62, 1  ;;  %v1193_v53 = vsel %vm1192_vm6, %v1191_v23, %v1128_v22  ;;  %v868_v7 = vpop.permute.xlu1 %867  ;;  %v4457_v22 = vld [vmem:[#allocation20_spill] sm:$0xff] }
 0x3b3   :  { %v888_v46 = vsel %vm360_vm7, %v766_v63, %v862_v59  ;;  %v1263_v63 = vld [vmem:[%s4399_s11 + $0x8] sm:$0xff]  ;;  %v889_v5 = vsel %vm360_vm7, %v772_v30, %v868_v7 }
 0x3b4   :  { %v1159_v44 = vmul.f32 %v1157_v32, %v888_v46  ;;  %v1147_v48 = vadd.f32 %v1146_v57, %v1145_v62  ;;  %1290 = vmatpush.msra.mxu2 %v1263_v63  ;;  %v1177_v47 = vmul.f32 %v3690_v13, %v889_v5  ;;  %v2796_v13 = vld [vmem:[%s4398_s10] ss:$0 sm:$0xff]  ;;  %v4453_v30 = vld [vmem:[#allocation19_spill] sm:$0xff] }
 0x3b5   :  { %v1208_v25 = vmul.f32 %v2796_v13, %v3195_v24 }
 0x3b6   :  { %v1160_v37 = vadd.f32 %v1159_v44, %v1158_v11  ;;  %v1195_v51 = vsel %vm1194_vm14, %v1193_v53, %v1147_v48  ;;  %1291 = vmatpush.msra.mxu2 %v1262_v41 }
 0x3b8   :  { %v1161_v15 = vrot.slane %v1160_v37, 4 }
 0x3ba   :  { %v1162_v28 = vadd.f32 %v1161_v15, %v1160_v37  ;;  %v778_v14 = vpop.permute.xlu2 %777 }
 0x3bb   :  { %v890_v2 = vsel %vm360_vm7, %v778_v14, %v874_v33  ;;  %v2656_v33 = vld [vmem:[%s4391_s3 + $0x1] ss:$0 sm:$0xff] }
 0x3bc   :  { %v1163_v56 = vrot.slane %v1162_v28, 2  ;;  %v1178_v29 = vmul.f32 %v1176_v55, %v890_v2  ;;  %v2507_v55 = vld [vmem:[%s4392_s4 + $0x30] sm:$0xff] }
 0x3bd   :  { %1385 = vmatpush.msra.mxu3 %v2507_v55 }
 0x3be   :  { %v1164_v17 = vadd.f32 %v1163_v56, %v1162_v28  ;;  %v1179_v38 = vadd.f32 %v1178_v29, %v1177_v47 }
 0x3bf   :  { %1386 = vmatpush.msra.mxu3 %v2506_v1 }
 0x3c0   :  { %v1165_v21 = vrot.slane %v1164_v17, 1  ;;  %v1180_v40 = vrot.slane %v1179_v38, 4 }
 0x3c1   :  { %1387 = vmatpush.msra.mxu3 %v2505_v42 }
 0x3c2   :  { %v1181_v20 = vadd.f32 %v1180_v40, %v1179_v38  ;;  %v1166_v35 = vadd.f32 %v1165_v21, %v1164_v17  ;;  %v1255_v16 = vpop.permute.xlu2 %1254 }
 0x3c4   :  { %v1182_v26 = vrot.slane %v1181_v20, 2  ;;  %v1197_v18 = vsel %vm4425_vm15, %v1195_v51, %v1166_v35  ;;  %v2655_v51 = vld [vmem:[%s4390_s2 + $0x1] ss:$0 sm:$0xff] }
 0x3c6   :  { %v1183_v9 = vadd.f32 %v1182_v26, %v1181_v20 }
 0x3c8   :  { %v1184_v54 = vrot.slane %v1183_v9, 1 }
 0x3ca   :  { %v1185_v49 = vadd.f32 %v1184_v54, %v1183_v9  ;;  %v1257_v6 = vpop.permute.xlu2 %1256 }
 0x3cc   :  { %v1199_v36 = vsel %vm4424_vm1, %v1197_v18, %v1185_v49 }
 0x3cd   :  { %v1210_v27 = vadd.f32 %v1208_v25, %v1199_v36  ;;  %1201 = vrot.lane.b32.xlu1 %v1199_v36, %s2958_s19 }
 0x3cf   :  { %v1260_v32 = vmul.f32 %v1255_v16, %v1210_v27  ;;  %v2521_v27 = vld [vmem:[%s4395_s7 + $0x78] sm:$0xff]  ;;  %v2520_v16 = vld [vmem:[%s4395_s7 + $0x70] sm:$0xff] }
 0x3d0   :  { %1503 = vmatpush.msrb.mxu0 %v2521_v27 }
 0x3d1   :  { %2501 = vmatmul.msk.f32.vlgmr.msra.gmra.mxu2 %vm360_vm7, %v1260_v32  ;;  %v2519_v32 = vld [vmem:[%s4395_s7 + $0x68] sm:$0xff] }
 0x3d2   :  { %1504 = vmatpush.msrb.mxu0 %v2520_v16 }
 0x3d4   :  { %1505 = vmatpush.msrb.mxu0 %v2519_v32 }
 0x43f   :  { %v1202_v60 = vpop.permute.xlu1 %1201 }
 0x440   :  { %v1211_v4 = vadd.f32 %v4452_v61, %v1202_v60  ;;  %v2518_v60 = vld [vmem:[%s4395_s7 + $0x60] sm:$0xff]  ;;  %v2517_v61 = vld [vmem:[%s4395_s7 + $0x58] sm:$0xff] }
 0x441   :  { %1506 = vmatpush.msrb.mxu0 %v2518_v60 }
 0x442   :  { %v1261_v39 = vmul.f32 %v1257_v6, %v1211_v4  ;;  %v2516_v4 = vld [vmem:[%s4395_s7 + $0x50] sm:$0xff]  ;;  %v2515_v6 = vld [vmem:[%s4395_s7 + $0x48] sm:$0xff] }
 0x443   :  { %1507 = vmatpush.msrb.mxu0 %v2517_v61 }
 0x444   :  { %2502 = vmatmul.msk.f32.gmra.mxu2 %vm360_vm7, %v1261_v39 }
 0x445   :  { %1508 = vmatpush.msrb.mxu0 %v2516_v4 }
 0x447   :  { %1509 = vmatpush.msrb.mxu0 %v2515_v6 }
 0x454   :  { %v1293_v8 = vpop.f32.mrf.mxu2 }
 0x455   :  { %v3738_v43 = vadd.f32 %v1293_v8, %v4453_v30  ;;  %v1396_v8 = vld [vmem:[#allocation9 + $0x4] sm:$0xf] }
 0x456   :  { %v2514_v30 = vld [vmem:[%s4395_s7 + $0x40] sm:$0xff]  ;;  %v1413_v42 = vperm.slane %v1396_v8, 0 }
 0x457   :  { %4454 = vst [vmem:[#allocation28_spill] sm:$0xff] %v3738_v43  ;;  %v1303_v24 = vsel %vm167_vm0, %v3738_v43, 0.0  ;;  %v1311_v3 = vmul.f32 %v3738_v43, %v3738_v43  ;;  %1510 = vmatpush.msrb.mxu0 %v2514_v30 }
 0x458   :  { %1304 = vadd.xlane.f32.xlu1 %v1303_v24  ;;  %v1397_v24 = vperm.slane %v1396_v8, 3 }
 0x459   :  { %v1313_v50 = vsel %vm167_vm0, %v1311_v3, 0.0 }
 0x45a   :  { %1314 = vadd.xlane.f32.xlu0 %v1313_v50  ;;  %v2657_v50 = vld [vmem:[%s4394_s6 + $0x1] ss:$0 sm:$0xff]  ;;  %s2478_s6 = sshll.u32 %s4402_s14, 4  ;;  %s2479_s6 = int_to_ptr.hbm [resolvable:$true] %s2478_s6 }
 0x4c7   :  { %v1296_v58 = vpop.f32.mrf.mxu2 }
 0x4c8   :  { %v3758_v12 = vadd.f32 %v1296_v58, %v4455_v31 }
 0x4ca   :  { %4456 = vst [vmem:[#allocation31_spill] sm:$0xff] %v3758_v12  ;;  %v1306_v23 = vsel %vm167_vm0, %v3758_v12, 0.0  ;;  %v1312_v0 = vmul.f32 %v3758_v12, %v3758_v12 }
 0x4cb   :  { %1307 = vadd.xlane.f32.xlu2 %v1306_v23  ;;  %v1305_v10 = vpop.xlane.xlu1 %1304 }
 0x4cc   :  { %v1309_v62 = vmul.f32 %v1305_v10, %v4457_v22  ;;  %v1316_v59 = vsel %vm167_vm0, %v1312_v0, 0.0 }
 0x4cd   :  { %v1315_v46 = vpop.xlane.xlu0 %1314  ;;  %1317 = vadd.xlane.f32.xlu1 %v1316_v59 }
 0x4ce   :  { %v1323_v34 = vmul.f32 %v1309_v62, %v1309_v62  ;;  %v1319_v57 = vmul.f32 %v1315_v46, %v4457_v22  ;;  %v1321_v15 = vsub.f32 %v3738_v43, %v1309_v62 }
 0x4d0   :  { %v1325_v11 = vsub.f32 %v1319_v57, %v1323_v34  ;;  %v1424_v34 = vperm.slane %v1396_v8, 1 }
 0x4d2   :  { %v1327_v44 = vadd.f32 1e-05, %v1325_v11 }
 0x4d4   :  { %2728 = vrsqrt.f32 %v1327_v44  ;;  %vm1335_vm1 = vweird.f32 %v1327_v44 }
 0x4da   :  { %v2729_v53 = vpop.eup %2728 }
 0x4db   :  { %v1330_v45 = vmul.f32 %v2729_v53, %v1327_v44  ;;  %vm1336_vm2 = vweird.f32 %v2729_v53 }
 0x4dc   :  { %vm1337_vm15 = vmor %vm1335_vm1, %vm1336_vm2 }
 0x4dd   :  { %v1331_v48 = vmul.f32 %v2729_v53, %v1330_v45 }
 0x4df   :  { %v1332_v7 = vmul.f32 0.5, %v1331_v48 }
 0x4e1   :  { %v1333_v37 = vsub.f32 1.5, %v1332_v7  ;;  %v1435_v7 = vperm.slane %v1396_v8, 2 }
 0x4e3   :  { %v1334_v63 = vmul.f32 %v2729_v53, %v1333_v37 }
 0x4e5   :  { %v1338_v5 = vsel %vm1337_vm15, %v2729_v53, %v1334_v63 }
 0x4e6   :  { %v1349_v41 = vmul.f32 %v1338_v5, %v1321_v15 }
 0x4e8   :  { %v1354_v28 = vmul.f32 %v2655_v51, %v1349_v41 }
 0x4ea   :  { %v1359_v14 = vadd.f32 %v2656_v33, %v1354_v28 }
 0x4ec   :  { %2509 = vmatmul.msk.f32.vlgmr.msra.gmra.mxu3 %vm167_vm0, %v1359_v14 }
 0x53e   :  { %v1308_v2 = vpop.xlane.xlu2 %1307 }
 0x53f   :  { %v1310_v47 = vmul.f32 %v1308_v2, %v4457_v22 }
 0x540   :  { %v1318_v56 = vpop.xlane.xlu1 %1317 }
 0x541   :  { %v1324_v29 = vmul.f32 %v1310_v47, %v1310_v47  ;;  %v1320_v17 = vmul.f32 %v1318_v56, %v4457_v22  ;;  %v1322_v54 = vsub.f32 %v3758_v12, %v1310_v47 }
 0x543   :  { %v1326_v38 = vsub.f32 %v1320_v17, %v1324_v29 }
 0x545   :  { %v1328_v21 = vadd.f32 1e-05, %v1326_v38 }
 0x547   :  { %2730 = vrsqrt.f32 %v1328_v21  ;;  %vm1345_vm1 = vweird.f32 %v1328_v21 }
 0x54d   :  { %v2731_v40 = vpop.eup %2730 }
 0x54e   :  { %v1340_v20 = vmul.f32 %v2731_v40, %v1328_v21  ;;  %vm1346_vm15 = vweird.f32 %v2731_v40 }
 0x54f   :  { %vm1347_vm2 = vmor %vm1345_vm1, %vm1346_vm15 }
 0x550   :  { %v1341_v35 = vmul.f32 %v2731_v40, %v1340_v20 }
 0x552   :  { %v1342_v26 = vmul.f32 0.5, %v1341_v35 }
 0x554   :  { %v1343_v18 = vsub.f32 1.5, %v1342_v26 }
 0x556   :  { %v1344_v9 = vmul.f32 %v2731_v40, %v1343_v18 }
 0x558   :  { %v1348_v49 = vsel %vm1347_vm2, %v2731_v40, %v1344_v9 }
 0x559   :  { %v1350_v13 = vmul.f32 %v1348_v49, %v1322_v54 }
 0x55b   :  { %v1355_v25 = vmul.f32 %v2655_v51, %v1350_v13  ;;  %v4460_v51 = vld [vmem:[#allocation23_spill] sm:$0xff] }
 0x55c   :  { %vm4461_vm15 = vcmp.ge.s32.totalorder %v4460_v51, 3 }
 0x55d   :  { %v1360_v36 = vadd.f32 %v2656_v33, %v1355_v25 }
 0x55f   :  { %2510 = vmatmul.msk.f32.gmra.mxu3 %vm167_vm0, %v1360_v36 }
 0x56f   :  { %v3800_v39 = vpop.f32.mrf.mxu3 }
 0x570   :  { %v1398_v3 = vmul.f32 %v1397_v24, %v3800_v39  ;;  %v1407_v19 = vrot.slane %v3800_v39, 5  ;;  %v1418_v55 = vrot.slane %v3800_v39, 6  ;;  %v1429_v1 = vrot.slane %v3800_v39, 7 }
 0x572   :  { %v1405_v11 = vadd.f32 %v2657_v50, %v1398_v3 }
 0x5e2   :  { %v3812_v58 = vpop.f32.mrf.mxu3 }
 0x5e3   :  { %v1399_v31 = vmul.f32 %v1397_v24, %v3812_v58  ;;  %v1408_v23 = vrot.slane %v3812_v58, 5  ;;  %v1419_v0 = vrot.slane %v3812_v58, 6  ;;  %v1430_v10 = vrot.slane %v3812_v58, 7 }
 0x5e5   :  { %v1410_v59 = vsel %vm278_vm8, %v1408_v23, %v1407_v19  ;;  %v1421_v46 = vsel %vm290_vm11, %v1419_v0, %v1418_v55  ;;  %v1432_v57 = vsel %vm302_vm12, %v1430_v10, %v1429_v1  ;;  %v1406_v37 = vadd.f32 %v2657_v50, %v1399_v31 }
 0x5e6   :  { %v1411_v53 = vsel %vm157_vm10, %v1410_v59, 0.0  ;;  %v1422_v45 = vsel %vm155_vm9, %v1421_v46, 0.0  ;;  %v1409_v63 = vsel %vm278_vm8, %v1407_v19, %v1408_v23  ;;  %v1433_v15 = vsel %vm153_vm13, %v1432_v57, 0.0  ;;  %v1571_v57 = vld [vmem:[#allocation12 + $0x10] sm:$0xff] }
 0x5e7   :  { %v1414_v48 = vmul.f32 %v1413_v42, %v1411_v53  ;;  %v1412_v5 = vsel %vm4461_vm15, %v1409_v63, 0.0  ;;  %v1420_v41 = vsel %vm290_vm11, %v1418_v55, %v1419_v0  ;;  %v1431_v33 = vsel %vm302_vm12, %v1429_v1, %v1430_v10  ;;  %v2659_v10 = vld [vmem:[%s4398_s10 + $0x1] ss:$0 sm:$0xff] }
 0x5e8   :  { %v1425_v14 = vmul.f32 %v1424_v34, %v1422_v45  ;;  %v1415_v2 = vmul.f32 %v1413_v42, %v1412_v5  ;;  %vm4462_vm9 = vcmp.ge.s32.totalorder %v4460_v51, 2  ;;  %vm4463_vm8 = vcmp.ge.s32.totalorder %v4460_v51, 1 }
 0x5e9   :  { %v1416_v28 = vadd.f32 %v1414_v48, %v1405_v11  ;;  %v1423_v47 = vsel %vm4462_vm9, %v1420_v41, 0.0  ;;  %v1434_v56 = vsel %vm4463_vm8, %v1431_v33, 0.0  ;;  %v1436_v17 = vmul.f32 %v1435_v7, %v1433_v15  ;;  %v4466_v33 = vld [vmem:[#allocation24_spill] sm:$0xff] }
 0x5ea   :  { %v1417_v38 = vadd.f32 %v1415_v2, %v1406_v37  ;;  %v1426_v21 = vmul.f32 %v1424_v34, %v1423_v47  ;;  %v1437_v35 = vmul.f32 %v1435_v7, %v1434_v56  ;;  %v1572_v34 = vld [vmem:[#allocation12 + $0x18] sm:$0xff]  ;;  %v1573_v44 = vmul.f32 1.442695, %v1571_v57  ;;  %v4467_v47 = vld [vmem:[#allocation26_spill] sm:$0xff] }
 0x5eb   :  { %v1427_v29 = vadd.f32 %v1425_v14, %v1416_v28  ;;  %v1575_v11 = vmul.f32 1.442695, %v1572_v34  ;;  %v2658_v37 = vld [vmem:[#allocation10 + $0x1] ss:$0 sm:$0xff] }
 0x5ec   :  { %v1428_v20 = vadd.f32 %v1426_v21, %v1417_v38  ;;  %v4468_v21 = vld [vmem:[#allocation27_spill] sm:$0xff] }
 0x5ed   :  { %v1438_v40 = vadd.f32 %v1436_v17, %v1427_v29 }
 0x5ee   :  { %v1439_v18 = vadd.f32 %v1437_v35, %v1428_v20 }
 0x5ef   :  { %v2512_v26 = vmul.f32 -1.442695, %v1438_v40 }
 0x5f0   :  { %v2513_v9 = vmul.f32 -1.442695, %v1439_v18 }
 0x5f1   :  { %2732 = vpow2.f32 %v2512_v26 }
 0x5f2   :  { %2734 = vpow2.f32 %v2513_v9 }
 0x5f7   :  { %v2733_v54 = vpop.eup %2732 }
 0x5f8   :  { %v1446_v49 = vadd.f32 1.0, %v2733_v54  ;;  %v2735_v13 = vpop.eup %2734 }
 0x5f9   :  { %v1447_v25 = vadd.f32 1.0, %v2735_v13 }
 0x5fa   :  { %2736 = vrcp.f32 %v1446_v49  ;;  %v1459_v60 = vand.u32 2147483648, %v1446_v49  ;;  %v1457_v6 = vand.u32 2147483647, %v1446_v49  ;;  %vm1453_vm11 = vweird.f32 %v1446_v49 }
 0x5fb   :  { %2738 = vrcp.f32 %v1447_v25  ;;  %v1474_v24 = vand.u32 2147483648, %v1447_v25  ;;  %v1472_v19 = vand.u32 2147483647, %v1447_v25  ;;  %vm1468_vm2 = vweird.f32 %v1447_v25 }
 0x5fc   :  { %v1460_v3 = vor.u32 1.1754944e-38, %v1459_v60  ;;  %vm1458_vm1 = vcmp.eq.f32.partialorder %v1457_v6, 8.507059e+37  ;;  %2740 = vpow2.f32 %v1575_v11 }
 0x5fd   :  { %v1475_v23 = vor.u32 1.1754944e-38, %v1474_v24  ;;  %vm1473_vm9 = vcmp.eq.f32.partialorder %v1472_v19, 8.507059e+37  ;;  %2742 = vpow2.f32 %v1573_v44 }
 0x600   :  { %v2737_v36 = vpop.eup %2736 }
 0x601   :  { %v1449_v27 = vmul.f32 %v2737_v36, %v1446_v49  ;;  %v2739_v16 = vpop.eup %2738  ;;  %vm1454_vm10 = vweird.f32 %v2737_v36 }
 0x602   :  { %v1464_v61 = vmul.f32 %v2739_v16, %v1447_v25  ;;  %vm1455_vm12 = vmor %vm1453_vm11, %vm1454_vm10  ;;  %vm1469_vm13 = vweird.f32 %v2739_v16  ;;  %v3853_v53 = vpop.eup %2740 }
 0x603   :  { %v1450_v32 = vsub.f32 1.0, %v1449_v27  ;;  %vm1470_vm15 = vmor %vm1468_vm2, %vm1469_vm13  ;;  %v3855_v45 = vpop.eup %2742  ;;  %v1578_v48 = vsub.f32 0.0, %v3853_v53 }
 0x604   :  { %v1465_v8 = vsub.f32 1.0, %v1464_v61  ;;  %v1577_v7 = vsub.f32 0.0, %v3855_v45 }
 0x605   :  { %v1451_v4 = vmul.f32 %v2737_v36, %v1450_v32  ;;  %1583 = vrot.lane.b32.xlu0 %v1578_v48, %s2958_s19 }
 0x606   :  { %v1466_v50 = vmul.f32 %v2739_v16, %v1465_v8  ;;  %1581 = vrot.lane.b32.xlu1 %v1577_v7, %s2958_s19  ;;  %v2525_v8 = vmul.f32 -1.442695, %v3800_v39 }
 0x607   :  { %v1452_v30 = vadd.f32 %v2737_v36, %v1451_v4 }
 0x608   :  { %v1467_v42 = vadd.f32 %v2739_v16, %v1466_v50 }
 0x609   :  { %v1456_v55 = vsel %vm1455_vm12, %v2737_v36, %v1452_v30 }
 0x60a   :  { %v1461_v1 = vsel %vm1458_vm1, %v1460_v3, %v1456_v55  ;;  %v1471_v0 = vsel %vm1470_vm15, %v2739_v16, %v1467_v42 }
 0x60b   :  { %v3842_v31 = vmul.f32 %v1461_v1, %v1438_v40  ;;  %v1476_v62 = vsel %vm1473_vm9, %v1475_v23, %v1471_v0 }
 0x60c   :  { %v1479_v59 = vmul.f32 %v1476_v62, %v1439_v18 }
 0x60d   :  { %4464 = vst [vmem:[#allocation32_spill] sm:$0xff] %v3842_v31  ;;  %2522 = vmatmul.msk.f32.vlgmr.msrb.gmra.mxu0 %vm360_vm7, %v3842_v31 }
 0x60e   :  { %1566 = vrot.lane.b32.xlu2 %v1479_v59, %s2958_s19  ;;  %v3850_v46 = vmul.f32 %v2659_v10, %v1479_v59 }
 0x610   :  { %4465 = vst [vmem:[#allocation29_spill] sm:$0xff] %v3850_v46 }
 0x615   :  { %2523 = vmatmul.msk.f32.gmra.mxu0 %vm360_vm7, %v1479_v59 }
 0x668   :  { %v3955_v19 = vpop.permute.xlu2 %1566 }
 0x677   :  { %v3965_v0 = vpop.permute.xlu0 %1583 }
 0x68a   :  { %v3865_v63 = vpop.f32.mrf.mxu0 }
 0x68b   :  { %v1602_v15 = vperm.slane %v3865_v63, 1  ;;  %v3869_v51 = vperm.slane %v3865_v63, 0  ;;  %v3873_v5 = vadd.f32 %v2658_v37, %v3865_v63  ;;  %v1615_v41 = vperm.slane %v3865_v63, 2 }
 0x68c   :  { %v3880_v28 = vperm.slane %v3865_v63, 3  ;;  %v3887_v14 = vperm.slane %v3865_v63, 4  ;;  %v3890_v2 = vperm.slane %v3865_v63, 5  ;;  %v3899_v56 = vperm.slane %v3865_v63, 6 }
 0x68d   :  { %1607 = vperm.xlu1 %2605, %v1602_v15   ;;  %1600 = vperm.xlu0 %2604, %v3869_v51   ;;  %v3934_v16 = vperm.slane %v3865_v63, 7  ;;  %vm1527_vm15 = vcmp.ne.f32.partialorder %v3873_v5, %v3873_v5 }
 0x68e   :  { %1594 = vperm.xlu2 %2603, %v3869_v51  }
 0x692   :  { %v3907_v29 = vpop.f32.mrf.mxu0 }
 0x693   :  { %v3910_v17 = vperm.slane %v3907_v29, 1  ;;  %v1524_v38 = vadd.f32 %v2658_v37, %v3907_v29  ;;  %v3920_v20 = vperm.slane %v3907_v29, 3  ;;  %v3927_v9 = vperm.slane %v3907_v29, 5 }
 0x694   :  { %v3953_v50 = vperm.slane %v3907_v29, 2  ;;  %v3961_v42 = vperm.slane %v3907_v29, 0  ;;  %v3971_v34 = vperm.slane %v3907_v29, 6 }
 0x695   :  { %1620 = vperm.xlu1 %2605, %v1615_v41   ;;  %2607 = vset.pattern.permute.xlu0 %v3187_v52  ;;  %v1532_v40 = vand.u32 2147483647, %v1524_v38  ;;  %v1526_v61 = vmax.f32 %v1524_v38, 0.0  ;;  %vm1528_vm10 = vcmp.ne.f32.partialorder %v1524_v38, %v1524_v38 }
 0x696   :  { %2606 = vset.pattern.permute.xlu2 %v4466_v33 }
 0x697   :  { %v1534_v35 = vsub.f32 0.0, %v1532_v40 }
 0x699   :  { %v1537_v26 = vmul.f32 1.442695, %v1534_v35 }
 0x69b   :  { %2744 = vpow2.f32 %v1537_v26 }
 0x69d   :  { %2608 = vset.pattern.permute.xlu1 %v4466_v33  ;;  %1633 = vperm.xlu0 %2607, %v3880_v28  }
 0x69e   :  { %1613 = vperm.xlu2 %2606, %v1602_v15  }
 0x6a1   :  { %v2745_v18 = vpop.eup %2744 }
 0x6a2   :  { %v1548_v54 = vadd.f32 1.0, %v2745_v18  ;;  %v1551_v49 = vmul.f32 -0.5, %v2745_v18  ;;  %v1554_v36 = vand.u32 2147483647, %v2745_v18 }
 0x6a4   :  { %2746 = vlog2.f32 %v1548_v54  ;;  %v1552_v25 = vadd.f32 1.0, %v1551_v49  ;;  %vm1555_vm8 = vcmp.lt.f32.partialorder %v1554_v36, 0.0004427343 }
 0x6a5   :  { %1639 = vperm.xlu1 %2608, %v3880_v28   ;;  %2610 = vset.pattern.permute.xlu0 %v4466_v33  ;;  %2748 = vpow2.f32 %v2525_v8 }
 0x6a6   :  { %1626 = vperm.xlu2 %2606, %v1615_v41   ;;  %v1553_v32 = vmul.f32 %v2745_v18, %v1552_v25 }
 0x6aa   :  { %v2747_v13 = vpop.eup %2746 }
 0x6ab   :  { %v1550_v27 = vmul.f32 0.6931472, %v2747_v13  ;;  %v2749_v30 = vpop.eup %2748  ;;  %v4008_v13 = vperm.slane %v3907_v29, 4 }
 0x6ac   :  { %v2328_v24 = vadd.f32 1.0, %v2749_v30 }
 0x6ad   :  { %1652 = vperm.xlu1 %2608, %v3887_v14   ;;  %1665 = vperm.xlu0 %2610, %v3890_v2   ;;  %v1556_v60 = vsel %vm1555_vm8, %v1553_v32, %v1550_v27 }
 0x6ae   :  { %2609 = vset.pattern.permute.xlu2 %v3187_v52  ;;  %v1558_v4 = vadd.f32 %v1556_v60, %v1526_v61  ;;  %2750 = vrcp.f32 %v2328_v24  ;;  %v2341_v59 = vand.u32 2147483648, %v2328_v24  ;;  %vm2335_vm12 = vweird.f32 %v2328_v24 }
 0x6af   :  { %v2339_v57 = vand.u32 2147483647, %v2328_v24 }
 0x6b0   :  { %v1560_v6 = vsel %vm1528_vm10, %v1524_v38, %v1558_v4  ;;  %v2342_v37 = vor.u32 1.1754944e-38, %v2341_v59 }
 0x6b1   :  { %vm2340_vm1 = vcmp.eq.f32.partialorder %v2339_v57, 8.507059e+37 }
 0x6b4   :  { %v2751_v3 = vpop.eup %2750 }
 0x6b5   :  { %2611 = vset.pattern.permute.xlu1 %v3187_v52  ;;  %2620 = vset.pattern.permute.xlu0 %v4467_v47  ;;  %v2331_v55 = vmul.f32 %v2751_v3, %v2328_v24  ;;  %vm2336_vm11 = vweird.f32 %v2751_v3 }
 0x6b6   :  { %1646 = vperm.xlu2 %2609, %v3887_v14   ;;  %vm2337_vm13 = vmor %vm2335_vm12, %vm2336_vm11 }
 0x6b7   :  { %v2332_v1 = vsub.f32 1.0, %v2331_v55 }
 0x6b9   :  { %v2333_v10 = vmul.f32 %v2751_v3, %v2332_v1 }
 0x6bb   :  { %v2334_v62 = vadd.f32 %v2751_v3, %v2333_v10 }
 0x6bd   :  { %1672 = vperm.xlu1 %2611, %v3899_v56   ;;  %1853 = vperm.xlu0 %2620, %v3880_v28   ;;  %v2338_v44 = vsel %vm2337_vm13, %v2751_v3, %v2334_v62 }
 0x6be   :  { %1659 = vperm.xlu2 %2609, %v3890_v2  }
 0x6c5   :  { %2612 = vset.pattern.permute.xlu1 %v4466_v33  ;;  %2627 = vset.pattern.permute.xlu0 %v4466_v33 }
 0x6c6   :  { %2613 = vset.pattern.permute.xlu2 %v4467_v47 }
 0x6cd   :  { %1678 = vperm.xlu1 %2612, %v3899_v56   ;;  %1717 = vperm.xlu0 %2627, %v3910_v17  }
 0x6ce   :  { %1817 = vperm.xlu2 %2613, %v3869_v51  }
 0x6d5   :  { %2614 = vset.pattern.permute.xlu1 %v4467_v47  ;;  %2630 = vset.pattern.permute.xlu0 %v3187_v52 }
 0x6d6   :  { %2615 = vset.pattern.permute.xlu2 %v4468_v21 }
 0x6dd   :  { %1829 = vperm.xlu1 %2614, %v1602_v15   ;;  %1737 = vperm.xlu0 %2630, %v3920_v20  }
 0x6de   :  { %1835 = vperm.xlu2 %2615, %v1602_v15   ;;  %v2343_v15 = vsel %vm2340_vm1, %v2342_v37, %v2338_v44 }
 0x6e5   :  { %2617 = vset.pattern.permute.xlu1 %v4468_v21  ;;  %2633 = vset.pattern.permute.xlu0 %v4466_v33 }
 0x6e6   :  { %2616 = vset.pattern.permute.xlu2 %v4467_v47 }
 0x6e8   :  { %v3963_v23 = vpop.permute.xlu2 %1594 }
 0x6ed   :  { %1847 = vperm.xlu1 %2617, %v1615_v41   ;;  %1769 = vperm.xlu0 %2633, %v3927_v9  }
 0x6ee   :  { %1841 = vperm.xlu2 %2616, %v1615_v41   ;;  %v2360_v41 = vmul.f32 %v2343_v15, %v3800_v39  ;;  %v1531_v39 = vand.u32 2147483647, %v3873_v5 }
 0x6f0   :  { %v1533_v26 = vsub.f32 0.0, %v1531_v39 }
 0x6f2   :  { %v1535_v49 = vmul.f32 1.442695, %v1533_v26 }
 0x6f4   :  { %2752 = vpow2.f32 %v1535_v49 }
 0x6f5   :  { %2618 = vset.pattern.permute.xlu1 %v3187_v52  ;;  %2636 = vset.pattern.permute.xlu0 %v4467_v47 }
 0x6f6   :  { %2619 = vset.pattern.permute.xlu2 %v4466_v33 }
 0x6f8   :  { %v3973_v11 = vpop.permute.xlu2 %1613 }
 0x6fa   :  { %v2753_v32 = vpop.eup %2752 }
 0x6fb   :  { %v1539_v4 = vadd.f32 1.0, %v2753_v32  ;;  %v1542_v8 = vmul.f32 -0.5, %v2753_v32  ;;  %v1545_v10 = vand.u32 2147483647, %v2753_v32 }
 0x6fd   :  { %1685 = vperm.xlu1 %2618, %v3934_v16   ;;  %1925 = vperm.xlu0 %2636, %v3910_v17   ;;  %2754 = vlog2.f32 %v1539_v4  ;;  %v1543_v1 = vadd.f32 1.0, %v1542_v8  ;;  %vm1546_vm2 = vcmp.lt.f32.partialorder %v1545_v10, 0.0004427343  ;;  %v1569_v4 = vsel %vm360_vm7, %v3842_v31, %v3955_v19 }
 0x6fe   :  { %1691 = vperm.xlu2 %2619, %v3934_v16   ;;  %v4055_v8 = vsel %vm360_vm7, %v1578_v48, %v3965_v0 }
 0x6ff   :  { %v3978_v63 = vpop.permute.xlu0 %1600  ;;  %v1544_v59 = vmul.f32 %v2753_v32, %v1543_v1 }
 0x703   :  { %v2755_v55 = vpop.eup %2754 }
 0x704   :  { %v1541_v62 = vmul.f32 0.6931472, %v2755_v55 }
 0x705   :  { %2621 = vset.pattern.permute.xlu1 %v4468_v21  ;;  %1562 = vrot.lane.b32.xlu0 %v1560_v6, %s2958_s19 }
 0x706   :  { %2622 = vset.pattern.permute.xlu2 %v4467_v47  ;;  %v1547_v15 = vsel %vm1546_vm2, %v1544_v59, %v1541_v62 }
 0x70d   :  { %1859 = vperm.xlu1 %2621, %v3880_v28   ;;  %1973 = vperm.xlu0 %2636, %v3927_v9   ;;  %v3985_v28 = vpop.permute.xlu2 %1626 }
 0x70e   :  { %1865 = vperm.xlu2 %2622, %v3887_v14  }
 0x715   :  { %2623 = vset.pattern.permute.xlu1 %v4467_v47  ;;  %2645 = vset.pattern.permute.xlu0 %v4468_v21  ;;  %v3993_v38 = vpop.permute.xlu2 %1646 }
 0x716   :  { %2624 = vset.pattern.permute.xlu2 %v4468_v21 }
 0x71d   :  { %1877 = vperm.xlu1 %2623, %v3890_v2   ;;  %1823 = vperm.xlu0 %2645, %v3869_v51   ;;  %v3980_v51 = vpop.permute.xlu1 %1581  ;;  %v4005_v54 = vpop.permute.xlu2 %1659 }
 0x71e   :  { %1883 = vperm.xlu2 %2624, %v3890_v2   ;;  %v4072_v53 = vsel %vm360_vm7, %v1577_v7, %v3980_v51 }
 0x725   :  { %2626 = vset.pattern.permute.xlu1 %v4466_v33  ;;  %1943 = vperm.xlu0 %2645, %v3953_v50   ;;  %v3990_v2 = vpop.permute.xlu1 %1607 }
 0x726   :  { %2625 = vset.pattern.permute.xlu2 %v3187_v52 }
 0x728   :  { %v4014_v27 = vpop.permute.xlu2 %1817 }
 0x72d   :  { %1704 = vperm.xlu1 %2626, %v3961_v42   ;;  %1871 = vperm.xlu0 %2645, %v3887_v14   ;;  %v3988_v14 = vpop.permute.xlu0 %1633  ;;  %v3999_v35 = vpop.permute.xlu1 %1620 }
 0x72e   :  { %1698 = vperm.xlu2 %2625, %v3961_v42  }
 0x735   :  { %2628 = vset.pattern.permute.xlu1 %v3187_v52  ;;  %1991 = vperm.xlu0 %2645, %v3971_v34   ;;  %v3996_v40 = vpop.permute.xlu0 %1665  ;;  %v4010_v25 = vpop.permute.xlu1 %1639 }
 0x736   :  { %1711 = vperm.xlu2 %2625, %v3910_v17  }
 0x738   :  { %v4022_v6 = vpop.permute.xlu2 %1835 }
 0x73d   :  { %1724 = vperm.xlu1 %2628, %v3953_v50   ;;  %2364 = vrot.lane.b32.xlu0 %v2360_v41, %s2958_s19  ;;  %v4003_v18 = vpop.permute.xlu0 %1853  ;;  %v4018_v60 = vpop.permute.xlu1 %1652  ;;  %v1525_v41 = vmax.f32 %v3873_v5, 0.0 }
 0x73e   :  { %2629 = vset.pattern.permute.xlu2 %v4466_v33  ;;  %4469 = vst [vmem:[#allocation30_spill] sm:$0xff] %v4003_v18 }
 0x73f   :  { %v1557_v39 = vadd.f32 %v1547_v15, %v1525_v41 }
 0x741   :  { %v1559_v49 = vsel %vm1527_vm15, %v3873_v5, %v1557_v39 }
 0x745   :  { %2631 = vset.pattern.permute.xlu1 %v4466_v33  ;;  %v1718_v36 = vpop.permute.xlu0 %1717  ;;  %v4026_v30 = vpop.permute.xlu1 %1672 }
 0x746   :  { %1730 = vperm.xlu2 %2629, %v3953_v50  }
 0x748   :  { %v4030_v3 = vpop.permute.xlu2 %1841 }
 0x74d   :  { %1743 = vperm.xlu1 %2631, %v3920_v20   ;;  %v4034_v57 = vpop.permute.xlu1 %1678 }
 0x74e   :  { %2632 = vset.pattern.permute.xlu2 %v3187_v52 }
 0x74f   :  { %v4020_v61 = vpop.permute.xlu0 %1737 }
 0x755   :  { %1756 = vperm.xlu1 %2631, %v4008_v13   ;;  %v4045_v26 = vpop.permute.xlu1 %1829 }
 0x756   :  { %1750 = vperm.xlu2 %2632, %v4008_v13  }
 0x758   :  { %v4038_v37 = vpop.permute.xlu2 %1691 }
 0x75d   :  { %1782 = vperm.xlu1 %2631, %v3971_v34  }
 0x75e   :  { %1763 = vperm.xlu2 %2632, %v3927_v9  }
 0x75f   :  { %v4028_v24 = vpop.permute.xlu0 %1769 }
 0x765   :  { %2634 = vset.pattern.permute.xlu1 %v4467_v47 }
 0x766   :  { %1776 = vperm.xlu2 %2632, %v3971_v34  }
 0x768   :  { %v4057_v55 = vpop.permute.xlu2 %1865 }
 0x769   :  { %4470 = vst [vmem:[#allocation25_spill] sm:$0xff] %v4057_v55 }
 0x76d   :  { %1913 = vperm.xlu1 %2634, %v3961_v42  }
 0x76e   :  { %2635 = vset.pattern.permute.xlu2 %v4468_v21 }
 0x76f   :  { %v4036_v44 = vpop.permute.xlu0 %1925 }
 0x775   :  { %2637 = vset.pattern.permute.xlu1 %v4468_v21 }
 0x776   :  { %1919 = vperm.xlu2 %2635, %v3961_v42  }
 0x777   :  { %v1563_v32 = vpop.permute.xlu0 %1562 }
 0x778   :  { %v4060_v42 = vsel %vm360_vm7, %v1559_v49, %v1563_v32  ;;  %v4094_v22 = vpop.permute.xlu2 %1883 }
 0x779   :  { %v4063_v1 = vmul.f32 %v1569_v4, %v4060_v42  ;;  %v2029_v5 = vperm.slane %v4060_v42, 0  ;;  %v2022_v10 = vrot.slane %v4060_v42, 1  ;;  %v2023_v19 = vrot.slane %v4060_v42, 2  ;;  %4471 = vst [vmem:[#allocation19_spill] sm:$0xff] %v4094_v22 }
 0x77a   :  { %v2024_v48 = vrot.slane %v4060_v42, 3  ;;  %v2025_v39 = vrot.slane %v4060_v42, 4  ;;  %v2026_v49 = vrot.slane %v4060_v42, 5  ;;  %v1800_v4 = vsel %vm360_vm7, %v3973_v11, %v1718_v36 }
 0x77b   :  { %v2045_v0 = vmul.f32 %v2029_v5, %v4072_v53  ;;  %v2030_v62 = vperm.slane %v2022_v10, 0  ;;  %v2111_v59 = vrot.slane %v4063_v1, 1  ;;  %v4078_v15 = vmul.f32 %v2029_v5, %v4055_v8  ;;  %v4090_v10 = vpop.permute.xlu1 %1847 }
 0x77c   :  { %v2031_v41 = vperm.slane %v2023_v19, 0  ;;  %v2032_v5 = vperm.slane %v2024_v48, 0  ;;  %v2034_v12 = vperm.slane %v2026_v49, 0  ;;  %v2115_v11 = vrot.slane %v4063_v1, 5 }
 0x77d   :  { %1931 = vperm.xlu1 %2637, %v3910_v17   ;;  %v2061_v45 = vmul.f32 1.442695, %v2045_v0  ;;  %v2047_v7 = vmul.f32 %v2030_v62, %v4072_v53  ;;  %v2119_v51 = vperm.slane %v2111_v59, 0  ;;  %v4085_v32 = vmul.f32 %v2030_v62, %v4055_v8 }
 0x77e   :  { %2638 = vset.pattern.permute.xlu2 %v4467_v47  ;;  %v2049_v17 = vmul.f32 %v2031_v41, %v4072_v53  ;;  %v4098_v0 = vmul.f32 %v2032_v5, %v4072_v53  ;;  %v2113_v62 = vrot.slane %v4063_v1, 3  ;;  %v2033_v59 = vperm.slane %v2025_v39, 0 }
 0x77f   :  { %v4092_v19 = vmul.f32 %v2119_v51, %v1800_v4  ;;  %2756 = vpow2.f32 %v2061_v45  ;;  %v1803_v36 = vsel %vm360_vm7, %v3988_v14, %v4020_v61  ;;  %v2065_v4 = vmul.f32 1.442695, %v2047_v7 }
 0x780   :  { %v4105_v48 = vperm.slane %v2113_v62, 0  ;;  %v4108_v43 = vmul.f32 %v2033_v59, %v4072_v53  ;;  %v4111_v46 = vmul.f32 %v2034_v12, %v4072_v53  ;;  %v2027_v31 = vrot.slane %v4060_v42, 6 }
 0x781   :  { %v4117_v49 = vperm.slane %v2115_v11, 0  ;;  %v2050_v45 = vmul.f32 %v2031_v41, %v4055_v8  ;;  %v2052_v14 = vmul.f32 %v2032_v5, %v4055_v8  ;;  %v1808_v7 = vsel %vm360_vm7, %v3996_v40, %v4028_v24 }
 0x782   :  { %v4115_v39 = vmul.f32 %v4105_v48, %v1803_v36  ;;  %2758 = vpow2.f32 %v2065_v4  ;;  %v4129_v36 = vmul.f32 %v2033_v59, %v4055_v8  ;;  %v2035_v11 = vperm.slane %v2027_v31, 0 }
 0x783   :  { %v4126_v62 = vpop.permute.xlu1 %1685  ;;  %v2118_v41 = vperm.slane %v4063_v1, 0  ;;  %v4133_v5 = vmul.f32 %v2034_v12, %v4055_v8  ;;  %v4147_v31 = vperm.slane %v3907_v29, 7  ;;  %v2069_v55 = vmul.f32 1.442695, %v2049_v17 }
 0x784   :  { %v4141_v40 = vmul.f32 %v2035_v11, %v4072_v53  ;;  %v4144_v59 = vmul.f32 %v2035_v11, %v4055_v8  ;;  %v2028_v12 = vrot.slane %v4060_v42, 7 }
 0x785   :  { %2639 = vset.pattern.permute.xlu1 %v3187_v52  ;;  %v2757_v61 = vpop.eup %2756  ;;  %v4136_v52 = vmul.f32 %v4117_v49, %v1808_v7  ;;  %2760 = vpow2.f32 %v2069_v55 }
 0x786   :  { %1937 = vperm.xlu2 %2638, %v3953_v50   ;;  %v2168_v4 = vmul.f32 0.0, %v2757_v61 }
 0x788   :  { %v1699_v22 = vpop.permute.xlu2 %1698  ;;  %v2759_v7 = vpop.eup %2758 }
 0x789   :  { %v1797_v50 = vsel %vm360_vm7, %v3963_v23, %v1699_v22  ;;  %v2036_v22 = vperm.slane %v2028_v12, 0  ;;  %v2007_v12 = vsel %vm360_vm7, %v4045_v26, %v4036_v44  ;;  %v2071_v44 = vmul.f32 1.442695, %v2050_v45 }
 0x78a   :  { %v2134_v24 = vmul.f32 %v2118_v41, %v1797_v50 }
 0x78b   :  { %v4155_v61 = vpop.permute.xlu1 %1859  ;;  %v4158_v11 = vmul.f32 %v2036_v22, %v4055_v8  ;;  %v4161_v29 = vmul.f32 %v2036_v22, %v4072_v53  ;;  %v4173_v53 = vpop.permute.xlu0 %1973 }
 0x78c   :  { %v4150_v18 = vadd.f32 %v2168_v4, %v2134_v24  ;;  %v2063_v4 = vmul.f32 1.442695, %v4078_v15  ;;  %v2112_v15 = vrot.slane %v4063_v1, 2 }
 0x78d   :  { %1789 = vperm.xlu1 %2639, %v4147_v31  }
 0x78e   :  { %2640 = vset.pattern.permute.xlu2 %v4466_v33  ;;  %v2185_v23 = vmul.f32 %v2759_v7, %v4150_v18  ;;  %v2761_v33 = vpop.eup %2760  ;;  %2762 = vpow2.f32 %v2063_v4 }
 0x790   :  { %v1712_v42 = vpop.permute.xlu2 %1711 }
 0x791   :  { %v1799_v17 = vsel %vm360_vm7, %v3990_v2, %v1712_v42  ;;  %v2067_v2 = vmul.f32 1.442695, %v4085_v32  ;;  %v2120_v42 = vperm.slane %v2112_v15, 0 }
 0x792   :  { %v2136_v50 = vmul.f32 %v2119_v51, %v1799_v17 }
 0x793   :  { %v4175_v7 = vpop.permute.xlu1 %1877  ;;  %2764 = vpow2.f32 %v2067_v2  ;;  %v4181_v26 = vpop.permute.xlu0 %1823 }
 0x794   :  { %v2189_v24 = vadd.f32 %v2185_v23, %v2136_v50  ;;  %v2763_v51 = vpop.eup %2762  ;;  %2766 = vpow2.f32 %v2071_v44 }
 0x795   :  { %2642 = vset.pattern.permute.xlu1 %v4468_v21  ;;  %v2169_v50 = vmul.f32 0.0, %v2763_v51  ;;  %v2073_v51 = vmul.f32 1.442695, %v4098_v0 }
 0x796   :  { %1795 = vperm.xlu2 %2640, %v4147_v31   ;;  %v2202_v8 = vmul.f32 %v2761_v33, %v2189_v24  ;;  %v4171_v55 = vmul.f32 %v2189_v24, %v2007_v12  ;;  %v2075_v33 = vmul.f32 1.442695, %v2052_v14 }
 0x798   :  { %2768 = vpow2.f32 %v2075_v33 }
 0x799   :  { %v2765_v2 = vpop.eup %2764  ;;  %2770 = vpow2.f32 %v2073_v51  ;;  %v2079_v51 = vmul.f32 1.442695, %v4129_v36 }
 0x79a   :  { %v2767_v15 = vpop.eup %2766 }
 0x79d   :  { %1955 = vperm.xlu1 %2642, %v3920_v20  }
 0x79e   :  { %2641 = vset.pattern.permute.xlu2 %v4467_v47  ;;  %v2769_v44 = vpop.eup %2768 }
 0x79f   :  { %v1705_v22 = vpop.permute.xlu1 %1704 }
 0x7a0   :  { %v1731_v23 = vpop.permute.xlu2 %1730  ;;  %v1798_v17 = vsel %vm360_vm7, %v3978_v63, %v1705_v22 }
 0x7a1   :  { %v1802_v32 = vsel %vm360_vm7, %v3985_v28, %v1731_v23  ;;  %v2135_v24 = vmul.f32 %v2118_v41, %v1798_v17  ;;  %v1944_v28 = vpop.permute.xlu0 %1943  ;;  %v2114_v23 = vrot.slane %v4063_v1, 4 }
 0x7a2   :  { %v2139_v4 = vmul.f32 %v2120_v42, %v1802_v32  ;;  %v2010_v22 = vsel %vm360_vm7, %v4090_v10, %v1944_v28 }
 0x7a3   :  { %v4187_v12 = vadd.f32 %v2169_v50, %v2135_v24  ;;  %v2122_v0 = vperm.slane %v2114_v23, 0 }
 0x7a5   :  { %v2186_v45 = vmul.f32 %v2765_v2, %v4187_v12  ;;  %2643 = vset.pattern.permute.xlu1 %v4467_v47  ;;  %v2081_v2 = vmul.f32 1.442695, %v4111_v46 }
 0x7a6   :  { %1949 = vperm.xlu2 %2641, %v3920_v20  }
 0x7a7   :  { %v4193_v63 = vadd.f32 %v2186_v45, %v4092_v19  ;;  %v2077_v19 = vmul.f32 1.442695, %v4108_v43  ;;  %v2085_v43 = vmul.f32 1.442695, %v4141_v40 }
 0x7a9   :  { %v2203_v41 = vmul.f32 %v2767_v15, %v4193_v63  ;;  %2772 = vpow2.f32 %v2077_v19  ;;  %v2771_v15 = vpop.eup %2770 }
 0x7aa   :  { %2774 = vpow2.f32 %v2081_v2 }
 0x7ab   :  { %v2207_v14 = vadd.f32 %v2203_v41, %v2139_v4  ;;  %2776 = vpow2.f32 %v2085_v43 }
 0x7ac   :  { %2778 = vpow2.f32 %v2079_v51 }
 0x7ad   :  { %1961 = vperm.xlu1 %2643, %v4008_v13   ;;  %v2220_v20 = vmul.f32 %v2769_v44, %v2207_v14  ;;  %v4201_v17 = vmul.f32 %v2207_v14, %v2010_v22  ;;  %v2116_v44 = vrot.slane %v4063_v1, 6 }
 0x7ae   :  { %2644 = vset.pattern.permute.xlu2 %v4468_v21 }
 0x7af   :  { %v1725_v32 = vpop.permute.xlu1 %1724  ;;  %v2124_v19 = vperm.slane %v2116_v44, 0 }
 0x7b0   :  { %v1751_v50 = vpop.permute.xlu2 %1750  ;;  %v1801_v24 = vsel %vm360_vm7, %v3999_v35, %v1725_v32 }
 0x7b1   :  { %v1805_v10 = vsel %vm360_vm7, %v3993_v38, %v1751_v50  ;;  %v2138_v4 = vmul.f32 %v2120_v42, %v1801_v24  ;;  %v2773_v38 = vpop.eup %2772 }
 0x7b2   :  { %v2142_v33 = vmul.f32 %v2122_v0, %v1805_v10  ;;  %v2775_v40 = vpop.eup %2774 }
 0x7b3   :  { %v4210_v45 = vadd.f32 %v2202_v8, %v2138_v4  ;;  %v2777_v36 = vpop.eup %2776 }
 0x7b5   :  { %v2219_v28 = vmul.f32 %v2771_v15, %v4210_v45  ;;  %2646 = vset.pattern.permute.xlu1 %v4468_v21  ;;  %v2779_v15 = vpop.eup %2778 }
 0x7b6   :  { %1967 = vperm.xlu2 %2644, %v4008_v13   ;;  %v2089_v13 = vmul.f32 1.442695, %v4161_v29  ;;  %v2015_v29 = vsel %vm360_vm7, %v4175_v7, %v4173_v53 }
 0x7b7   :  { %v4217_v35 = vadd.f32 %v2219_v28, %v4115_v39  ;;  %v2526_v39 = vmul.f32 -1.442695, %v3812_v58 }
 0x7b8   :  { %v1764_v42 = vpop.permute.xlu2 %1763  ;;  %2780 = vpow2.f32 %v2089_v13 }
 0x7b9   :  { %v1807_v46 = vsel %vm360_vm7, %v4005_v54, %v1764_v42  ;;  %v2236_v8 = vmul.f32 %v2773_v38, %v4217_v35  ;;  %2782 = vpow2.f32 %v2526_v39  ;;  %v2091_v42 = vmul.f32 1.442695, %v4158_v11 }
 0x7ba   :  { %v2144_v41 = vmul.f32 %v4117_v49, %v1807_v46 }
 0x7bb   :  { %v4224_v14 = vadd.f32 %v2236_v8, %v2142_v33  ;;  %v2083_v33 = vmul.f32 1.442695, %v4133_v5 }
 0x7bd   :  { %v2253_v22 = vmul.f32 %v2775_v40, %v4224_v14  ;;  %1979 = vperm.xlu1 %2646, %v3927_v9   ;;  %2784 = vpow2.f32 %v2083_v33 }
 0x7be   :  { %2647 = vset.pattern.permute.xlu2 %v4467_v47  ;;  %v2781_v7 = vpop.eup %2780 }
 0x7bf   :  { %v2257_v54 = vadd.f32 %v2253_v22, %v2144_v41  ;;  %v1744_v49 = vpop.permute.xlu1 %1743  ;;  %v2783_v28 = vpop.eup %2782 }
 0x7c0   :  { %v1777_v23 = vpop.permute.xlu2 %1776  ;;  %v1804_v32 = vsel %vm360_vm7, %v4010_v25, %v1744_v49  ;;  %v2329_v43 = vadd.f32 1.0, %v2783_v28 }
 0x7c1   :  { %v1809_v9 = vsel %vm360_vm7, %v4026_v30, %v1777_v23  ;;  %v2141_v50 = vmul.f32 %v4105_v48, %v1804_v32  ;;  %v2270_v24 = vmul.f32 %v2777_v36, %v2257_v54  ;;  %v4240_v10 = vmul.f32 %v2257_v54, %v2015_v29 }
 0x7c2   :  { %v2146_v4 = vmul.f32 %v2124_v19, %v1809_v9  ;;  %v2087_v30 = vmul.f32 1.442695, %v4144_v59  ;;  %v2356_v9 = vand.u32 2147483648, %v2329_v43  ;;  %vm2350_vm8 = vweird.f32 %v2329_v43 }
 0x7c3   :  { %v4243_v2 = vadd.f32 %v2220_v20, %v2141_v50  ;;  %v2785_v8 = vpop.eup %2784  ;;  %v2354_v50 = vand.u32 2147483647, %v2329_v43 }
 0x7c4   :  { %v4245_v53 = vadd.f32 %v2270_v24, %v2146_v4  ;;  %2786 = vpow2.f32 %v2087_v30 }
 0x7c5   :  { %1895 = vperm.xlu1 %2646, %v3899_v56   ;;  %v2237_v25 = vmul.f32 %v2779_v15, %v4243_v2  ;;  %2788 = vrcp.f32 %v2329_v43  ;;  %vm2355_vm11 = vcmp.eq.f32.partialorder %v2354_v50, 8.507059e+37 }
 0x7c6   :  { %1889 = vperm.xlu2 %2647, %v3899_v56   ;;  %v4252_v48 = vmul.f32 %v2781_v7, %v4245_v53  ;;  %2790 = vpow2.f32 %v2091_v42 }
 0x7c7   :  { %v1757_v5 = vpop.permute.xlu1 %1756 }
 0x7c8   :  { %v1806_v20 = vsel %vm360_vm7, %v4018_v60, %v1757_v5 }
 0x7c9   :  { %v2143_v38 = vmul.f32 %v2122_v0, %v1806_v20 }
 0x7ca   :  { %v2787_v60 = vpop.eup %2786 }
 0x7cb   :  { %v4257_v46 = vadd.f32 %v2237_v25, %v2143_v38  ;;  %v2789_v13 = vpop.eup %2788 }
 0x7cc   :  { %v2346_v39 = vmul.f32 %v2789_v13, %v2329_v43  ;;  %vm2351_vm9 = vweird.f32 %v2789_v13 }
 0x7cd   :  { %2648 = vset.pattern.permute.xlu1 %v4467_v47  ;;  %v2254_v56 = vmul.f32 %v2785_v8, %v4257_v46  ;;  %v2791_v47 = vpop.eup %2790  ;;  %vm2352_vm10 = vmor %vm2350_vm8, %vm2351_vm9 }
 0x7ce   :  { %1985 = vperm.xlu2 %2647, %v3971_v34   ;;  %v2347_v44 = vsub.f32 1.0, %v2346_v39 }
 0x7cf   :  { %v1783_v59 = vpop.permute.xlu1 %1782  ;;  %v4263_v41 = vadd.f32 %v2254_v56, %v4136_v52 }
 0x7d0   :  { %v1810_v0 = vsel %vm360_vm7, %v4034_v57, %v1783_v59  ;;  %v1920_v52 = vpop.permute.xlu2 %1919  ;;  %v2348_v22 = vmul.f32 %v2789_v13, %v2347_v44 }
 0x7d1   :  { %v2147_v11 = vmul.f32 %v2124_v19, %v1810_v0  ;;  %v2271_v51 = vmul.f32 %v2787_v60, %v4263_v41  ;;  %v2006_v57 = vsel %vm360_vm7, %v4181_v26, %v1920_v52 }
 0x7d2   :  { %v2175_v29 = vmul.f32 %v4187_v12, %v2006_v57  ;;  %v2349_v32 = vadd.f32 %v2789_v13, %v2348_v22  ;;  %v2357_v12 = vor.u32 1.1754944e-38, %v2356_v9  ;;  %v4472_v57 = vld [vmem:[#allocation30_spill] sm:$0xff] }
 0x7d3   :  { %v4268_v40 = vadd.f32 %v2271_v51, %v2147_v11 }
 0x7d5   :  { %1901 = vperm.xlu1 %2648, %v3934_v16   ;;  %v2288_v34 = vmul.f32 %v2791_v47, %v4268_v40 }
 0x7d6   :  { %2649 = vset.pattern.permute.xlu2 %v4468_v21 }
 0x7dd   :  { %1997 = vperm.xlu1 %2648, %v4147_v31  }
 0x7de   :  { %1907 = vperm.xlu2 %2649, %v3934_v16  }
 0x7df   :  { %v1914_v54 = vpop.permute.xlu1 %1913 }
 0x7e0   :  { %v1938_v49 = vpop.permute.xlu2 %1937  ;;  %v2005_v36 = vsel %vm360_vm7, %v4014_v27, %v1914_v54  ;;  %v2353_v27 = vsel %vm2352_vm10, %v2789_v13, %v2349_v32 }
 0x7e1   :  { %v2009_v21 = vsel %vm360_vm7, %v4030_v3, %v1938_v49  ;;  %v2174_v23 = vmul.f32 %v4150_v18, %v2005_v36  ;;  %v2358_v24 = vsel %vm2355_vm11, %v2357_v12, %v2353_v27  ;;  %v4473_v12 = vld [vmem:[#allocation25_spill] sm:$0xff] }
 0x7e2   :  { %v2208_v19 = vmul.f32 %v4210_v45, %v2009_v21  ;;  %v2361_v18 = vmul.f32 %v2358_v24, %v3812_v58  ;;  %v2117_v45 = vrot.slane %v4063_v1, 7 }
 0x7e3   :  { %v2176_v26 = vadd.f32 %v2175_v29, %v2174_v23 }
 0x7e4   :  { %v2210_v16 = vadd.f32 %v4201_v17, %v2208_v19  ;;  %v2125_v25 = vperm.slane %v2117_v45, 0 }
 0x7e5   :  { %v2177_v3 = vrot.slane %v2176_v26, 4 }
 0x7e6   :  { %2003 = vperm.xlu2 %2649, %v4147_v31   ;;  %v2211_v4 = vrot.slane %v2210_v16, 4 }
 0x7e7   :  { %v2178_v33 = vadd.f32 %v2177_v3, %v2176_v26 }
 0x7e8   :  { %v2212_v17 = vadd.f32 %v2211_v4, %v2210_v16 }
 0x7e9   :  { %v2179_v20 = vrot.slane %v2178_v33, 2 }
 0x7ea   :  { %v2213_v1 = vrot.slane %v2212_v17, 2 }
 0x7eb   :  { %v2180_v42 = vadd.f32 %v2179_v20, %v2178_v33 }
 0x7ec   :  { %v2214_v56 = vadd.f32 %v2213_v1, %v2212_v17 }
 0x7ed   :  { %v2181_v60 = vrot.slane %v2180_v42, 1 }
 0x7ee   :  { %2366 = vrot.lane.b32.xlu2 %v2361_v18, %s2958_s19 }
 0x7ef   :  { %v1932_v15 = vpop.permute.xlu1 %1931  ;;  %v2182_v51 = vadd.f32 %v2181_v60, %v2180_v42 }
 0x7f0   :  { %v1796_v7 = vpop.permute.xlu2 %1795  ;;  %v2008_v31 = vsel %vm360_vm7, %v4022_v6, %v1932_v15  ;;  %v2215_v6 = vrot.slane %v2214_v56, 1 }
 0x7f1   :  { %v1812_v28 = vsel %vm360_vm7, %v4038_v37, %v1796_v7  ;;  %v2192_v30 = vmul.f32 %v4193_v63, %v2008_v31  ;;  %v4474_v31 = vld [vmem:[#allocation19_spill] sm:$0xff] }
 0x7f2   :  { %v2149_v5 = vmul.f32 %v2125_v25, %v1812_v28  ;;  %v2216_v63 = vadd.f32 %v2215_v6, %v2214_v56 }
 0x7f3   :  { %v2193_v58 = vadd.f32 %v2192_v30, %v4171_v55 }
 0x7f4   :  { %v4295_v43 = vadd.f32 %v2288_v34, %v2149_v5 }
 0x7f5   :  { %v2194_v38 = vrot.slane %v2193_v58, 4 }
 0x7f7   :  { %v2195_v8 = vadd.f32 %v2194_v38, %v2193_v58 }
 0x7f9   :  { %v2196_v59 = vrot.slane %v2195_v8, 2 }
 0x7fb   :  { %v2197_v0 = vadd.f32 %v2196_v59, %v2195_v8 }
 0x7fd   :  { %v2198_v11 = vrot.slane %v2197_v0, 1 }
 0x7ff   :  { %v2199_v37 = vadd.f32 %v2198_v11, %v2197_v0  ;;  %v1790_v13 = vpop.permute.xlu1 %1789  ;;  %v2532_v11 = vld [vmem:[%s4399_s11 + $0x68] sm:$0xff] }
 0x800   :  { %v1811_v47 = vsel %vm360_vm7, %v4126_v62, %v1790_v13  ;;  %v1950_v44 = vpop.permute.xlu2 %1949  ;;  %v2530_v13 = vld [vmem:[%s4399_s11 + $0x58] sm:$0xff] }
 0x801   :  { %v2148_v55 = vmul.f32 %v2125_v25, %v1811_v47  ;;  %v2302_v34 = vsel %vm1186_vm3, %v2182_v51, %v2199_v37  ;;  %v2011_v22 = vsel %vm360_vm7, %v4472_v57, %v1950_v44  ;;  %v2528_v57 = vld [vmem:[%s4399_s11 + $0x48] sm:$0xff]  ;;  %vm4475_vm3 = vcmask 1045504  }
 0x802   :  { %v2303_v39 = vsel %vm1188_vm4, %v2302_v34, %v2216_v63  ;;  %v2225_v36 = vmul.f32 %v4217_v35, %v2011_v22  ;;  %v2529_v34 = vld [vmem:[%s4399_s11 + $0x50] sm:$0xff]  ;;  %vm4477_vm4 = vcmask 1046528  }
 0x803   :  { %v4302_v52 = vadd.f32 %v4252_v48, %v2148_v55  ;;  %v1872_v48 = vpop.permute.xlu0 %1871 }
 0x80b   :  { %v1992_v1 = vpop.permute.xlu0 %1991 }
 0x80f   :  { %v1956_v54 = vpop.permute.xlu1 %1955 }
 0x810   :  { %v2012_v49 = vsel %vm360_vm7, %v4155_v61, %v1956_v54  ;;  %v1968_v32 = vpop.permute.xlu2 %1967  ;;  %v2527_v54 = vld [vmem:[%s4399_s11 + $0x40] sm:$0xff] }
 0x811   :  { %v2226_v62 = vmul.f32 %v4243_v2, %v2012_v49  ;;  %v2014_v16 = vsel %vm360_vm7, %v1872_v48, %v1968_v32 }
 0x812   :  { %v2243_v61 = vmul.f32 %v4257_v46, %v2014_v16 }
 0x813   :  { %v2227_v29 = vadd.f32 %v2226_v62, %v2225_v36 }
 0x815   :  { %v2228_v21 = vrot.slane %v2227_v29, 4 }
 0x817   :  { %v2229_v23 = vadd.f32 %v2228_v21, %v2227_v29 }
 0x819   :  { %v2230_v19 = vrot.slane %v2229_v23, 2 }
 0x81b   :  { %v2231_v26 = vadd.f32 %v2230_v19, %v2229_v23 }
 0x81d   :  { %v2232_v9 = vrot.slane %v2231_v26, 1 }
 0x81f   :  { %v2233_v50 = vadd.f32 %v2232_v9, %v2231_v26  ;;  %v1962_v27 = vpop.permute.xlu1 %1961 }
 0x820   :  { %v2013_v24 = vsel %vm360_vm7, %v4473_v12, %v1962_v27  ;;  %v1890_v45 = vpop.permute.xlu2 %1889 }
 0x821   :  { %v2242_v35 = vmul.f32 %v4224_v14, %v2013_v24  ;;  %v2304_v2 = vsel %vm1190_vm5, %v2303_v39, %v2233_v50 }
 0x823   :  { %v2244_v3 = vadd.f32 %v2243_v61, %v2242_v35  ;;  %v2797_v61 = vld [vmem:[%s4398_s10 + $0x1] ss:$0 sm:$0xff]  ;;  %v4476_v35 = vld [vmem:[#allocation32_spill] sm:$0xff] }
 0x825   :  { %v2245_v4 = vrot.slane %v2244_v3, 4 }
 0x827   :  { %v2246_v18 = vadd.f32 %v2245_v4, %v2244_v3  ;;  %v2365_v4 = vpop.permute.xlu0 %2364 }
 0x828   :  { %v1986_v5 = vpop.permute.xlu2 %1985 }
 0x829   :  { %v2247_v33 = vrot.slane %v2246_v18, 2  ;;  %v2017_v58 = vsel %vm360_vm7, %v1890_v45, %v1986_v5  ;;  %v4478_v45 = vld [vmem:[#allocation29_spill] sm:$0xff] }
 0x82a   :  { %v2276_v56 = vmul.f32 %v4245_v53, %v2017_v58 }
 0x82b   :  { %v2248_v15 = vadd.f32 %v2247_v33, %v2246_v18 }
 0x82d   :  { %v2249_v17 = vrot.slane %v2248_v15, 1 }
 0x82f   :  { %v2250_v7 = vadd.f32 %v2249_v17, %v2248_v15  ;;  %v1980_v25 = vpop.permute.xlu1 %1979 }
 0x830   :  { %v2016_v28 = vsel %vm360_vm7, %v4474_v31, %v1980_v25  ;;  %v4479_v25 = vld [vmem:[#allocation28_spill] sm:$0xff] }
 0x831   :  { %v2260_v30 = vmul.f32 %v4263_v41, %v2016_v28  ;;  %v2305_v46 = vsel %vm1192_vm6, %v2304_v2, %v2250_v7  ;;  %v2534_v41 = vld [vmem:[%s4399_s11 + $0x78] sm:$0xff]  ;;  %v2318_v2 = vmul.f32 %v2797_v61, %v4476_v35 }
 0x832   :  { %2395 = vmatpush.msrb.mxu3 %v2534_v41 }
 0x833   :  { %v2261_v14 = vadd.f32 %v2260_v30, %v4240_v10  ;;  %v2533_v10 = vld [vmem:[%s4399_s11 + $0x70] sm:$0xff] }
 0x834   :  { %2396 = vmatpush.msrb.mxu3 %v2533_v10 }
 0x835   :  { %v2262_v20 = vrot.slane %v2261_v14, 4 }
 0x836   :  { %2397 = vmatpush.msrb.mxu3 %v2532_v11 }
 0x837   :  { %v2263_v38 = vadd.f32 %v2262_v20, %v2261_v14  ;;  %v1896_v42 = vpop.permute.xlu1 %1895  ;;  %v4480_v14 = vld [vmem:[#allocation31_spill] sm:$0xff] }
 0x838   :  { %v2018_v8 = vsel %vm360_vm7, %v1896_v42, %v1992_v1  ;;  %v1908_v47 = vpop.permute.xlu2 %1907  ;;  %v4481_v42 = vld [vmem:[#allocation20_spill] sm:$0xff] }
 0x839   :  { %v2264_v59 = vrot.slane %v2263_v38, 2  ;;  %v2277_v60 = vmul.f32 %v4268_v40, %v2018_v8  ;;  %v2531_v40 = vld [vmem:[%s4399_s11 + $0x60] sm:$0xff] }
 0x83a   :  { %2398 = vmatpush.msrb.mxu3 %v2531_v40 }
 0x83b   :  { %v2265_v0 = vadd.f32 %v2264_v59, %v2263_v38  ;;  %v2278_v6 = vadd.f32 %v2277_v60, %v2276_v56 }
 0x83c   :  { %2399 = vmatpush.msrb.mxu3 %v2530_v13 }
 0x83d   :  { %v2266_v53 = vrot.slane %v2265_v0, 1  ;;  %v2279_v51 = vrot.slane %v2278_v6, 4 }
 0x83e   :  { %2400 = vmatpush.msrb.mxu3 %v2529_v34  ;;  %v2661_v34 = vld [vmem:[%s4401_s13] ss:$0 sm:$0xff] }
 0x83f   :  { %v2280_v37 = vadd.f32 %v2279_v51, %v2278_v6  ;;  %v2267_v63 = vadd.f32 %v2266_v53, %v2265_v0 }
 0x840   :  { %2401 = vmatpush.msrb.mxu3 %v2528_v57  ;;  %v2004_v29 = vpop.permute.xlu2 %2003 }
 0x841   :  { %v2281_v55 = vrot.slane %v2280_v37, 2  ;;  %v2306_v39 = vsel %vm1194_vm14, %v2305_v46, %v2267_v63  ;;  %v2020_v21 = vsel %vm360_vm7, %v1908_v47, %v2004_v29  ;;  %v2660_v63 = vld [vmem:[%s4400_s12] ss:$0 sm:$0xff]  ;;  %s2962_s12 = smov [#allocation13]  }
 0x842   :  { %2402 = vmatpush.msrb.mxu3 %v2527_v54  ;;  %v2294_v32 = vmul.f32 %v4295_v43, %v2020_v21  ;;  %s2476_s13 = sshll.u32 %s2962_s12, 4  ;;  %s2477_s13 = int_to_ptr.vmem [resolvable:$true] %s2476_s13 }
 0x843   :  { %v2282_v44 = vadd.f32 %v2281_v55, %v2280_v37 }
 0x845   :  { %v2283_v22 = vrot.slane %v2282_v44, 1 }
 0x847   :  { %v1902_v49 = vpop.permute.xlu1 %1901  ;;  %v2284_v36 = vadd.f32 %v2283_v22, %v2282_v44 }
 0x848   :  { %v2367_v15 = vpop.permute.xlu2 %2366 }
 0x849   :  { %v2307_v62 = vsel %vm4475_vm3, %v2306_v39, %v2284_v36 }
 0x84f   :  { %v1998_v23 = vpop.permute.xlu1 %1997 }
 0x850   :  { %v2019_v19 = vsel %vm360_vm7, %v1902_v49, %v1998_v23 }
 0x851   :  { %v2293_v26 = vmul.f32 %v4302_v52, %v2019_v19 }
 0x853   :  { %v2295_v48 = vadd.f32 %v2294_v32, %v2293_v26 }
 0x855   :  { %v2296_v9 = vrot.slane %v2295_v48, 4 }
 0x857   :  { %v2297_v16 = vadd.f32 %v2296_v9, %v2295_v48 }
 0x859   :  { %v2298_v50 = vrot.slane %v2297_v16, 2 }
 0x85b   :  { %v2299_v27 = vadd.f32 %v2298_v50, %v2297_v16 }
 0x85d   :  { %v2300_v12 = vrot.slane %v2299_v27, 1 }
 0x85f   :  { %v2301_v24 = vadd.f32 %v2300_v12, %v2299_v27 }
 0x861   :  { %v2308_v3 = vsel %vm4477_vm4, %v2307_v62, %v2301_v24 }
 0x862   :  { %2310 = vrot.lane.b32.xlu1 %v2308_v3, %s2958_s19  ;;  %v2320_v43 = vadd.f32 %v2318_v2, %v2308_v3 }
 0x864   :  { %v2370_v52 = vmul.f32 %v2365_v4, %v2320_v43 }
 0x866   :  { %2535 = vmatmul.msk.f32.vlgmr.msrb.gmra.mxu3 %vm360_vm7, %v2370_v52 }
 0x8d4   :  { %v2311_v18 = vpop.permute.xlu1 %2310 }
 0x8d5   :  { %v2321_v33 = vadd.f32 %v4478_v45, %v2311_v18 }
 0x8d7   :  { %v2371_v17 = vmul.f32 %v2367_v15, %v2321_v33 }
 0x8d9   :  { %2536 = vmatmul.msk.f32.gmra.mxu3 %vm360_vm7, %v2371_v17 }
 0x8e9   :  { %v2404_v7 = vpop.f32.mrf.mxu3 }
 0x8ea   :  { %v2405_v31 = vadd.f32 %v2404_v7, %v4479_v25 }
 0x8ec   :  { %v2412_v28 = vsel %vm167_vm0, %v2405_v31, 0.0  ;;  %v2420_v30 = vmul.f32 %v2405_v31, %v2405_v31 }
 0x8ed   :  { %2413 = vadd.xlane.f32.xlu0 %v2412_v28 }
 0x8ee   :  { %v2422_v46 = vsel %vm167_vm0, %v2420_v30, 0.0 }
 0x8ef   :  { %2423 = vadd.xlane.f32.xlu2 %v2422_v46 }
 0x95c   :  { %v2407_v5 = vpop.f32.mrf.mxu3 }
 0x95d   :  { %v2408_v20 = vadd.f32 %v2407_v5, %v4480_v14 }
 0x95f   :  { %v2415_v58 = vsel %vm167_vm0, %v2408_v20, 0.0  ;;  %v2421_v1 = vmul.f32 %v2408_v20, %v2408_v20 }
 0x960   :  { %2416 = vadd.xlane.f32.xlu1 %v2415_v58  ;;  %v2414_v38 = vpop.xlane.xlu0 %2413 }
 0x961   :  { %v2418_v8 = vmul.f32 %v2414_v38, %v4481_v42  ;;  %v2425_v56 = vsel %vm167_vm0, %v2421_v1, 0.0 }
 0x962   :  { %v2424_v59 = vpop.xlane.xlu2 %2423  ;;  %2426 = vadd.xlane.f32.xlu0 %v2425_v56 }
 0x963   :  { %v2432_v60 = vmul.f32 %v2418_v8, %v2418_v8  ;;  %v2428_v41 = vmul.f32 %v2424_v59, %v4481_v42  ;;  %v2430_v13 = vsub.f32 %v2405_v31, %v2418_v8 }
 0x965   :  { %v2434_v10 = vsub.f32 %v2428_v41, %v2432_v60 }
 0x967   :  { %v2436_v0 = vadd.f32 1e-05, %v2434_v10 }
 0x969   :  { %2792 = vrsqrt.f32 %v2436_v0  ;;  %vm2444_vm5 = vweird.f32 %v2436_v0 }
 0x96f   :  { %v2793_v6 = vpop.eup %2792 }
 0x970   :  { %v2439_v11 = vmul.f32 %v2793_v6, %v2436_v0  ;;  %vm2445_vm7 = vweird.f32 %v2793_v6 }
 0x971   :  { %vm2446_vm6 = vmor %vm2444_vm5, %vm2445_vm7 }
 0x972   :  { %v2440_v53 = vmul.f32 %v2793_v6, %v2439_v11 }
 0x974   :  { %v2441_v51 = vmul.f32 0.5, %v2440_v53 }
 0x976   :  { %v2442_v40 = vsub.f32 1.5, %v2441_v51 }
 0x978   :  { %v2443_v37 = vmul.f32 %v2793_v6, %v2442_v40 }
 0x97a   :  { %v2447_v47 = vsel %vm2446_vm6, %v2793_v6, %v2443_v37 }
 0x97b   :  { %v2458_v55 = vmul.f32 %v2447_v47, %v2430_v13 }
 0x97d   :  { %v2463_v39 = vmul.f32 %v2660_v63, %v2458_v55 }
 0x97f   :  { %v2468_v44 = vadd.f32 %v2661_v34, %v2463_v39 }
 0x981   :  { %2470 = vst.msk [vmem:[#allocation13] sm:$0xff] %vm167_vm0, %v2468_v44 }
 0x9d3   :  { %v2417_v57 = vpop.xlane.xlu1 %2416 }
 0x9d4   :  { %v2419_v22 = vmul.f32 %v2417_v57, %v4481_v42 }
 0x9d5   :  { %v2427_v54 = vpop.xlane.xlu0 %2426 }
 0x9d6   :  { %v2433_v49 = vmul.f32 %v2419_v22, %v2419_v22  ;;  %v2429_v36 = vmul.f32 %v2427_v54, %v4481_v42  ;;  %v2431_v9 = vsub.f32 %v2408_v20, %v2419_v22 }
 0x9d8   :  { %v2435_v62 = vsub.f32 %v2429_v36, %v2433_v49 }
 0x9da   :  { %v2437_v29 = vadd.f32 1e-05, %v2435_v62 }
 0x9dc   :  { %2794 = vrsqrt.f32 %v2437_v29  ;;  %vm2454_vm12 = vweird.f32 %v2437_v29 }
 0x9e2   :  { %v2795_v21 = vpop.eup %2794 }
 0x9e3   :  { %v2449_v23 = vmul.f32 %v2795_v21, %v2437_v29  ;;  %vm2455_vm14 = vweird.f32 %v2795_v21 }
 0x9e4   :  { %vm2456_vm13 = vmor %vm2454_vm12, %vm2455_vm14 }
 0x9e5   :  { %v2450_v19 = vmul.f32 %v2795_v21, %v2449_v23 }
 0x9e7   :  { %v2451_v32 = vmul.f32 0.5, %v2450_v19 }
 0x9e9   :  { %v2452_v26 = vsub.f32 1.5, %v2451_v32 }
 0x9eb   :  { %v2453_v48 = vmul.f32 %v2795_v21, %v2452_v26 }
 0x9ed   :  { %v2457_v16 = vsel %vm2456_vm13, %v2795_v21, %v2453_v48 }
 0x9ee   :  { %v2459_v50 = vmul.f32 %v2457_v16, %v2431_v9 }
 0x9f0   :  { %v2464_v27 = vmul.f32 %v2660_v63, %v2459_v50 }
 0x9f2   :  { %v2469_v12 = vadd.f32 %v2661_v34, %v2464_v27 }
 0x9f4   :  { %2471 = vst.msk [vmem:[#allocation13 + $0x8] sm:$0xff] %vm167_vm0, %v2469_v12 }
 0x9f5   :  { %2484 = dma.vmem_to_hbm [thread:$0]  %s2477_s13, 256, %s2479_s6, [#allocation6], %s2951_s21, %s2951_s21, %s2952_s22  }
 0x9f6   :  { %2948 = dma.done.wait [#allocation6], 256  }
 0x9f7   :  { %2949 = vsyncadd [#allocation6], 4294967040 }
 0x9f8   :  { %2489 = vsyncpa [#allocation5], 1 }
 0x9f9   :  { %2490 = vsyncpa [#allocation8], 1 }
 0x9fa   :  { %2491 = vsyncpa [#allocation11], 1 }
 0x9fb   :  { %2492 = vsyncpa [#allocation6], 1 }

</bundles_post_ra>
